<compile_context>
chip_gen: v5e
topology: v5e:2x2
jax: 0.10.0
libtpu: 0.0.40
codegen_flags: <defaults>
</compile_context>

<pallas_src>
import functools

import jax
import jax.numpy as jnp
from jax.experimental import pallas as pl
from jax.experimental.pallas import tpu as pltpu

GATE_PAD = 128  # gating block padded to one full lane group


def moe_block_kernel(x_ref, wf_ref, bf_ref, ex_ref, w2a_ref, b2p_ref,
                     gamma_ref, beta_ref, out_ref, gsum_ref, *,
                     num_experts, expert_hidden, gate_pad, total_rows,
                     mask_rows):
    E = num_experts
    H = expert_hidden
    EH = E * H

    x = x_ref[...]                                      # (TB, D) f32
    xb = x.astype(jnp.bfloat16)                         # bf16 matmul operand
    TB = x.shape[0]

    # ---- fused MXU pass #1: [all expert fc1 | padded gating logits] --------
    fused = jnp.dot(xb, wf_ref[...],
                    preferred_element_type=jnp.float32) + bf_ref[...]
    h = jnp.maximum(fused[:, :EH], 0.0)                 # relu(fc1), lane-aligned slice
    logits = fused[:, EH:]                              # (TB, gate_pad); pad cols ~ -1e30

    # ---- top-2 selection + exact softmax over the two selected logits ------
    col = jax.lax.broadcasted_iota(jnp.int32, (TB, gate_pad), 1)
    max1 = jnp.max(logits, axis=-1, keepdims=True)
    idx1 = jnp.min(jnp.where(logits == max1, col, gate_pad), axis=-1,
                   keepdims=True)
    mask1 = col == idx1
    masked = jnp.where(mask1, -jnp.inf, logits)
    max2 = jnp.max(masked, axis=-1, keepdims=True)
    idx2 = jnp.min(jnp.where(masked == max2, col, gate_pad), axis=-1,
                   keepdims=True)
    mask2 = col == idx2

    e2 = jnp.exp(max2 - max1)                           # exp(top2 - top1) <= 1
    inv = 1.0 / (1.0 + e2)                              # exact 2-way softmax
    w_top1 = inv
    w_top2 = e2 * inv
    gate = (w_top1 * mask1.astype(jnp.float32)
            + w_top2 * mask2.astype(jnp.float32))       # (TB, gate_pad), pad cols = 0
    gate_b = gate.astype(jnp.bfloat16)

    # ---- gate expansion on the MXU (block-diagonal 0/1 expand matrix) ------
    gate_wide = jnp.dot(gate_b, ex_ref[...],
                        preferred_element_type=jnp.float32)   # (TB, E*H)

    # ---- fused MXU pass #2: all expert fc2 + fc2 biases (two aligned GEMMs) -
    lhs = (h * gate_wide).astype(jnp.bfloat16)
    moe = (jnp.dot(lhs, w2a_ref[...], preferred_element_type=jnp.float32)
           + jnp.dot(gate_b, b2p_ref[...],
                     preferred_element_type=jnp.float32))      # (TB, D)

    # ---- residual + LayerNorm (eps = 1e-5, nn.LayerNorm default) -----------
    y = moe + x
    mu = jnp.mean(y, axis=-1, keepdims=True)
    var = jnp.mean((y - mu) * (y - mu), axis=-1, keepdims=True)
    normed = (y - mu) * jax.lax.rsqrt(var + 1e-5)
    out_ref[...] = normed * gamma_ref[...] + beta_ref[...]

    # ---- per-tile gate sums (lane-dense); global mean + loss in wrapper ----
    if mask_rows:
        rid = (jax.lax.broadcasted_iota(jnp.int32, (TB, 1), 0)
               + pl.program_id(0) * TB)
        gate_sum_src = gate * (rid < total_rows).astype(jnp.float32)
    else:
        gate_sum_src = gate
    gsum_ref[...] = jnp.sum(gate_sum_src, axis=0,
                            keepdims=True).reshape(1, 1, gate_pad)


def fuse_params(params, gate_pad=GATE_PAD):
    """Pack per-expert weights into lane-aligned fused matrices (done once)."""
    E, D, H = params["w1"].shape
    EH = E * H
    f32 = jnp.float32

    # fc1 of every expert + (padded) gating weight along the output dim.
    w1_flat = jnp.transpose(params["w1"], (1, 0, 2)).reshape(D, EH)     # (D, E*H)
    wg_pad = jnp.zeros((D, gate_pad), f32).at[:, :E].set(params["wg"])
    wf = jnp.concatenate([w1_flat, wg_pad], axis=1)                     # (D, E*H+128)

    b1_flat = params["b1"].reshape(1, EH)
    # padded gating columns get a very negative bias so they never win top-2.
    bg_pad = jnp.full((1, gate_pad), -1e30, f32).at[:, :E].set(
        params["bg"].reshape(1, E))
    bf = jnp.concatenate([b1_flat, bg_pad], axis=1)                     # (1, E*H+128)

    # fc2 of every expert stacked along the contraction dim.
    w2a = params["w2"].reshape(EH, D)                                   # (E*H, D)
    # fc2 biases as a padded (128, D) matrix multiplied by the padded gate.
    b2p = jnp.zeros((gate_pad, D), f32).at[:E, :].set(params["b2"].reshape(E, D))

    # block-diagonal 0/1 expand matrix: row e -> ones on lanes [e*H, (e+1)*H).
    row = jnp.arange(gate_pad)[:, None]
    lane = jnp.arange(EH)[None, :]
    expand = ((lane >= row * H) & (lane < (row + 1) * H)
              & (row < E)).astype(jnp.bfloat16)                         # (128, E*H)

    return {
        "wf": wf.astype(jnp.bfloat16),
        "bf": bf.astype(jnp.float32),
        "expand": expand,
        "w2a": w2a.astype(jnp.bfloat16),
        "b2p": b2p.astype(jnp.bfloat16),
    }


def _choose_tile(B, requested):
    """Tile rows: multiple of 128, at most `requested`, and keep >= 2 tiles
    when the batch allows it (v7x has 2 TensorCores)."""
    half = -(-((B + 1) // 2) // 128) * 128          # ceil(B/2) rounded up to 128
    return max(128, min(requested, half))


def transformer_block_with_moe(x, params, *, k=2, tile_b=512):
    # TODO(synk): only the module's default k=2 top-k gating is implemented.
    assert k == 2, "kernel implements the module default top-k with k=2"
    B, D = x.shape
    E, _, H = params["w1"].shape
    assert E >= 2, "top-2 gating needs at least two experts"
    EH = E * H
    F = EH + GATE_PAD

    tile_b = _choose_tile(B, tile_b)
    num_tiles = -(-B // tile_b)                     # ceil division
    padded_B = num_tiles * tile_b
    if padded_B != B:
        x_in = jnp.concatenate(
            [x, jnp.zeros((padded_B - B, D), x.dtype)], axis=0)
    else:
        x_in = x

    fp = fuse_params(params)
    kern = functools.partial(
        moe_block_kernel, num_experts=E, expert_hidden=H, gate_pad=GATE_PAD,
        total_rows=B, mask_rows=(padded_B != B))

    out, gsum = pl.pallas_call(
        kern,
        out_shape=(
            jax.ShapeDtypeStruct((padded_B, D), jnp.float32),
            jax.ShapeDtypeStruct((num_tiles, 1, GATE_PAD), jnp.float32),
        ),
        grid=(num_tiles,),
        in_specs=[
            pl.BlockSpec((tile_b, D), lambda i: (i, 0)),        # x: pipelined token tiles
            pl.BlockSpec((D, F), lambda i: (0, 0)),             # fused fc1|gating weight
            pl.BlockSpec((1, F), lambda i: (0, 0)),             # fused fc1|gating bias
            pl.BlockSpec((GATE_PAD, EH), lambda i: (0, 0)),     # gate expand matrix
            pl.BlockSpec((EH, D), lambda i: (0, 0)),            # stacked fc2 weights
            pl.BlockSpec((GATE_PAD, D), lambda i: (0, 0)),      # padded fc2 biases
            pl.BlockSpec((1, D), lambda i: (0, 0)),             # LayerNorm gamma
            pl.BlockSpec((1, D), lambda i: (0, 0)),             # LayerNorm beta
        ],
        out_specs=(
            pl.BlockSpec((tile_b, D), lambda i: (i, 0)),        # lane-dense output tile
            pl.BlockSpec((1, 1, GATE_PAD), lambda i: (i, 0, 0)),  # lane-dense gate sums
        ),
        compiler_params=pltpu.CompilerParams(
            dimension_semantics=("parallel",),                  # token tiles independent
            vmem_limit_bytes=32 * 1024 * 1024,
        ),
    )(x_in, fp["wf"], fp["bf"], fp["expand"], fp["w2a"], fp["b2p"],
      params["gamma"], params["beta"])

    out = out[:B]
    # Tiny final reduction for the load-balancing loss (kept outside the kernel
    # so the token grid axis stays fully "parallel").
    d_i = jnp.sum(gsum[:, 0, :E], axis=0) / B
    loss = jnp.sum(d_i * jnp.log(d_i + 1e-8))
    return out, loss


def reference_forward(x, params, *, k=2):
    """Pure-JAX mirror of the PyTorch module. Matmul operands cast to bf16 to
    match the kernel's mixed precision (everything else stays f32)."""
    f32 = jnp.float32
    bf = lambda a: a.astype(jnp.bfloat16).astype(f32)
    xb = bf(x)

    logits = xb @ bf(params["wg"]) + params["bg"]
    topv, topi = jax.lax.top_k(logits, k)
    gw = jax.nn.softmax(topv, axis=-1)
    gate = jnp.zeros_like(logits).at[jnp.arange(x.shape[0])[:, None], topi].set(gw)

    E = params["w1"].shape[0]
    outs = []
    for e in range(E):
        h = jax.nn.relu(xb @ bf(params["w1"][e]) + params["b1"][e])
        outs.append(bf(h) @ bf(params["w2"][e]) + params["b2"][e])
    expert_outs = jnp.stack(outs, axis=1)                  # (B, E, D)
    moe = jnp.sum(gate[:, :, None] * expert_outs, axis=1)

    y = moe + x
    mu = jnp.mean(y, axis=-1, keepdims=True)
    var = jnp.mean((y - mu) ** 2, axis=-1, keepdims=True)
    out = (y - mu) / jnp.sqrt(var + 1e-5) * params["gamma"] + params["beta"]

    d_i = jnp.mean(gate, axis=0)
    loss = jnp.sum(d_i * jnp.log(d_i + 1e-8))
    return out, loss


if __name__ == "__main__":
    # input_dim = output_dim = 128 (lane-dense), hidden_dim = 64, 4 experts, top-2.
    B, D, H, E, K = 256, 128, 64, 4, 2

    key = jax.random.PRNGKey(0)
    keys = jax.random.split(key, 7)
    scale = 0.1
    params = {
        "wg":    scale * jax.random.normal(keys[0], (D, E), jnp.float32),
        "bg":    scale * jax.random.normal(keys[1], (1, E), jnp.float32),
        "w1":    scale * jax.random.normal(keys[2], (E, D, H), jnp.float32),
        "b1":    scale * jax.random.normal(keys[3], (E, 1, H), jnp.float32),
        "w2":    scale * jax.random.normal(keys[4], (E, H, D), jnp.float32),
        "b2":    scale * jax.random.normal(keys[5], (E, 1, D), jnp.float32),
        "gamma": jnp.ones((1, D), jnp.float32),
        "beta":  jnp.zeros((1, D), jnp.float32),
    }
    x = jax.random.normal(keys[6], (B, D), jnp.float32)

    out, loss = transformer_block_with_moe(x, params, k=K)
    out = jax.block_until_ready(out)
    loss = jax.block_until_ready(loss)

    ref_out, ref_loss = reference_forward(x, params, k=K)
    err = float(jnp.max(jnp.abs(out - ref_out)))
    assert out.shape == (B, D)
    assert jnp.allclose(out, ref_out, atol=2e-2, rtol=2e-2), \
        f"output mismatch (max abs err {err})"
    assert jnp.allclose(loss, ref_loss, atol=1e-2, rtol=1e-2), \
        f"loss mismatch ({float(loss)} vs {float(ref_loss)})"
    print("KERNEL_OK")
</pallas_src>

<mosaic_0001>
module attributes {stable_mosaic.version = 11 : i64} {
  func.func @moe_block_kernel(%arg0: i32, %arg1: memref<128x128xf32, #tpu.memory_space<vmem>>, %arg2: memref<128x384xbf16, #tpu.memory_space<vmem>>, %arg3: memref<1x384xf32, #tpu.memory_space<vmem>>, %arg4: memref<128x256xbf16, #tpu.memory_space<vmem>>, %arg5: memref<256x128xbf16, #tpu.memory_space<vmem>>, %arg6: memref<128x128xbf16, #tpu.memory_space<vmem>>, %arg7: memref<1x128xf32, #tpu.memory_space<vmem>>, %arg8: memref<1x128xf32, #tpu.memory_space<vmem>>, %arg9: memref<128x128xf32, #tpu.memory_space<vmem>>, %arg10: memref<1x1x128xf32, #tpu.memory_space<vmem>>) attributes {dimension_semantics = [#tpu.dimension_semantics<parallel>], iteration_bounds = array<i64: 2>, scalar_prefetch = 0 : i64, scratch_operands = 0 : i64, tpu.core_type = #tpu.core_type<tc>, window_params = [{transform_indices = @transform_0, window_bounds = array<i64: 128, 128>}, {pipeline_mode = #tpu.pipeline_mode<synchronous>, transform_indices = @transform_1, window_bounds = array<i64: 128, 384>}, {pipeline_mode = #tpu.pipeline_mode<synchronous>, transform_indices = @transform_2, window_bounds = array<i64: 1, 384>}, {pipeline_mode = #tpu.pipeline_mode<synchronous>, transform_indices = @transform_3, window_bounds = array<i64: 128, 256>}, {pipeline_mode = #tpu.pipeline_mode<synchronous>, transform_indices = @transform_4, window_bounds = array<i64: 256, 128>}, {pipeline_mode = #tpu.pipeline_mode<synchronous>, transform_indices = @transform_5, window_bounds = array<i64: 128, 128>}, {pipeline_mode = #tpu.pipeline_mode<synchronous>, transform_indices = @transform_6, window_bounds = array<i64: 1, 128>}, {pipeline_mode = #tpu.pipeline_mode<synchronous>, transform_indices = @transform_7, window_bounds = array<i64: 1, 128>}, {transform_indices = @transform_8, window_bounds = array<i64: 128, 128>}, {transform_indices = @transform_9, window_bounds = array<i64: 1, 1, 128>}]} {
    %c0 = arith.constant 0 : index
    %c0_0 = arith.constant 0 : index
    %0 = vector.load %arg1[%c0, %c0_0] : memref<128x128xf32, #tpu.memory_space<vmem>>, vector<128x128xf32>
    %1 = arith.truncf %0 : vector<128x128xf32> to vector<128x128xbf16>
    %c0_1 = arith.constant 0 : index
    %c0_2 = arith.constant 0 : index
    %2 = vector.load %arg2[%c0_1, %c0_2] : memref<128x384xbf16, #tpu.memory_space<vmem>>, vector<128x384xbf16>
    %cst = arith.constant dense<0.000000e+00> : vector<128x384xf32>
    %3 = tpu.matmul %1, %2, %cst {dimension_numbers = #tpu.dot_dimension_numbers<[1], [0], [0], [1], [0, 0, 1, 1], [], []>} : vector<128x128xbf16>, vector<128x384xbf16>, vector<128x384xf32> -> vector<128x384xf32>
    %c0_3 = arith.constant 0 : index
    %c0_4 = arith.constant 0 : index
    %4 = vector.load %arg3[%c0_3, %c0_4] : memref<1x384xf32, #tpu.memory_space<vmem>>, vector<1x384xf32>
    %5 = vector.broadcast %4 : vector<1x384xf32> to vector<128x384xf32>
    %6 = arith.addf %3, %5 : vector<128x384xf32>
    %7 = vector.extract_strided_slice %6 {offsets = [0, 0], sizes = [128, 256], strides = [1, 1]} : vector<128x384xf32> to vector<128x256xf32>
    %cst_5 = arith.constant 0.000000e+00 : f32
    %8 = vector.broadcast %cst_5 : f32 to vector<128x256xf32>
    %9 = arith.maximumf %7, %8 : vector<128x256xf32>
    %10 = vector.extract_strided_slice %6 {offsets = [0, 256], sizes = [128, 128], strides = [1, 1]} : vector<128x384xf32> to vector<128x128xf32>
    %11 = tpu.iota {dimensions = array<i32: 1>} : vector<128x128xi32>
    %cst_6 = arith.constant dense<0xFF800000> : vector<128xf32>
    %12 = vector.multi_reduction <maximumf>, %10, %cst_6 [1] : vector<128x128xf32> to vector<128xf32>
    %13 = vector.shape_cast %12 : vector<128xf32> to vector<128x1xf32>
    %14 = vector.broadcast %13 : vector<128x1xf32> to vector<128x128xf32>
    %15 = arith.cmpf oeq, %10, %14 : vector<128x128xf32>
    %c128_i32 = arith.constant 128 : i32
    %16 = vector.broadcast %c128_i32 : i32 to vector<128x128xi32>
    %17 = arith.select %15, %11, %16 : vector<128x128xi1>, vector<128x128xi32>
    %cst_7 = arith.constant dense<2147483647> : vector<128xi32>
    %18 = vector.multi_reduction <minsi>, %17, %cst_7 [1] : vector<128x128xi32> to vector<128xi32>
    %19 = vector.shape_cast %18 : vector<128xi32> to vector<128x1xi32>
    %20 = vector.broadcast %19 : vector<128x1xi32> to vector<128x128xi32>
    %21 = arith.cmpi eq, %11, %20 : vector<128x128xi32>
    %cst_8 = arith.constant 0xFF800000 : f32
    %22 = vector.broadcast %cst_8 : f32 to vector<128x128xf32>
    %23 = arith.select %21, %22, %10 : vector<128x128xi1>, vector<128x128xf32>
    %cst_9 = arith.constant dense<0xFF800000> : vector<128xf32>
    %24 = vector.multi_reduction <maximumf>, %23, %cst_9 [1] : vector<128x128xf32> to vector<128xf32>
    %25 = vector.shape_cast %24 : vector<128xf32> to vector<128x1xf32>
    %26 = vector.broadcast %25 : vector<128x1xf32> to vector<128x128xf32>
    %27 = arith.cmpf oeq, %23, %26 : vector<128x128xf32>
    %c128_i32_10 = arith.constant 128 : i32
    %28 = vector.broadcast %c128_i32_10 : i32 to vector<128x128xi32>
    %29 = arith.select %27, %11, %28 : vector<128x128xi1>, vector<128x128xi32>
    %cst_11 = arith.constant dense<2147483647> : vector<128xi32>
    %30 = vector.multi_reduction <minsi>, %29, %cst_11 [1] : vector<128x128xi32> to vector<128xi32>
    %31 = vector.shape_cast %30 : vector<128xi32> to vector<128x1xi32>
    %32 = vector.broadcast %31 : vector<128x1xi32> to vector<128x128xi32>
    %33 = arith.cmpi eq, %11, %32 : vector<128x128xi32>
    %34 = arith.subf %25, %13 : vector<128x1xf32>
    %35 = math.exp %34 : vector<128x1xf32>
    %cst_12 = arith.constant 1.000000e+00 : f32
    %36 = vector.broadcast %cst_12 : f32 to vector<128x1xf32>
    %37 = arith.addf %36, %35 : vector<128x1xf32>
    %cst_13 = arith.constant 1.000000e+00 : f32
    %38 = vector.broadcast %cst_13 : f32 to vector<128x1xf32>
    %39 = arith.divf %38, %37 : vector<128x1xf32>
    %40 = arith.mulf %35, %39 : vector<128x1xf32>
    %41 = arith.extui %21 : vector<128x128xi1> to vector<128x128xi32>
    %42 = arith.sitofp %41 : vector<128x128xi32> to vector<128x128xf32>
    %43 = vector.broadcast %39 : vector<128x1xf32> to vector<128x128xf32>
    %44 = arith.mulf %43, %42 : vector<128x128xf32>
    %45 = arith.extui %33 : vector<128x128xi1> to vector<128x128xi32>
    %46 = arith.sitofp %45 : vector<128x128xi32> to vector<128x128xf32>
    %47 = vector.broadcast %40 : vector<128x1xf32> to vector<128x128xf32>
    %48 = arith.mulf %47, %46 : vector<128x128xf32>
    %49 = arith.addf %44, %48 : vector<128x128xf32>
    %50 = arith.truncf %49 : vector<128x128xf32> to vector<128x128xbf16>
    %c0_14 = arith.constant 0 : index
    %c0_15 = arith.constant 0 : index
    %51 = vector.load %arg4[%c0_14, %c0_15] : memref<128x256xbf16, #tpu.memory_space<vmem>>, vector<128x256xbf16>
    %cst_16 = arith.constant dense<0.000000e+00> : vector<128x256xf32>
    %52 = tpu.matmul %50, %51, %cst_16 {dimension_numbers = #tpu.dot_dimension_numbers<[1], [0], [0], [1], [0, 0, 1, 1], [], []>} : vector<128x128xbf16>, vector<128x256xbf16>, vector<128x256xf32> -> vector<128x256xf32>
    %53 = arith.mulf %9, %52 : vector<128x256xf32>
    %54 = arith.truncf %53 : vector<128x256xf32> to vector<128x256xbf16>
    %c0_17 = arith.constant 0 : index
    %c0_18 = arith.constant 0 : index
    %55 = vector.load %arg5[%c0_17, %c0_18] : memref<256x128xbf16, #tpu.memory_space<vmem>>, vector<256x128xbf16>
    %cst_19 = arith.constant dense<0.000000e+00> : vector<128x128xf32>
    %56 = tpu.matmul %54, %55, %cst_19 {dimension_numbers = #tpu.dot_dimension_numbers<[1], [0], [0], [1], [0, 0, 1, 1], [], []>} : vector<128x256xbf16>, vector<256x128xbf16>, vector<128x128xf32> -> vector<128x128xf32>
    %c0_20 = arith.constant 0 : index
    %c0_21 = arith.constant 0 : index
    %57 = vector.load %arg6[%c0_20, %c0_21] : memref<128x128xbf16, #tpu.memory_space<vmem>>, vector<128x128xbf16>
    %cst_22 = arith.constant dense<0.000000e+00> : vector<128x128xf32>
    %58 = tpu.matmul %50, %57, %cst_22 {dimension_numbers = #tpu.dot_dimension_numbers<[1], [0], [0], [1], [0, 0, 1, 1], [], []>} : vector<128x128xbf16>, vector<128x128xbf16>, vector<128x128xf32> -> vector<128x128xf32>
    %59 = arith.addf %56, %58 : vector<128x128xf32>
    %60 = arith.addf %59, %0 : vector<128x128xf32>
    %cst_23 = arith.constant dense<0.000000e+00> : vector<128xf32>
    %61 = vector.multi_reduction <add>, %60, %cst_23 [1] : vector<128x128xf32> to vector<128xf32>
    %62 = vector.shape_cast %61 : vector<128xf32> to vector<128x1xf32>
    %cst_24 = arith.constant 1.280000e+02 : f32
    %63 = vector.broadcast %cst_24 : f32 to vector<128x1xf32>
    %64 = arith.divf %62, %63 : vector<128x1xf32>
    %65 = vector.broadcast %64 : vector<128x1xf32> to vector<128x128xf32>
    %66 = arith.subf %60, %65 : vector<128x128xf32>
    %67 = vector.broadcast %64 : vector<128x1xf32> to vector<128x128xf32>
    %68 = arith.subf %60, %67 : vector<128x128xf32>
    %69 = arith.mulf %66, %68 : vector<128x128xf32>
    %cst_25 = arith.constant dense<0.000000e+00> : vector<128xf32>
    %70 = vector.multi_reduction <add>, %69, %cst_25 [1] : vector<128x128xf32> to vector<128xf32>
    %71 = vector.shape_cast %70 : vector<128xf32> to vector<128x1xf32>
    %cst_26 = arith.constant 1.280000e+02 : f32
    %72 = vector.broadcast %cst_26 : f32 to vector<128x1xf32>
    %73 = arith.divf %71, %72 : vector<128x1xf32>
    %74 = vector.broadcast %64 : vector<128x1xf32> to vector<128x128xf32>
    %75 = arith.subf %60, %74 : vector<128x128xf32>
    %cst_27 = arith.constant 9.99999974E-6 : f32
    %76 = vector.broadcast %cst_27 : f32 to vector<128x1xf32>
    %77 = arith.addf %73, %76 : vector<128x1xf32>
    %78 = math.rsqrt %77 : vector<128x1xf32>
    %79 = vector.broadcast %78 : vector<128x1xf32> to vector<128x128xf32>
    %80 = arith.mulf %75, %79 : vector<128x128xf32>
    %c0_28 = arith.constant 0 : index
    %c0_29 = arith.constant 0 : index
    %81 = vector.load %arg7[%c0_28, %c0_29] : memref<1x128xf32, #tpu.memory_space<vmem>>, vector<1x128xf32>
    %82 = vector.broadcast %81 : vector<1x128xf32> to vector<128x128xf32>
    %83 = arith.mulf %80, %82 : vector<128x128xf32>
    %c0_30 = arith.constant 0 : index
    %c0_31 = arith.constant 0 : index
    %84 = vector.load %arg8[%c0_30, %c0_31] : memref<1x128xf32, #tpu.memory_space<vmem>>, vector<1x128xf32>
    %85 = vector.broadcast %84 : vector<1x128xf32> to vector<128x128xf32>
    %86 = arith.addf %83, %85 : vector<128x128xf32>
    %c0_32 = arith.constant 0 : index
    %c0_33 = arith.constant 0 : index
    %87 = vector.load %arg9[%c0_32, %c0_33] : memref<128x128xf32, #tpu.memory_space<vmem>>, vector<128x128xf32>
    tpu.vector_store %arg9[%c0_32, %c0_33], %86 {strides = array<i32>} : memref<128x128xf32, #tpu.memory_space<vmem>>, vector<128x128xf32>,
    %cst_34 = arith.constant dense<0.000000e+00> : vector<128xf32>
    %88 = vector.multi_reduction <add>, %49, %cst_34 [0] : vector<128x128xf32> to vector<128xf32>
    %89 = vector.shape_cast %88 : vector<128xf32> to vector<1x128xf32>
    %90 = vector.shape_cast %89 : vector<1x128xf32> to vector<1x1x128xf32>
    %c0_35 = arith.constant 0 : index
    %c0_36 = arith.constant 0 : index
    %c0_37 = arith.constant 0 : index
    %91 = vector.load %arg10[%c0_35, %c0_36, %c0_37] : memref<1x1x128xf32, #tpu.memory_space<vmem>>, vector<1x1x128xf32>
    tpu.vector_store %arg10[%c0_35, %c0_36, %c0_37], %90 {strides = array<i32>} : memref<1x1x128xf32, #tpu.memory_space<vmem>>, vector<1x1x128xf32>,
    return
  }
  func.func @transform_0(%arg0: i32) -> (i32, i32) {
    %c0_i32 = arith.constant 0 : i32
    %c0_i32_0 = arith.constant 0 : i32
    return %arg0, %c0_i32 : i32, i32
  }
  func.func @transform_1(%arg0: i32) -> (i32, i32) {
    %c0_i32 = arith.constant 0 : i32
    %c0_i32_0 = arith.constant 0 : i32
    %c0_i32_1 = arith.constant 0 : i32
    return %c0_i32, %c0_i32_0 : i32, i32
  }
  func.func @transform_2(%arg0: i32) -> (i32, i32) {
    %c0_i32 = arith.constant 0 : i32
    %c0_i32_0 = arith.constant 0 : i32
    %c0_i32_1 = arith.constant 0 : i32
    return %c0_i32, %c0_i32_0 : i32, i32
  }
  func.func @transform_3(%arg0: i32) -> (i32, i32) {
    %c0_i32 = arith.constant 0 : i32
    %c0_i32_0 = arith.constant 0 : i32
    %c0_i32_1 = arith.constant 0 : i32
    return %c0_i32, %c0_i32_0 : i32, i32
  }
  func.func @transform_4(%arg0: i32) -> (i32, i32) {
    %c0_i32 = arith.constant 0 : i32
    %c0_i32_0 = arith.constant 0 : i32
    %c0_i32_1 = arith.constant 0 : i32
    return %c0_i32, %c0_i32_0 : i32, i32
  }
  func.func @transform_5(%arg0: i32) -> (i32, i32) {
    %c0_i32 = arith.constant 0 : i32
    %c0_i32_0 = arith.constant 0 : i32
    %c0_i32_1 = arith.constant 0 : i32
    return %c0_i32, %c0_i32_0 : i32, i32
  }
  func.func @transform_6(%arg0: i32) -> (i32, i32) {
    %c0_i32 = arith.constant 0 : i32
    %c0_i32_0 = arith.constant 0 : i32
    %c0_i32_1 = arith.constant 0 : i32
    return %c0_i32, %c0_i32_0 : i32, i32
  }
  func.func @transform_7(%arg0: i32) -> (i32, i32) {
    %c0_i32 = arith.constant 0 : i32
    %c0_i32_0 = arith.constant 0 : i32
    %c0_i32_1 = arith.constant 0 : i32
    return %c0_i32, %c0_i32_0 : i32, i32
  }
  func.func @transform_8(%arg0: i32) -> (i32, i32) {
    %c0_i32 = arith.constant 0 : i32
    %c0_i32_0 = arith.constant 0 : i32
    return %arg0, %c0_i32 : i32, i32
  }
  func.func @transform_9(%arg0: i32) -> (i32, i32, i32) {
    %c0_i32 = arith.constant 0 : i32
    %c0_i32_0 = arith.constant 0 : i32
    %c0_i32_1 = arith.constant 0 : i32
    return %arg0, %c0_i32, %c0_i32_0 : i32, i32, i32
  }
}

</mosaic_0001>

<bundles_post_ra>
// kernel: tpu_custom_call.1
= control target key start
LH: loop header
LB: loop body
LE: loop exit
PB: predicated region body
PF: predicated region fallthrough
CT: control target
= control target key end

     0   :  { %s5849_s0 = inlined_call_operand.hbm [shape: f32[256,128], index: 0, kind: input, shape index: {}]   ;;  %s5850_s1 = inlined_call_operand.hbm [shape: bf16[128,384], index: 1, kind: input, shape index: {}]   ;;  %s5851_s2 = inlined_call_operand.hbm [shape: f32[1,384], index: 2, kind: input, shape index: {}]   ;;  %s5852_s3 = inlined_call_operand.hbm [shape: bf16[128,256], index: 3, kind: input, shape index: {}]   ;;  %s5853_s4 = inlined_call_operand.hbm [shape: bf16[256,128], index: 4, kind: input, shape index: {}]   ;;  %s5854_s5 = inlined_call_operand.hbm [shape: bf16[128,128], index: 5, kind: input, shape index: {}]   ;;  %s5855_s6 = inlined_call_operand.vmem [shape: f32[1,128], index: 6, kind: input, shape index: {}]   ;;  %s5856_s7 = inlined_call_operand.vmem [shape: f32[1,128], index: 7, kind: input, shape index: {}]   ;;  %s5857_s8 = inlined_call_operand.hbm [shape: f32[256,128], index: 8, kind: output, shape index: {0}]   ;;  %s5858_s9 = inlined_call_operand.hbm [shape: f32[2,1,128], index: 9, kind: output, shape index: {1}]  }
   0x1   :  { %5899 = sst [smem:[#allocation52_spill]] %s5850_s1 }
   0x2   :  { %5900 = sst [smem:[#allocation53_spill]] %s5851_s2 }
   0x3   :  { %5901 = sst [smem:[#allocation54_spill]] %s5852_s3 }
   0x4   :  { %15 = vsyncpa [#allocation3], 0 }
   0x5   :  { %17 = vsyncpa [#allocation3 + $0x1], 0 }
   0x6   :  { %18 = vsyncpa [#allocation6], 0 }
   0x7   :  { %19 = vsyncpa [#allocation9], 0 }
   0x8   :  { %20 = vsyncpa [#allocation12], 0 }
   0x9   :  { %21 = vsyncpa [#allocation4], 0 }
   0xa   :  { %23 = vsyncpa [#allocation4 + $0x1], 0 }
   0xb   :  { %24 = vsyncpa [#allocation15], 0 }
   0xc   :  { %26 = vsyncpa [#allocation15 + $0x1], 0  ;;  %s4031_s30 = smov 0   ;;  %s4033_s10 = smov 0  }
   0xd   :  { %s4035_s11 = smov 0   ;;  %s4037_s12 = smov 0  }
   0xe LB: > { %s5902_s1 = sld [smem:[#allocation52_spill]]  ;;  %s4055_s16 = sadd.s32 4294967295, %s3964_s12   ;;  %s3964_s12 = sphi %s4037_s12, %s6000_s12   ;;  %s3960_s11 = sphi %s4035_s11, %s5999_s11   ;;  %s3956_s10 = sphi %s4033_s10, %s5998_s10   ;;  %s3952_s30 = sphi %s4031_s30, %s5997_s30  }
   0xf   : > { %p3068_p0 = scmp.ge.s32.totalorder %s3964_s12, 1  ;;  %p53_p1 = scmp.eq.s32.totalorder %s4055_s16, 0 }
  0x10   : > { %p262_p2 = scmp.lt.s32.totalorder %s3964_s12, 3  ;;  %s3966_s18 = smov [#allocation5]  }
  0x11   : > { %s275_s19 = sshll.u32 %s3966_s18, 4  ;;  %s5904_s3 = sld [smem:[#allocation54_spill]]  ;;  %s276_s19 = int_to_ptr.vmem [resolvable:$true] %s275_s19 }
  0x12   : > { %p4060_p3 = pnand %p3068_p0, %p262_p2  ;;  %s3967_s24 = smov [#allocation8]  }
  0x13   : > { %s301_s25 = sshll.u32 %s3967_s24, 4  ;;  %s3968_s26 = smov 192   ;;  %s302_s25 = int_to_ptr.vmem [resolvable:$true] %s301_s25 }
  0x14   : > { %s273_s15 = sshll.u32 %s5902_s1, 4  ;;  %p3471_p4 = pneg %p4060_p3  ;;  %s274_s15 = int_to_ptr.hbm [resolvable:$true] %s273_s15 }
  0x15   : > { %s3969_s27 = smov 12   ;;  %s5859_s28 = smov 128  }
  0x16   : > { %p4072_p6 = pnand %p3471_p4, %p53_p1  ;;  %s5860_s29 = smov 8  }
  0x17   : > { %s299_s22 = sshll.u32 %s5904_s3, 4  ;;  %s5906_s2 = sld [smem:[#allocation53_spill]]  ;;  %s300_s22 = int_to_ptr.hbm [resolvable:$true] %s299_s22 }
  0x18   : > { %3474 = dma.hbm_to_vmem [thread:$0]  (!%p4072_p6), %s274_s15, 3072, %s276_s19, [#allocation6], %s3968_s26, %s3968_s26, %s3969_s27  }
  0x19   : > { %3480 = dma.hbm_to_vmem [thread:$0]  (!%p4072_p6), %s300_s22, 2048, %s302_s25, [#allocation9], %s5859_s28, %s5859_s28, %s5860_s29  }
  0x1a   : > { %s3972_s20 = smov [#allocation7]   ;;  %s313_s19 = sshll.u32 %s5853_s4, 4  ;;  %s314_s19 = int_to_ptr.hbm [resolvable:$true] %s313_s19 }
  0x1b   : > { %s290_s21 = sshll.u32 %s3972_s20, 4  ;;  %s3973_s22 = smov [#allocation10]   ;;  %s291_s21 = int_to_ptr.vmem [resolvable:$true] %s290_s21 }
  0x1c   : > { %s315_s25 = sshll.u32 %s3973_s22, 4  ;;  %s3974_s26 = smov 64   ;;  %s316_s25 = int_to_ptr.vmem [resolvable:$true] %s315_s25 }
  0x1d   : > { %s288_s18 = sshll.u32 %s5906_s2, 4  ;;  %s3975_s27 = smov 4   ;;  %s289_s18 = int_to_ptr.hbm [resolvable:$true] %s288_s18 }
  0x1e   : > { %3477 = dma.hbm_to_vmem [thread:$0]  (!%p4072_p6), %s289_s18, 48, %s291_s21, [#allocation6]  }
  0x1f   : > { %3483 = dma.hbm_to_vmem [thread:$0]  (!%p4072_p6), %s314_s19, 2048, %s316_s25, [#allocation9], %s3974_s26, %s3974_s26, %s3975_s27  }
  0x20   : > { %s327_s18 = sshll.u32 %s5854_s5, 4  ;;  %s3976_s20 = smov [#allocation11]   ;;  %s328_s18 = int_to_ptr.hbm [resolvable:$true] %s327_s18 }
  0x21   : > { %s329_s21 = sshll.u32 %s3976_s20, 4  ;;  %s3067_s24 = sadd.s32 4294967294, %s3964_s12   ;;  %s330_s21 = int_to_ptr.vmem [resolvable:$true] %s329_s21 }
  0x22   : > { %3486 = dma.hbm_to_vmem [thread:$0]  (!%p4072_p6), %s328_s18, 1024, %s330_s21, [#allocation12], %s3974_s26, %s3974_s26, %s3975_s27  }
  0x23   : > { %s4100_s15 = sadd.s32 1, %s3964_s12   ;;  %s39_s22 = sadd.s32 1, %s3960_s11 }
  0x24   : > { %s36_s19 = ssub.s32 %s3964_s12, %s4100_s15  ;;  %p46_p7 = scmp.ne.s32.totalorder %s3960_s11, %s3956_s10 }
  0x25   : > { %p37_p8 = scmp.eq.s32.totalorder %s36_s19, 0  ;;  %p47_p9 = scmp.eq.s32.totalorder %s3964_s12, 0 }
  0x26   : > { %p52_p10 = scmp.ne.s32.totalorder %s3956_s10, %s3952_s30  ;;  %p223_p11 = scmp.eq.s32.totalorder %s4055_s16, 1 }
  0x27   : > { %s4112_s25 = scalar_select %p37_p8, %s3960_s11, %s39_s22  }
  0x28   : > { %p4116_p12 = por %p53_p1, %p52_p10  ;;  %p4120_p13 = por %p223_p11, %p46_p7 }
  0x29   : > { %p229_p0 = scmp.eq.s32.totalorder %s3067_s24, 1  ;;  %p48_p2 = por %p47_p9, %p46_p7 }
  0x2a   : > { %s349_s27 = sand.u32 1, %s3960_s11   ;;  %p3503_p6 = scmp.lt.s32.totalorder %s3964_s12, 2 }
  0x2b   : > { %p4125_p4 = por %p229_p0, %p52_p10  ;;  %s3075_s14 = sshll.u32 %s349_s27, 7 }
  0x2c   : > { %s3379_s18 = sshll.u32 %s3964_s12, 7  ;;  %s353_s28 = scalar_lea.vmem [#allocation2], %s3075_s14 }
  0x2d   : > { %s358_s22 = scalar_lea.hbm %s5849_s0, %s3379_s18  ;;  %s361_s29 = sshll.u32 %s353_s28, 4  ;;  %s362_s29 = int_to_ptr.vmem [resolvable:$true] %s361_s29 }
  0x2e   : > { %s359_s19 = sshll.u32 %s358_s22, 4  ;;  %p4134_p8 = pnand %p3503_p6, %p48_p2  ;;  %s360_s19 = int_to_ptr.hbm [resolvable:$true] %s359_s19 }
  0x2f   : > { %s350_s1 = scalar_lea.sflag [#allocation3], %s349_s27  ;;  %s3824_s2 = sshra.s32 %s360_s19, 4  ;;  %s3825_s2 = int_to_ptr.hbm [resolvable:$true] %s3824_s2 }
  0x30   : > { %s3826_s3 = scalar_lea.hbm %s3825_s2, 128  ;;  %p3828_p9 = pneg %p4134_p8 }
  0x31   : > { %p3827_p7 = scmp.ne.s32.totalorder %s3825_s2, %s3826_s3  ;;  %s3831_s28 = scalar_lea.hbm %s5849_s0, 256 }
  0x32   : > { %p3832_p0 = scmp.lt.s32.totalorder %s3825_s2, %s5849_s0  ;;  %p3833_p2 = scmp.lt.s32.totalorder %s3831_s28, %s3826_s3 }
  0x33   : > { %p3829_p10 = pnand %p3828_p9, %p3827_p7 }
  0x34   : > { %p3834_p6 = por %p3833_p2, %p3832_p0 }
  0x35   : > { %p3830_p11 = pneg %p3829_p10 }
  0x37   : > { %p3835_p5 = pnand %p3834_p6, %p3830_p11 }
  0x39   : > { %3838 = shalt.err (!%p3835_p5)
}
  0x3a   : > { %s5911_s27 = smov 8   ;;  %s5912_s22 = smov 128  }
  0x3b   : > { %3490 = dma.hbm_to_vmem [thread:$0]  (!%p4134_p8), %s360_s19, 2048, %s362_s29, %s350_s1, %s5912_s22, %s5912_s22, %s5911_s27  }
  0x3c   : > { %373 = sbr.rel (%p4060_p3) target bundleno = 1810 (0x712), region = 52 }
  0x41   : > { %s4154_s18 = sand.u32 1, %s3956_s10  }
  0x42   : > { %s3079_s2 = sshll.u32 %s4154_s18, 7  ;;  %s376_s3 = scalar_lea.sflag [#allocation3], %s4154_s18 }
  0x43   : > { %s4160_s20 = scalar_lea.vmem [#allocation2], %s3079_s2 }
  0x44   : > { %3927 = dma.done.wait (%p4116_p12), %s376_s3, 2048  }
  0x45   : > { %3929 = vsyncadd (%p4116_p12), %s376_s3, 4294965248 }
  0x46   : > { %3931 = dma.done.wait (%p53_p1), [#allocation6], 3120  }
  0x47   : > { %3933 = vsyncadd (%p53_p1), [#allocation6], 4294964176 }
  0x48   : > { %3935 = dma.done.wait (%p53_p1), [#allocation9], 4096  }
  0x49   : > { %3937 = vsyncadd (%p53_p1), [#allocation9], 4294963200 }
  0x4a   : > { %3939 = dma.done.wait (%p53_p1), [#allocation12], 1024  }
  0x4b   : > { %3941 = vsyncadd (%p53_p1), [#allocation12], 4294966272  ;;  %v3180_v0 = vld [vmem:[#allocation5 + $0xb0] sm:$0xf]  ;;  %v3403_v1 = vld [vmem:[#allocation5 + $0xb8] sm:$0xf0]  ;;  %s2916_s21 = scalar_lea.hbm %s5858_s9, %s4055_s16 }
  0x4c   : > { %v3168_v2 = vld [vmem:[#allocation5 + $0x98] sm:$0xf]  ;;  %v3181_v3 = vor.u32 %v3403_v1, %v3180_v0  ;;  %v3400_v4 = vld [vmem:[#allocation5 + $0xa0] sm:$0xf0]  ;;  %v3156_v6 = vld [vmem:[#allocation5 + $0x80] sm:$0xf]  ;;  %v817_v0 = vlaneseq }
  0x4d   : > { %v3169_v5 = vor.u32 %v3400_v4, %v3168_v2  ;;  %v3397_v7 = vld [vmem:[#allocation5 + $0x88] sm:$0xf0]  ;;  %v3144_v9 = vld [vmem:[#allocation5 + $0x68] sm:$0xf]  ;;  %v3394_v10 = vld [vmem:[#allocation5 + $0x70] sm:$0xf0] }
  0x4e   : > { %736 = vmatpush.bf16.msra.mxu2 %v3181_v3  ;;  %v3157_v8 = vor.u32 %v3397_v7, %v3156_v6  ;;  %v3145_v11 = vor.u32 %v3394_v10, %v3144_v9  ;;  %v3132_v12 = vld [vmem:[#allocation5 + $0x50] sm:$0xf]  ;;  %v3391_v13 = vld [vmem:[#allocation5 + $0x58] sm:$0xf0]  ;;  %v3120_v15 = vld [vmem:[#allocation5 + $0x38] sm:$0xf] }
  0x4f   : > { %v3133_v14 = vor.u32 %v3391_v13, %v3132_v12  ;;  %v3388_v16 = vld [vmem:[#allocation5 + $0x40] sm:$0xf0]  ;;  %v3108_v18 = vld [vmem:[#allocation5 + $0x20] sm:$0xf]  ;;  %v3385_v19 = vld [vmem:[#allocation5 + $0x28] sm:$0xf0] }
  0x50   : > { %v3121_v17 = vor.u32 %v3388_v16, %v3120_v15  ;;  %v3109_v20 = vor.u32 %v3385_v19, %v3108_v18  ;;  %v3096_v21 = vld [vmem:[#allocation5 + $0x8] sm:$0xf]  ;;  %v3382_v22 = vld [vmem:[#allocation5 + $0x10] sm:$0xf0]  ;;  %v446_v24 = vld [vmem:[%s4160_s20] sm:$0xff]  ;;  %v4248_v1 = vand.u32 127, %v817_v0 }
  0x51   : > { %v3097_v23 = vor.u32 %v3382_v22, %v3096_v21  ;;  %v447_v25 = vld [vmem:[%s4160_s20 + $0x8] sm:$0xff]  ;;  %v448_v27 = vld [vmem:[%s4160_s20 + $0x10] sm:$0xff]  ;;  %v449_v28 = vld [vmem:[%s4160_s20 + $0x18] sm:$0xff]  ;;  %s443_s1 = scalar_lea.vmem [#allocation14], %s4154_s18  ;;  %s5706_s24 = scalar_lea.vmem [#allocation13], %s3079_s2 }
  0x52   : > { %737 = vmatpush.bf16.msra.mxu2 %v3169_v5  ;;  %v4180_v26 = vpack.c.bf16 %v447_v25, %v446_v24  ;;  %v4185_v29 = vpack.c.bf16 %v449_v28, %v448_v27  ;;  %v450_v30 = vld [vmem:[%s4160_s20 + $0x20] sm:$0xff]  ;;  %v451_v31 = vld [vmem:[%s4160_s20 + $0x28] sm:$0xff]  ;;  %v452_v33 = vld [vmem:[%s4160_s20 + $0x30] sm:$0xff]  ;;  %s5723_s27 = sshll.u32 %s443_s1, 4  ;;  %s2920_s22 = sshll.u32 %s2916_s21, 4  ;;  %s2919_s27 = int_to_ptr.vmem [resolvable:$true] %s5723_s27  ;;  %s2921_s22 = int_to_ptr.hbm [resolvable:$true] %s2920_s22 }
  0x53   : > { %v4190_v32 = vpack.c.bf16 %v451_v31, %v450_v30  ;;  %v453_v34 = vld [vmem:[%s4160_s20 + $0x38] sm:$0xff]  ;;  %v454_v36 = vld [vmem:[%s4160_s20 + $0x40] sm:$0xff]  ;;  %v455_v37 = vld [vmem:[%s4160_s20 + $0x48] sm:$0xff]  ;;  %s2891_s2 = scalar_lea.sflag [#allocation15], %s4154_s18  ;;  %s3868_s3 = sshra.s32 %s2921_s22, 4  ;;  %s3869_s3 = int_to_ptr.hbm [resolvable:$true] %s3868_s3 }
  0x54   : > { %v4195_v35 = vpack.c.bf16 %v453_v34, %v452_v33  ;;  %v4200_v38 = vpack.c.bf16 %v455_v37, %v454_v36  ;;  %v456_v39 = vld [vmem:[%s4160_s20 + $0x50] sm:$0xff]  ;;  %v457_v40 = vld [vmem:[%s4160_s20 + $0x58] sm:$0xff]  ;;  %v502_v42 = vld [vmem:[#allocation7] sm:$0x7]  ;;  %s3874_s29 = scalar_lea.hbm %s5858_s9, 2  ;;  %p3875_p12 = scmp.lt.s32.totalorder %s3869_s3, %s5858_s9 }
  0x55   : > { %v4205_v41 = vpack.c.bf16 %v457_v40, %v456_v39  ;;  %v4208_v43 = vperm.slane %v502_v42, 2  ;;  %v458_v46 = vld [vmem:[%s4160_s20 + $0x60] sm:$0xff]  ;;  %v459_v47 = vld [vmem:[%s4160_s20 + $0x68] sm:$0xff]  ;;  %v460_v61 = vld [vmem:[%s4160_s20 + $0x70] sm:$0xff] }
  0x56   : > { %738 = vmatpush.bf16.msra.mxu2 %v3157_v8  ;;  %5913 = vst [vmem:[#allocation22_spill] sm:$0xff] %v4200_v38  ;;  %v4216_v48 = vpack.c.bf16 %v459_v47, %v458_v46  ;;  %v461_v62 = vld [vmem:[%s4160_s20 + $0x78] sm:$0xff] }
  0x57   : > { %5914 = vst [vmem:[#allocation23_spill] sm:$0xff] %v4205_v41  ;;  %v4245_v63 = vpack.c.bf16 %v461_v62, %v460_v61 }
  0x58   : > { %5915 = vst [vmem:[#allocation24_spill] sm:$0xff] %v4216_v48 }
  0x59   : > { %5916 = vst [vmem:[#allocation25_spill] sm:$0xff] %v4245_v63 }
  0x5a   : > { %739 = vmatpush.bf16.msra.mxu2 %v3145_v11 }
  0x5e   : > { %740 = vmatpush.bf16.msra.mxu2 %v3133_v14 }
  0x62   : > { %741 = vmatpush.bf16.msra.mxu2 %v3121_v17 }
  0x66   : > { %742 = vmatpush.bf16.msra.mxu2 %v3109_v20 }
  0x6a   : > { %743 = vmatpush.bf16.msra.mxu2 %v3097_v23 }
  0x6d   : > { %744 = vmatmul.bf16.vlgmr.msra.gmra.mxu2 %v4180_v26 }
  0x7d   : > { %749 = vmatmul.bf16.gmra.mxu2 %v4185_v29 }
  0x8d   : > { %754 = vmatmul.bf16.gmra.mxu2 %v4190_v32 }
  0x9d   : > { %759 = vmatmul.bf16.gmra.mxu2 %v4195_v35 }
  0xad   : > { %764 = vmatmul.bf16.gmra.mxu2 %v4200_v38 }
  0xbd   : > { %769 = vmatmul.bf16.gmra.mxu2 %v4205_v41 }
  0xcd   : > { %774 = vmatmul.bf16.gmra.mxu2 %v4216_v48 }
  0xdd   : > { %779 = vmatmul.bf16.gmra.mxu2 %v4245_v63 }
  0xf0   : > { %v745_v44 = vpop.f32.mrf.mxu2 }
  0xf1   : > { %v4211_v45 = vadd.f32 %v745_v44, %v4208_v43 }
  0xf3   : > { %819 = vmax.xlane.f32.xlu0 %v4211_v45 }
  0xf8   : > { %v747_v49 = vpop.f32.mrf.mxu2 }
  0xf9   : > { %v4220_v50 = vadd.f32 %v747_v49, %v4208_v43 }
  0xfb   : > { %821 = vmax.xlane.f32.xlu0 %v4220_v50 }
 0x100   : > { %v750_v51 = vpop.f32.mrf.mxu2 }
 0x101   : > { %v4224_v52 = vadd.f32 %v750_v51, %v4208_v43 }
 0x103   : > { %823 = vmax.xlane.f32.xlu1 %v4224_v52 }
 0x108   : > { %v752_v53 = vpop.f32.mrf.mxu2 }
 0x109   : > { %v4228_v54 = vadd.f32 %v752_v53, %v4208_v43 }
 0x10b   : > { %825 = vmax.xlane.f32.xlu1 %v4228_v54 }
 0x110   : > { %v755_v55 = vpop.f32.mrf.mxu2 }
 0x111   : > { %v4232_v56 = vadd.f32 %v755_v55, %v4208_v43 }
 0x113   : > { %827 = vmax.xlane.f32.xlu2 %v4232_v56 }
 0x118   : > { %v757_v57 = vpop.f32.mrf.mxu2 }
 0x119   : > { %v4236_v58 = vadd.f32 %v757_v57, %v4208_v43 }
 0x11b   : > { %829 = vmax.xlane.f32.xlu2 %v4236_v58 }
 0x120   : > { %v760_v59 = vpop.f32.mrf.mxu2 }
 0x121   : > { %v4240_v60 = vadd.f32 %v760_v59, %v4208_v43 }
 0x123   : > { %831 = vmax.xlane.f32.xlu2 %v4240_v60 }
 0x128   : > { %v762_v2 = vpop.f32.mrf.mxu2 }
 0x129   : > { %v4261_v11 = vadd.f32 %v762_v2, %v4208_v43 }
 0x130   : > { %v765_v7 = vpop.f32.mrf.mxu2 }
 0x131   : > { %v4272_v16 = vadd.f32 %v765_v7, %v4208_v43 }
 0x138   : > { %v767_v14 = vpop.f32.mrf.mxu2 }
 0x139   : > { %v4287_v22 = vadd.f32 %v767_v14, %v4208_v43 }
 0x140   : > { %v770_v21 = vpop.f32.mrf.mxu2 }
 0x141   : > { %v4302_v28 = vadd.f32 %v770_v21, %v4208_v43 }
 0x148   : > { %v772_v31 = vpop.f32.mrf.mxu2 }
 0x149   : > { %v4317_v37 = vadd.f32 %v772_v31, %v4208_v43 }
 0x150   : > { %v775_v42 = vpop.f32.mrf.mxu2 }
 0x158   : > { %v777_v51 = vpop.f32.mrf.mxu2 }
 0x159   : > { %v4336_v53 = vadd.f32 %v777_v51, %v4208_v43 }
 0x166   : > { %v4250_v3 = vpop.xlane.xlu0 %819 }
 0x167   : > { %vm851_vm0 = vcmp.eq.f32.partialorder %v4211_v45, %v4250_v3 }
 0x168   : > { %v867_v4 = vsel %vm851_vm0, %v4248_v1, 128 }
 0x169   : > { %v884_v5 = vshra.s32 %v867_v4, 16  ;;  %v883_v55 = vand.u32 65535, %v867_v4 }
 0x16b   : > { %v886_v6 = vcvt.s32.f32 %v884_v5  ;;  %v885_v59 = vcvt.s32.f32 %v883_v55 }
 0x16d   : > { %887 = vmin.xlane.f32.xlu0 %v886_v6 }
 0x16e   : > { %v4255_v8 = vpop.xlane.xlu0 %821 }
 0x16f   : > { %vm852_vm1 = vcmp.eq.f32.partialorder %v4220_v50, %v4255_v8 }
 0x170   : > { %v868_v9 = vsel %vm852_vm1, %v4248_v1, 128 }
 0x171   : > { %v898_v10 = vshra.s32 %v868_v9, 16  ;;  %v897_v62 = vand.u32 65535, %v868_v9  ;;  %v780_v9 = vpop.f32.mrf.mxu2 }
 0x173   : > { %v900_v12 = vcvt.s32.f32 %v898_v10  ;;  %v899_v5 = vcvt.s32.f32 %v897_v62 }
 0x175   : > { %833 = vmax.xlane.f32.xlu0 %v4261_v11  ;;  %901 = vmin.xlane.f32.xlu1 %v900_v12 }
 0x176   : > { %v4264_v13 = vpop.xlane.xlu1 %823 }
 0x177   : > { %vm853_vm2 = vcmp.eq.f32.partialorder %v4224_v52, %v4264_v13 }
 0x178   : > { %v4269_v15 = vsel %vm853_vm2, %v4248_v1, 128 }
 0x179   : > { %v912_v17 = vshra.s32 %v4269_v15, 16  ;;  %v911_v21 = vand.u32 65535, %v4269_v15 }
 0x17b   : > { %v4275_v18 = vcvt.s32.f32 %v912_v17  ;;  %v913_v31 = vcvt.s32.f32 %v911_v21  ;;  %v4402_v21 = vadd.f32 %v780_v9, %v4208_v43 }
 0x17d   : > { %835 = vmax.xlane.f32.xlu0 %v4272_v16  ;;  %915 = vmin.xlane.f32.xlu1 %v4275_v18  ;;  %5919 = vst [vmem:[#allocation28_spill] sm:$0xff] %v4402_v21 }
 0x17e   : > { %v4279_v19 = vpop.xlane.xlu1 %825 }
 0x17f   : > { %vm854_vm3 = vcmp.eq.f32.partialorder %v4228_v54, %v4279_v19 }
 0x180   : > { %v4284_v20 = vsel %vm854_vm3, %v4248_v1, 128 }
 0x181   : > { %v926_v23 = vshra.s32 %v4284_v20, 16 }
 0x183   : > { %v4290_v24 = vcvt.s32.f32 %v926_v23 }
 0x185   : > { %929 = vmin.xlane.f32.xlu2 %v4290_v24  ;;  %837 = vmax.xlane.f32.xlu1 %v4287_v22 }
 0x186   : > { %v4294_v25 = vpop.xlane.xlu2 %827 }
 0x187   : > { %vm855_vm4 = vcmp.eq.f32.partialorder %v4232_v56, %v4294_v25 }
 0x188   : > { %v4299_v27 = vsel %vm855_vm4, %v4248_v1, 128 }
 0x189   : > { %v940_v30 = vshra.s32 %v4299_v27, 16 }
 0x18b   : > { %v4305_v33 = vcvt.s32.f32 %v940_v30 }
 0x18d   : > { %943 = vmin.xlane.f32.xlu2 %v4305_v33  ;;  %839 = vmax.xlane.f32.xlu1 %v4302_v28 }
 0x18e   : > { %v4309_v34 = vpop.xlane.xlu2 %829 }
 0x18f   : > { %5917 = vst [vmem:[#allocation26_spill] sm:$0xff] %v4309_v34  ;;  %vm856_vm5 = vcmp.eq.f32.partialorder %v4236_v58, %v4309_v34 }
 0x190   : > { %v4314_v36 = vsel %vm856_vm5, %v4248_v1, 128 }
 0x191   : > { %v954_v39 = vshra.s32 %v4314_v36, 16 }
 0x193   : > { %v4320_v40 = vcvt.s32.f32 %v954_v39  ;;  %v925_v39 = vand.u32 65535, %v4284_v20 }
 0x195   : > { %841 = vmax.xlane.f32.xlu2 %v4317_v37  ;;  %957 = vmin.xlane.f32.xlu0 %v4320_v40 }
 0x196   : > { %v4324_v44 = vpop.xlane.xlu2 %831 }
 0x197   : > { %vm857_vm6 = vcmp.eq.f32.partialorder %v4240_v60, %v4324_v44 }
 0x198   : > { %v4329_v46 = vsel %vm857_vm6, %v4248_v1, 128 }
 0x199   : > { %v968_v47 = vshra.s32 %v4329_v46, 16 }
 0x19b   : > { %v4332_v49 = vcvt.s32.f32 %v968_v47  ;;  %v782_v47 = vpop.f32.mrf.mxu2 }
 0x19d   : > { %971 = vmin.xlane.f32.xlu2 %v4332_v49 }
 0x1a5   : > { %845 = vmax.xlane.f32.xlu2 %v4336_v53 }
 0x1e0   : > { %v4339_v57 = vpop.xlane.xlu0 %887 }
 0x1e1   : > { %vm889_vm7 = vcmp.eq.f32.partialorder %v886_v6, %v4339_v57 }
 0x1e2   : > { %v890_v61 = vsel %vm889_vm7, %v885_v59, inf  ;;  %v927_v59 = vcvt.s32.f32 %v925_v39 }
 0x1e3   : > { %891 = vmin.xlane.f32.xlu0 %v890_v61  ;;  %v4389_v61 = vadd.f32 %v782_v47, %v4208_v43 }
 0x1e8   : > { %v4342_v0 = vpop.xlane.xlu1 %901  ;;  %v4344_v2 = vpop.xlane.xlu0 %833 }
 0x1e9   : > { %vm858_vm8 = vcmp.eq.f32.partialorder %v4261_v11, %v4344_v2  ;;  %vm903_vm9 = vcmp.eq.f32.partialorder %v900_v12, %v4342_v0  ;;  %v4362_v12 = vadd.f32 %v775_v42, %v4208_v43 }
 0x1ea   : > { %v4350_v4 = vsel %vm858_vm8, %v4248_v1, 128  ;;  %v904_v7 = vsel %vm903_vm9, %v899_v5, inf }
 0x1eb   : > { %905 = vmin.xlane.f32.xlu1 %v904_v7  ;;  %v982_v6 = vshra.s32 %v4350_v4, 16 }
 0x1ed   : > { %v4353_v10 = vcvt.s32.f32 %v982_v6 }
 0x1ef   : > { %985 = vmin.xlane.f32.xlu0 %v4353_v10 }
 0x1f0   : > { %v4356_v14 = vpop.xlane.xlu1 %915  ;;  %v4358_v17 = vpop.xlane.xlu0 %835 }
 0x1f1   : > { %vm859_vm10 = vcmp.eq.f32.partialorder %v4272_v16, %v4358_v17  ;;  %vm917_vm11 = vcmp.eq.f32.partialorder %v4275_v18, %v4356_v14 }
 0x1f2   : > { %v4367_v23 = vsel %vm859_vm10, %v4248_v1, 128  ;;  %v918_v42 = vsel %vm917_vm11, %v913_v31, inf }
 0x1f3   : > { %843 = vmax.xlane.f32.xlu1 %v4362_v12  ;;  %v996_v30 = vshra.s32 %v4367_v23, 16 }
 0x1f5   : > { %v4374_v15 = vcvt.s32.f32 %v996_v30 }
 0x1f7   : > { %919 = vmin.xlane.f32.xlu0 %v918_v42  ;;  %999 = vmin.xlane.f32.xlu2 %v4374_v15  ;;  %v953_v42 = vand.u32 65535, %v4314_v36 }
 0x1f8   : > { %v4377_v51 = vpop.xlane.xlu2 %929  ;;  %v4379_v55 = vpop.xlane.xlu1 %837 }
 0x1f9   : > { %vm860_vm12 = vcmp.eq.f32.partialorder %v4287_v22, %v4379_v55  ;;  %vm931_vm13 = vcmp.eq.f32.partialorder %v4290_v24, %v4377_v51  ;;  %v939_v24 = vand.u32 65535, %v4299_v27 }
 0x1fa   : > { %v4386_v18 = vsel %vm860_vm12, %v4248_v1, 128  ;;  %v932_v20 = vsel %vm931_vm13, %v927_v59, inf  ;;  %v955_v59 = vcvt.s32.f32 %v953_v42 }
 0x1fb   : > { %933 = vmin.xlane.f32.xlu1 %v932_v20  ;;  %v1010_v62 = vshra.s32 %v4386_v18, 16  ;;  %v941_v39 = vcvt.s32.f32 %v939_v24 }
 0x1fd   : > { %v4392_v5 = vcvt.s32.f32 %v1010_v62 }
 0x1ff   : > { %1013 = vmin.xlane.f32.xlu0 %v4392_v5  ;;  %849 = vmax.xlane.f32.xlu2 %v4389_v61 }
 0x200   : > { %v4396_v7 = vpop.xlane.xlu2 %943  ;;  %v4398_v6 = vpop.xlane.xlu1 %839 }
 0x201   : > { %5918 = vst [vmem:[#allocation27_spill] sm:$0xff] %v4398_v6  ;;  %vm861_vm14 = vcmp.eq.f32.partialorder %v4302_v28, %v4398_v6  ;;  %vm945_vm15 = vcmp.eq.f32.partialorder %v4305_v33, %v4396_v7 }
 0x202   : > { %v4407_v30 = vsel %vm861_vm14, %v4248_v1, 128  ;;  %v946_v43 = vsel %vm945_vm15, %v941_v39, inf }
 0x203   : > { %847 = vmax.xlane.f32.xlu1 %v4402_v21  ;;  %v1024_v31 = vshra.s32 %v4407_v30, 16 }
 0x205   : > { %v4414_v27 = vcvt.s32.f32 %v1024_v31  ;;  %v967_v31 = vand.u32 65535, %v4329_v46  ;;  %v894_v46 = vcvt.f32.s32 %v4339_v57  ;;  %v981_v57 = vand.u32 65535, %v4350_v4 }
 0x207   : > { %947 = vmin.xlane.f32.xlu0 %v946_v43  ;;  %1027 = vmin.xlane.f32.xlu2 %v4414_v27  ;;  %v969_v39 = vcvt.s32.f32 %v967_v31 }
 0x208   : > { %v4417_v9 = vpop.xlane.xlu2 %841  ;;  %v4419_v47 = vpop.xlane.xlu0 %957 }
 0x209   : > { %5920 = vst [vmem:[#allocation29_spill] sm:$0xff] %v4417_v9  ;;  %vm862_vm0 = vcmp.eq.f32.partialorder %v4317_v37, %v4417_v9  ;;  %vm959_vm1 = vcmp.eq.f32.partialorder %v4320_v40, %v4419_v47 }
 0x20a   : > { %v4426_v33 = vsel %vm862_vm0, %v4248_v1, 128  ;;  %v960_v36 = vsel %vm959_vm1, %v955_v59, inf }
 0x20b   : > { %961 = vmin.xlane.f32.xlu1 %v960_v36  ;;  %v1038_v20 = vshra.s32 %v4426_v33, 16 }
 0x20d   : > { %v4429_v62 = vcvt.s32.f32 %v1038_v20  ;;  %v895_v20 = vshll.u32 %v894_v46, 16 }
 0x20f   : > { %1041 = vmin.xlane.f32.xlu0 %v4429_v62 }
 0x210   : > { %v4432_v24 = vpop.xlane.xlu2 %971 }
 0x211   : > { %vm973_vm2 = vcmp.eq.f32.partialorder %v4332_v49, %v4432_v24 }
 0x212   : > { %v974_v40 = vsel %vm973_vm2, %v969_v39, inf }
 0x217   : > { %975 = vmin.xlane.f32.xlu0 %v974_v40  ;;  %v908_v40 = vcvt.f32.s32 %v4342_v0  ;;  %v983_v0 = vcvt.s32.f32 %v981_v57  ;;  %v995_v57 = vand.u32 65535, %v4367_v23 }
 0x218   : > { %v4437_v42 = vpop.xlane.xlu2 %845 }
 0x219   : > { %5921 = vst [vmem:[#allocation30_spill] sm:$0xff] %v4437_v42  ;;  %vm864_vm3 = vcmp.eq.f32.partialorder %v4336_v53, %v4437_v42  ;;  %v909_v46 = vshll.u32 %v908_v40, 16  ;;  %v997_v6 = vcvt.s32.f32 %v995_v57 }
 0x21a   : > { %v4442_v43 = vsel %vm864_vm3, %v4248_v1, 128 }
 0x21b   : > { %v1066_v59 = vshra.s32 %v4442_v43, 16 }
 0x21d   : > { %v4445_v36 = vcvt.s32.f32 %v1066_v59 }
 0x21f   : > { %1069 = vmin.xlane.f32.xlu0 %v4445_v36 }
 0x256   : > { %v892_v49 = vpop.xlane.xlu0 %891 }
 0x257   : > { %v893_v31 = vcvt.f32.s32 %v892_v49 }
 0x259   : > { %v4449_v39 = vadd.s32 %v895_v20, %v893_v31 }
 0x25b   : > { %vm1107_vm4 = vcmp.eq.s32.totalorder %v4248_v1, %v4449_v39 }
 0x25c   : > { %v4458_v59 = vsel %vm1107_vm4, -inf, %v4211_v45 }
 0x25d   : > { %1139 = vmax.xlane.f32.xlu1 %v4458_v59 }
 0x25e   : > { %v906_v42 = vpop.xlane.xlu1 %905 }
 0x25f   : > { %v907_v49 = vcvt.f32.s32 %v906_v42  ;;  %v922_v42 = vcvt.f32.s32 %v4356_v14 }
 0x261   : > { %v4462_v20 = vadd.s32 %v909_v46, %v907_v49 }
 0x262   : > { %v4464_v31 = vpop.xlane.xlu0 %985 }
 0x263   : > { %vm1108_vm5 = vcmp.eq.s32.totalorder %v4248_v1, %v4462_v20  ;;  %vm987_vm6 = vcmp.eq.f32.partialorder %v4353_v10, %v4464_v31 }
 0x264   : > { %v4474_v45 = vsel %vm1108_vm5, -inf, %v4220_v50  ;;  %v988_v4 = vsel %vm987_vm6, %v983_v0, inf  ;;  %v923_v50 = vshll.u32 %v922_v42, 16 }
 0x265   : > { %1141 = vmax.xlane.f32.xlu2 %v4474_v45  ;;  %989 = vmin.xlane.f32.xlu1 %v988_v4  ;;  %v936_v4 = vcvt.f32.s32 %v4377_v51 }
 0x266   : > { %v4478_v40 = vpop.xlane.xlu1 %843 }
 0x267   : > { %5922 = vst [vmem:[#allocation31_spill] sm:$0xff] %v4478_v40  ;;  %vm863_vm7 = vcmp.eq.f32.partialorder %v4362_v12, %v4478_v40  ;;  %v937_v42 = vshll.u32 %v936_v4, 16 }
 0x268   : > { %v4484_v10 = vsel %vm863_vm7, %v4248_v1, 128 }
 0x269   : > { %v1052_v46 = vshra.s32 %v4484_v10, 16 }
 0x26a   : > { %v4487_v49 = vpop.xlane.xlu2 %999  ;;  %v920_v0 = vpop.xlane.xlu0 %919 }
 0x26b   : > { %v921_v14 = vcvt.f32.s32 %v920_v0  ;;  %v4490_v34 = vcvt.s32.f32 %v1052_v46  ;;  %vm1001_vm8 = vcmp.eq.f32.partialorder %v4374_v15, %v4487_v49  ;;  %v1009_v46 = vand.u32 65535, %v4386_v18 }
 0x26c   : > { %v1002_v23 = vsel %vm1001_vm8, %v997_v6, inf  ;;  %v950_v0 = vcvt.f32.s32 %v4396_v7 }
 0x26d   : > { %v4494_v40 = vadd.s32 %v923_v50, %v921_v14  ;;  %1055 = vmin.xlane.f32.xlu2 %v4490_v34  ;;  %1003 = vmin.xlane.f32.xlu0 %v1002_v23  ;;  %v1011_v50 = vcvt.s32.f32 %v1009_v46  ;;  %v1023_v46 = vand.u32 65535, %v4407_v30 }
 0x26e   : > { %v934_v63 = vpop.xlane.xlu1 %933  ;;  %v951_v7 = vshll.u32 %v950_v0, 16 }
 0x26f   : > { %v935_v48 = vcvt.f32.s32 %v934_v63  ;;  %vm1109_vm9 = vcmp.eq.s32.totalorder %v4248_v1, %v4494_v40 }
 0x270   : > { %v4503_v51 = vsel %vm1109_vm9, -inf, %v4224_v52 }
 0x271   : > { %v4505_v57 = vadd.s32 %v937_v42, %v935_v48  ;;  %1143 = vmax.xlane.f32.xlu1 %v4503_v51 }
 0x272   : > { %v4508_v15 = vpop.xlane.xlu2 %849  ;;  %v4510_v6 = vpop.xlane.xlu0 %1013 }
 0x273   : > { %5923 = vst [vmem:[#allocation32_spill] sm:$0xff] %v4508_v15  ;;  %vm866_vm10 = vcmp.eq.f32.partialorder %v4389_v61, %v4508_v15  ;;  %vm1110_vm11 = vcmp.eq.s32.totalorder %v4248_v1, %v4505_v57  ;;  %vm1015_vm12 = vcmp.eq.f32.partialorder %v4392_v5, %v4510_v6  ;;  %v964_v15 = vcvt.f32.s32 %v4419_v47 }
 0x274   : > { %v4518_v63 = vsel %vm866_vm10, %v4248_v1, 128  ;;  %v4524_v48 = vsel %vm1110_vm11, -inf, %v4228_v54  ;;  %v1016_v14 = vsel %vm1015_vm12, %v1011_v50, inf }
 0x275   : > { %1145 = vmax.xlane.f32.xlu2 %v4524_v48  ;;  %v1094_v52 = vshra.s32 %v4518_v63, 16  ;;  %v965_v9 = vshll.u32 %v964_v15, 16  ;;  %v1037_v15 = vand.u32 65535, %v4426_v33 }
 0x276   : > { %v4530_v18 = vpop.xlane.xlu1 %847 }
 0x277   : > { %5924 = vst [vmem:[#allocation33_spill] sm:$0xff] %v4530_v18  ;;  %vm865_vm13 = vcmp.eq.f32.partialorder %v4402_v21, %v4530_v18  ;;  %v4535_v4 = vcvt.s32.f32 %v1094_v52 }
 0x278   : > { %v4538_v54 = vsel %vm865_vm13, %v4248_v1, 128 }
 0x279   : > { %1097 = vmin.xlane.f32.xlu0 %v4535_v4  ;;  %1017 = vmin.xlane.f32.xlu1 %v1016_v14  ;;  %v1080_v23 = vshra.s32 %v4538_v54, 16  ;;  %v1025_v14 = vcvt.s32.f32 %v1023_v46 }
 0x27a   : > { %v4542_v5 = vpop.xlane.xlu2 %1027  ;;  %v948_v42 = vpop.xlane.xlu0 %947 }
 0x27b   : > { %v949_v18 = vcvt.f32.s32 %v948_v42  ;;  %v4546_v52 = vcvt.s32.f32 %v1080_v23  ;;  %vm1029_vm14 = vcmp.eq.f32.partialorder %v4414_v27, %v4542_v5 }
 0x27c   : > { %v1030_v30 = vsel %vm1029_vm14, %v1025_v14, inf }
 0x27d   : > { %v4548_v41 = vadd.s32 %v951_v7, %v949_v18  ;;  %1083 = vmin.xlane.f32.xlu2 %v4546_v52 }
 0x27e   : > { %v962_v50 = vpop.xlane.xlu1 %961 }
 0x27f   : > { %v963_v38 = vcvt.f32.s32 %v962_v50  ;;  %vm1111_vm15 = vcmp.eq.s32.totalorder %v4248_v1, %v4548_v41 }
 0x280   : > { %v4559_v47 = vsel %vm1111_vm15, -inf, %v4232_v56  ;;  %v978_v56 = vcvt.f32.s32 %v4432_v24  ;;  %v1065_v24 = vand.u32 65535, %v4442_v43 }
 0x281   : > { %v4561_v18 = vadd.s32 %v965_v9, %v963_v38  ;;  %1031 = vmin.xlane.f32.xlu0 %v1030_v30  ;;  %1147 = vmax.xlane.f32.xlu1 %v4559_v47  ;;  %v1039_v38 = vcvt.s32.f32 %v1037_v15 }
 0x282   : > { %v4564_v27 = vpop.xlane.xlu0 %1041  ;;  %v979_v23 = vshll.u32 %v978_v56, 16  ;;  %v1067_v7 = vcvt.s32.f32 %v1065_v24  ;;  %v992_v56 = vcvt.f32.s32 %v4464_v31 }
 0x283   : > { %5925 = vst [vmem:[#allocation34_spill] sm:$0xff] %v4561_v18  ;;  %vm1112_vm0 = vcmp.eq.s32.totalorder %v4248_v1, %v4561_v18  ;;  %vm1043_vm1 = vcmp.eq.f32.partialorder %v4429_v62, %v4564_v27 }
 0x284   : > { %v4573_v0 = vsel %vm1112_vm0, -inf, %v4236_v58  ;;  %v1044_v9 = vsel %vm1043_vm1, %v1039_v38, inf }
 0x285   : > { %1149 = vmax.xlane.f32.xlu2 %v4573_v0 }
 0x289   : > { %1045 = vmin.xlane.f32.xlu1 %v1044_v9 }
 0x28a   : > { %v976_v33 = vpop.xlane.xlu0 %975 }
 0x28b   : > { %v977_v42 = vcvt.f32.s32 %v976_v33  ;;  %v993_v33 = vshll.u32 %v992_v56, 16 }
 0x28d   : > { %v4579_v46 = vadd.s32 %v979_v23, %v977_v42 }
 0x28f   : > { %vm1113_vm2 = vcmp.eq.s32.totalorder %v4248_v1, %v4579_v46 }
 0x290   : > { %v4587_v58 = vsel %vm1113_vm2, -inf, %v4240_v60 }
 0x291   : > { %1151 = vmax.xlane.f32.xlu1 %v4587_v58 }
 0x292   : > { %v4590_v62 = vpop.xlane.xlu0 %1069 }
 0x293   : > { %vm1071_vm3 = vcmp.eq.f32.partialorder %v4445_v36, %v4590_v62 }
 0x294   : > { %v1072_v50 = vsel %vm1071_vm3, %v1067_v7, inf }
 0x299   : > { %1073 = vmin.xlane.f32.xlu1 %v1072_v50 }
 0x2d0   : > { %v1140_v14 = vpop.xlane.xlu1 %1139 }
 0x2d1   : > { %vm1171_vm6 = vcmp.eq.f32.partialorder %v4458_v59, %v1140_v14  ;;  %v1443_v30 = vsub.f32 %v1140_v14, %v4250_v3  ;;  %v1006_v14 = vcvt.f32.s32 %v4487_v49 }
 0x2d2   : > { %v4598_v60 = vsel %vm1171_vm6, %v4248_v1, 128 }
 0x2d3   : > { %v1459_v15 = vmul.f32 1.442695, %v1443_v30  ;;  %v1204_v38 = vshra.s32 %v4598_v60, 16 }
 0x2d5   : > { %3559 = vpow2.f32 %v1459_v15  ;;  %v4602_v43 = vcvt.s32.f32 %v1204_v38  ;;  %v1051_v15 = vand.u32 65535, %v4484_v10  ;;  %v1007_v38 = vshll.u32 %v1006_v14, 16 }
 0x2d7   : > { %1207 = vmin.xlane.f32.xlu2 %v4602_v43 }
 0x2d8   : > { %v1142_v36 = vpop.xlane.xlu2 %1141  ;;  %v990_v9 = vpop.xlane.xlu1 %989 }
 0x2d9   : > { %vm1172_vm7 = vcmp.eq.f32.partialorder %v4474_v45, %v1142_v36  ;;  %v1444_v3 = vsub.f32 %v1142_v36, %v4255_v8  ;;  %v991_v59 = vcvt.f32.s32 %v990_v9 }
 0x2da   : > { %v4608_v23 = vsel %vm1172_vm7, %v4248_v1, 128 }
 0x2db   : > { %v4610_v42 = vpop.eup %3559  ;;  %v1461_v24 = vmul.f32 1.442695, %v1444_v3  ;;  %v4612_v31 = vadd.s32 %v993_v33, %v991_v59  ;;  %v1218_v7 = vshra.s32 %v4608_v23, 16  ;;  %v1053_v59 = vcvt.s32.f32 %v1051_v15 }
 0x2dc   : > { %5926 = vst [vmem:[#allocation35_spill] sm:$0xff] %v4610_v42  ;;  %v4616_v50 = vadd.f32 1.0, %v4610_v42 }
 0x2dd   : > { %5927 = vst [vmem:[#allocation36_spill] sm:$0xff] %v4612_v31  ;;  %3561 = vpow2.f32 %v1461_v24  ;;  %v4619_v45 = vcvt.s32.f32 %v1218_v7  ;;  %vm1114_vm8 = vcmp.eq.s32.totalorder %v4248_v1, %v4612_v31 }
 0x2de   : > { %3563 = vrcp.f32 %v4616_v50  ;;  %v4628_v8 = vsel %vm1114_vm8, -inf, %v4261_v11  ;;  %vm1512_vm3 = vweird.f32 %v4616_v50 }
 0x2df   : > { %1221 = vmin.xlane.f32.xlu0 %v4619_v45  ;;  %1153 = vmax.xlane.f32.xlu2 %v4628_v8 }
 0x2e0   : > { %v4632_v30 = vpop.xlane.xlu2 %1055  ;;  %v1004_v49 = vpop.xlane.xlu0 %1003 }
 0x2e1   : > { %v1005_v56 = vcvt.f32.s32 %v1004_v49  ;;  %vm1057_vm10 = vcmp.eq.f32.partialorder %v4490_v34, %v4632_v30 }
 0x2e2   : > { %v1058_v34 = vsel %vm1057_vm10, %v1053_v59, inf }
 0x2e3   : > { %v4635_v36 = vpop.eup %3561  ;;  %v4637_v9 = vadd.s32 %v1007_v38, %v1005_v56  ;;  %v1093_v56 = vand.u32 65535, %v4518_v63 }
 0x2e4   : > { %5928 = vst [vmem:[#allocation37_spill] sm:$0xff] %v4635_v36  ;;  %v3564_v11 = vpop.eup %3563  ;;  %v4642_v33 = vadd.f32 1.0, %v4635_v36  ;;  %v1144_v3 = vpop.xlane.xlu1 %1143 }
 0x2e5   : > { %5929 = vst [vmem:[#allocation38_spill] sm:$0xff] %v4637_v9  ;;  %vm1173_vm12 = vcmp.eq.f32.partialorder %v4503_v51, %v1144_v3  ;;  %v1445_v24 = vsub.f32 %v1144_v3, %v4264_v13  ;;  %vm1115_vm13 = vcmp.eq.s32.totalorder %v4248_v1, %v4637_v9  ;;  %v1508_v10 = vmul.f32 %v3564_v11, %v4616_v50 }
 0x2e6   : > { %3565 = vrcp.f32 %v4642_v33  ;;  %v4651_v7 = vsel %vm1173_vm12, %v4248_v1, 128  ;;  %v4657_v14 = vsel %vm1115_vm13, -inf, %v4272_v16  ;;  %v1020_v51 = vcvt.f32.s32 %v4510_v6 }
 0x2e7   : > { %v1463_v13 = vmul.f32 1.442695, %v1445_v24  ;;  %1059 = vmin.xlane.f32.xlu0 %v1058_v34  ;;  %1155 = vmax.xlane.f32.xlu1 %v4657_v14  ;;  %v1232_v49 = vshra.s32 %v4651_v7, 16  ;;  %v1509_v15 = vsub.f32 1.0, %v1508_v10  ;;  %v1518_v3 = vand.u32 2147483648, %v4616_v50 }
 0x2e8   : > { %v1146_v38 = vpop.xlane.xlu2 %1145  ;;  %vm1513_vm1 = vweird.f32 %v3564_v11  ;;  %v1516_v34 = vand.u32 2147483647, %v4616_v50  ;;  %v1021_v10 = vshll.u32 %v1020_v51, 16 }
 0x2e9   : > { %3567 = vpow2.f32 %v1463_v13  ;;  %vm1174_vm14 = vcmp.eq.f32.partialorder %v4524_v48, %v1146_v38  ;;  %v1446_v16 = vsub.f32 %v1146_v38, %v4279_v19  ;;  %v4666_v59 = vcvt.s32.f32 %v1232_v49  ;;  %vm1514_vm6 = vmor %vm1512_vm3, %vm1513_vm1 }
 0x2ea   : > { %v4669_v6 = vsel %vm1174_vm14, %v4248_v1, 128  ;;  %v1510_v24 = vmul.f32 %v3564_v11, %v1509_v15  ;;  %v1095_v19 = vcvt.s32.f32 %v1093_v56  ;;  %v1079_v49 = vand.u32 65535, %v4538_v54 }
 0x2eb   : > { %v1465_v18 = vmul.f32 1.442695, %v1446_v16  ;;  %1235 = vmin.xlane.f32.xlu2 %v4666_v59  ;;  %v1246_v63 = vshra.s32 %v4669_v6, 16  ;;  %v1519_v51 = vor.u32 1.1754944e-38, %v1518_v3  ;;  %vm1517_vm10 = vcmp.eq.f32.partialorder %v1516_v34, 8.507059e+37 }
 0x2ec   : > { %v4674_v13 = vpop.eup %3565  ;;  %v1018_v48 = vpop.xlane.xlu1 %1017  ;;  %v1511_v38 = vadd.f32 %v3564_v11, %v1510_v24  ;;  %v5880_v24 = vmov 0.0   ;;  %vm1527_vm3 = vweird.f32 %v4642_v33 }
 0x2ed   : > { %v4676_v36 = vpop.xlane.xlu0 %1097  ;;  %3569 = vpow2.f32 %v1465_v18  ;;  %v1019_v15 = vcvt.f32.s32 %v1018_v48  ;;  %v4680_v42 = vcvt.s32.f32 %v1246_v63  ;;  %v1523_v56 = vmul.f32 %v4674_v13, %v4642_v33 }
 0x2ee   : > { %vm1099_vm7 = vcmp.eq.f32.partialorder %v4535_v4, %v4676_v36  ;;  %v1515_v16 = vsel %vm1514_vm6, %v3564_v11, %v1511_v38  ;;  %v3182_v4 = vsel %vm1107_vm4, 1.0, %v5880_v24  ;;  %v1034_v11 = vcvt.f32.s32 %v4542_v5  ;;  %v3402_v38 = vld [vmem:[#allocation5 + $0xb0] sm:$0xf0]  ;;  %v3174_v24 = vld [vmem:[#allocation5 + $0xb4] sm:$0xf0] }
 0x2ef   : > { %v4687_v9 = vpop.eup %3567  ;;  %v4689_v54 = vadd.s32 %v1021_v10, %v1019_v15  ;;  %1249 = vmin.xlane.f32.xlu0 %v4680_v42  ;;  %v1100_v18 = vsel %vm1099_vm7, %v1095_v19, inf  ;;  %v4692_v50 = vsel %vm1517_vm10, %v1519_v51, %v1515_v16  ;;  %v1524_v10 = vsub.f32 1.0, %v1523_v56  ;;  %v3172_v19 = vld [vmem:[#allocation5 + $0xa8] sm:$0xf] }
 0x2f0   : > { %5930 = vst [vmem:[#allocation39_spill] sm:$0xff] %v4687_v9  ;;  %v4700_v3 = vadd.f32 1.0, %v4687_v9  ;;  %1101 = vmin.xlane.f32.xlu1 %v1100_v18  ;;  %v4702_v34 = vpop.xlane.xlu2 %1083  ;;  %v4709_v63 = vmul.f32 %v3182_v4, %v4692_v50  ;;  %v1081_v5 = vcvt.s32.f32 %v1079_v49  ;;  %v1035_v15 = vshll.u32 %v1034_v11, 16  ;;  %v3401_v4 = vld [vmem:[#allocation5 + $0xac] sm:$0xf] }
 0x2f1   : > { %5931 = vst [vmem:[#allocation40_spill] sm:$0xff] %v4689_v54  ;;  %vm1116_vm12 = vcmp.eq.s32.totalorder %v4248_v1, %v4689_v54  ;;  %vm1085_vm14 = vcmp.eq.f32.partialorder %v4546_v52, %v4702_v34  ;;  %v1525_v52 = vmul.f32 %v4674_v13, %v1524_v10  ;;  %v3173_v18 = vor.u32 %v3402_v38, %v3172_v19  ;;  %v3398_v54 = vld [vmem:[#allocation5 + $0x94] sm:$0xf]  ;;  %v3162_v19 = vld [vmem:[#allocation5 + $0x9c] sm:$0xf0] }
 0x2f2   : > { %5932 = vst [vmem:[#allocation41_spill] sm:$0xff] %v4692_v50  ;;  %v4715_v39 = vsel %vm1116_vm12, -inf, %v4287_v22  ;;  %3571 = vrcp.f32 %v4700_v3  ;;  %v1086_v56 = vsel %vm1085_vm14, %v1081_v5, inf  ;;  %vm1528_vm4 = vweird.f32 %v4674_v13  ;;  %v3399_v50 = vld [vmem:[#allocation5 + $0x98] sm:$0xf0] }
 0x2f3   : > { %5933 = vst [vmem:[#allocation42_spill] sm:$0xff] %v4709_v63  ;;  %v4717_v48 = vpop.eup %3569  ;;  %1157 = vmax.xlane.f32.xlu2 %v4715_v39  ;;  %v3177_v9 = vor.u32 %v3401_v4, %v3174_v24  ;;  %v3160_v63 = vld [vmem:[#allocation5 + $0x90] sm:$0xf]  ;;  %638 = vmatpush.bf16.msra.mxu0 %v3173_v18  ;;  %v3148_v38 = vld [vmem:[#allocation5 + $0x78] sm:$0xf]  ;;  %v1526_v31 = vadd.f32 %v4674_v13, %v1525_v52  ;;  %vm4755_vm10 = vmor %vm1527_vm3, %vm1528_vm4 }
 0x2f4   : > { %5934 = vst [vmem:[#allocation43_spill] sm:$0xff] %v4717_v48  ;;  %v1148_v51 = vpop.xlane.xlu1 %1147  ;;  %v4726_v10 = vadd.f32 1.0, %v4717_v48  ;;  %v3161_v5 = vor.u32 %v3399_v50, %v3160_v63  ;;  %v3165_v24 = vor.u32 %v3398_v54, %v3162_v19  ;;  %v3395_v48 = vld [vmem:[#allocation5 + $0x7c] sm:$0xf]  ;;  %v3150_v18 = vld [vmem:[#allocation5 + $0x84] sm:$0xf0] }
 0x2f5   : > { %v1032_v16 = vpop.xlane.xlu0 %1031  ;;  %vm1175_vm1 = vcmp.eq.f32.partialorder %v4559_v47, %v1148_v51  ;;  %v1447_v22 = vsub.f32 %v1148_v51, %v4294_v25  ;;  %687 = vmatpush.bf16.msra.mxu1 %v3177_v9  ;;  %v3396_v51 = vld [vmem:[#allocation5 + $0x80] sm:$0xf0]  ;;  %v1533_v50 = vand.u32 2147483648, %v4642_v33  ;;  %v1531_v9 = vand.u32 2147483647, %v4642_v33 }
 0x2f6   : > { %v1033_v49 = vcvt.f32.s32 %v1032_v16  ;;  %v4729_v11 = vsel %vm1175_vm1, %v4248_v1, 128  ;;  %v1048_v16 = vcvt.f32.s32 %v4564_v27  ;;  %v3149_v54 = vor.u32 %v3396_v51, %v3148_v38  ;;  %v3392_v38 = vld [vmem:[#allocation5 + $0x64] sm:$0xf] }
 0x2f7   : > { %v1467_v47 = vmul.f32 1.442695, %v1447_v22  ;;  %1087 = vmin.xlane.f32.xlu0 %v1086_v56  ;;  %v1260_v25 = vshra.s32 %v4729_v11, 16  ;;  %639 = vmatpush.bf16.msra.mxu0 %v3161_v5  ;;  %v3153_v56 = vor.u32 %v3395_v48, %v3150_v18  ;;  %v3136_v22 = vld [vmem:[#allocation5 + $0x60] sm:$0xf]  ;;  %v1530_v5 = vsel %vm4755_vm10, %v4674_v13, %v1526_v31 }
 0x2f8   : > { %v4732_v21 = vadd.s32 %v1035_v15, %v1033_v49  ;;  %v4736_v4 = vpop.xlane.xlu2 %1149  ;;  %v4740_v63 = vpop.eup %3571  ;;  %v3393_v49 = vld [vmem:[#allocation5 + $0x68] sm:$0xf0]  ;;  %v1049_v51 = vshll.u32 %v1048_v16, 16  ;;  %vm1532_vm14 = vcmp.eq.f32.partialorder %v1531_v9, 8.507059e+37  ;;  %v5941_v31 = vmov 0.0  }
 0x2f9   : > { %5936 = vst [vmem:[#allocation45_spill] sm:$0xff] %v4736_v4  ;;  %3573 = vpow2.f32 %v1467_v47  ;;  %vm1176_vm6 = vcmp.eq.f32.partialorder %v4573_v0, %v4736_v4  ;;  %v4744_v52 = vcvt.s32.f32 %v1260_v25  ;;  %688 = vmatpush.bf16.msra.mxu1 %v3165_v24  ;;  %v3138_v47 = vld [vmem:[#allocation5 + $0x6c] sm:$0xf0]  ;;  %v1534_v25 = vor.u32 1.1754944e-38, %v1533_v50  ;;  %v3124_v15 = vld [vmem:[#allocation5 + $0x48] sm:$0xf] }
 0x2fa   : > { %5935 = vst [vmem:[#allocation44_spill] sm:$0xff] %v4732_v21  ;;  %3575 = vrcp.f32 %v4726_v10  ;;  %v4749_v27 = vsel %vm1176_vm6, %v4248_v1, 128  ;;  %vm1117_vm7 = vcmp.eq.s32.totalorder %v4248_v1, %v4732_v21  ;;  %v3137_v48 = vor.u32 %v3393_v49, %v3136_v22  ;;  %v3389_v49 = vld [vmem:[#allocation5 + $0x4c] sm:$0xf] }
 0x2fb   : > { %1263 = vmin.xlane.f32.xlu2 %v4744_v52  ;;  %v4764_v0 = vsel %vm1117_vm7, -inf, %v4302_v28  ;;  %v1274_v33 = vshra.s32 %v4749_v27, 16  ;;  %v1538_v28 = vmul.f32 %v4740_v63, %v4700_v3  ;;  %640 = vmatpush.bf16.msra.mxu0 %v3149_v54  ;;  %v4775_v24 = vsel %vm1532_vm14, %v1534_v25, %v1530_v5  ;;  %v3126_v5 = vld [vmem:[#allocation5 + $0x54] sm:$0xf0] }
 0x2fc   : > { %1159 = vmax.xlane.f32.xlu1 %v4764_v0  ;;  %v1046_v19 = vpop.xlane.xlu1 %1045  ;;  %5939 = vst [vmem:[#allocation46_spill] sm:$0xff] %v4775_v24  ;;  %v3183_v13 = vsel %vm1108_vm5, 1.0, %v5941_v31  ;;  %v3141_v16 = vor.u32 %v3392_v38, %v3138_v47  ;;  %vm1543_vm4 = vweird.f32 %v4740_v63  ;;  %v3112_v47 = vld [vmem:[#allocation5 + $0x30] sm:$0xf]  ;;  %v1546_v25 = vand.u32 2147483647, %v4700_v3 }
 0x2fd   : > { %v1047_v21 = vcvt.f32.s32 %v1046_v19  ;;  %v4773_v4 = vcvt.s32.f32 %v1274_v33  ;;  %689 = vmatpush.bf16.msra.mxu1 %v3153_v56  ;;  %v3390_v33 = vld [vmem:[#allocation5 + $0x50] sm:$0xf0]  ;;  %v1539_v9 = vsub.f32 1.0, %v1538_v28  ;;  %v1548_v19 = vand.u32 2147483648, %v4700_v3 }
 0x2fe   : > { %v4797_v20 = vmul.f32 %v3183_v13, %v4775_v24  ;;  %v3125_v38 = vor.u32 %v3390_v33, %v3124_v15  ;;  %v3129_v28 = vor.u32 %v3389_v49, %v3126_v5  ;;  %v3386_v13 = vld [vmem:[#allocation5 + $0x34] sm:$0xf]  ;;  %vm1542_vm1 = vweird.f32 %v4700_v3 }
 0x2ff   : > { %v4777_v18 = vpop.eup %3573  ;;  %v4783_v50 = vadd.s32 %v1049_v51, %v1047_v21  ;;  %1277 = vmin.xlane.f32.xlu0 %v4773_v4  ;;  %v1540_v21 = vmul.f32 %v4740_v63, %v1539_v9  ;;  %641 = vmatpush.bf16.msra.mxu0 %v3137_v48  ;;  %v3387_v51 = vld [vmem:[#allocation5 + $0x38] sm:$0xf0]  ;;  %v3114_v9 = vld [vmem:[#allocation5 + $0x3c] sm:$0xf0]  ;;  %v1076_v48 = vcvt.f32.s32 %v4590_v62  ;;  %vm1544_vm3 = vmor %vm1542_vm1, %vm1543_vm4  ;;  %v1549_v33 = vor.u32 1.1754944e-38, %v1548_v19 }
 0x300   : > { %5940 = vst [vmem:[#allocation47_spill] sm:$0xff] %v4777_v18  ;;  %v4786_v54 = vpop.eup %3575  ;;  %v4789_v22 = vadd.f32 1.0, %v4777_v18  ;;  %v3113_v3 = vor.u32 %v3387_v51, %v3112_v47  ;;  %vm1547_vm10 = vcmp.eq.f32.partialorder %v1546_v25, 8.507059e+37  ;;  %vm1557_vm4 = vweird.f32 %v4726_v10 }
 0x301   : > { %5942 = vst [vmem:[#allocation48_spill] sm:$0xff] %v4783_v50  ;;  %vm1118_vm5 = vcmp.eq.s32.totalorder %v4248_v1, %v4783_v50  ;;  %690 = vmatpush.bf16.msra.mxu1 %v3141_v16  ;;  %v1541_v18 = vadd.f32 %v4740_v63, %v1540_v21  ;;  %vm1558_vm14 = vweird.f32 %v4786_v54  ;;  %v3185_v51 = vsel %vm1110_vm11, 1.0, %v5941_v31 }
 0x302   : > { %5943 = vst [vmem:[#allocation49_spill] sm:$0xff] %v4797_v20  ;;  %3577 = vrcp.f32 %v4789_v22  ;;  %v4804_v56 = vsel %vm1118_vm5, -inf, %v4317_v37  ;;  %v1553_v37 = vmul.f32 %v4786_v54, %v4726_v10  ;;  %v3117_v20 = vor.u32 %v3386_v13, %v3114_v9 }
 0x303   : > { %1161 = vmax.xlane.f32.xlu2 %v4804_v56  ;;  %v1545_v49 = vsel %vm1544_vm3, %v4740_v63, %v1541_v18  ;;  %642 = vmatpush.bf16.msra.mxu0 %v3125_v38  ;;  %v1561_v63 = vand.u32 2147483647, %v4726_v10  ;;  %v3184_v18 = vsel %vm1109_vm9, 1.0, %v5941_v31  ;;  %v1077_v40 = vshll.u32 %v1076_v48, 16  ;;  %vm1559_vm9 = vmor %vm1557_vm4, %vm1558_vm14 }
 0x304   : > { %v1152_v15 = vpop.xlane.xlu1 %1151  ;;  %v1554_v5 = vsub.f32 1.0, %v1553_v37  ;;  %v4822_v50 = vsel %vm1547_vm10, %v1549_v33, %v1545_v49  ;;  %vm1572_vm3 = vweird.f32 %v4789_v22  ;;  %v3188_v41 = vsel %vm1113_vm2, 1.0, %v5941_v31 }
 0x305   : > { %vm1177_vm6 = vcmp.eq.f32.partialorder %v4587_v58, %v1152_v15  ;;  %v1449_v16 = vsub.f32 %v1152_v15, %v4324_v44  ;;  %691 = vmatpush.bf16.msra.mxu1 %v3129_v28  ;;  %v1563_v58 = vand.u32 2147483648, %v4726_v10  ;;  %v4838_v28 = vmul.f32 %v3184_v18, %v4822_v50 }
 0x306   : > { %v4819_v21 = vsel %vm1177_vm6, %v4248_v1, 128  ;;  %v1555_v44 = vmul.f32 %v4786_v54, %v1554_v5  ;;  %vm1562_vm1 = vcmp.eq.f32.partialorder %v1561_v63, 8.507059e+37  ;;  %v1576_v10 = vand.u32 2147483647, %v4789_v22 }
 0x307   : > { %v1471_v62 = vmul.f32 1.442695, %v1449_v16  ;;  %v1288_v24 = vshra.s32 %v4819_v21, 16  ;;  %643 = vmatpush.bf16.msra.mxu0 %v3113_v3  ;;  %v1578_v15 = vand.u32 2147483648, %v4789_v22 }
 0x308   : > { %v3578_v19 = vpop.eup %3577  ;;  %v1556_v25 = vadd.f32 %v4786_v54, %v1555_v44  ;;  %vm1577_vm14 = vcmp.eq.f32.partialorder %v1576_v10, 8.507059e+37  ;;  %v3100_v10 = vld [vmem:[#allocation5 + $0x18] sm:$0xf] }
 0x309   : > { %3579 = vpow2.f32 %v1471_v62  ;;  %v4832_v38 = vcvt.s32.f32 %v1288_v24  ;;  %v1568_v47 = vmul.f32 %v3578_v19, %v4789_v22  ;;  %692 = vmatpush.bf16.msra.mxu1 %v3117_v20  ;;  %v1564_v24 = vor.u32 1.1754944e-38, %v1563_v58 }
 0x30a   : > { %v1560_v37 = vsel %vm1559_vm9, %v4786_v54, %v1556_v25  ;;  %vm1573_vm11 = vweird.f32 %v3578_v19  ;;  %v1579_v3 = vor.u32 1.1754944e-38, %v1578_v15  ;;  %v3186_v22 = vsel %vm1111_vm15, 1.0, %v5941_v31  ;;  %v3384_v15 = vld [vmem:[#allocation5 + $0x20] sm:$0xf0] }
 0x30b   : > { %1291 = vmin.xlane.f32.xlu2 %v4832_v38  ;;  %v1569_v13 = vsub.f32 1.0, %v1568_v47  ;;  %v4848_v16 = vsel %vm1562_vm1, %v1564_v24, %v1560_v37  ;;  %vm1574_vm6 = vmor %vm1572_vm3, %vm1573_vm11 }
 0x30c   : > { %v1074_v9 = vpop.xlane.xlu1 %1073  ;;  %v4851_v48 = vmul.f32 %v3185_v51, %v4848_v16 }
 0x30d   : > { %v1075_v33 = vcvt.f32.s32 %v1074_v9  ;;  %v1570_v57 = vmul.f32 %v3578_v19, %v1569_v13 }
 0x30f   : > { %v4853_v20 = vpop.eup %3579  ;;  %v4855_v49 = vadd.s32 %v1077_v40, %v1075_v33  ;;  %v1571_v5 = vadd.f32 %v3578_v19, %v1570_v57  ;;  %v3383_v33 = vld [vmem:[#allocation5 + $0x1c] sm:$0xf]  ;;  %v3101_v57 = vor.u32 %v3384_v15, %v3100_v10 }
 0x310   : > { %v1497_v54 = vadd.f32 1.0, %v4853_v20 }
 0x311   : > { %5944 = vst [vmem:[#allocation50_spill] sm:$0xff] %v4855_v49  ;;  %vm1120_vm10 = vcmp.eq.s32.totalorder %v4248_v1, %v4855_v49  ;;  %v1575_v62 = vsel %vm1574_vm6, %v3578_v19, %v1571_v5  ;;  %v3102_v5 = vld [vmem:[#allocation5 + $0x24] sm:$0xf0]  ;;  %644 = vmatpush.bf16.msra.mxu0 %v3101_v57  ;;  %v3266_v49 = vld [vmem:[#allocation8 + $0x68] sm:$0xf0] }
 0x312   : > { %3581 = vrcp.f32 %v1497_v54  ;;  %v4865_v58 = vsel %vm1120_vm10, -inf, %v4336_v53  ;;  %v4867_v44 = vsel %vm1577_vm14, %v1579_v3, %v1575_v62  ;;  %v1608_v25 = vand.u32 2147483648, %v1497_v54  ;;  %v3381_v3 = vld [vmem:[#allocation5 + $0x8] sm:$0xf0] }
 0x313   : > { %1165 = vmax.xlane.f32.xlu2 %v4865_v58  ;;  %v4875_v63 = vmul.f32 %v3186_v22, %v4867_v44  ;;  %v1606_v53 = vand.u32 2147483647, %v1497_v54  ;;  %vm1602_vm9 = vweird.f32 %v1497_v54  ;;  %v3105_v62 = vor.u32 %v3383_v33, %v3102_v5  ;;  %v3380_v22 = vld [vmem:[#allocation5 + $0x4] sm:$0xf] }
 0x314   : > { %v1609_v24 = vor.u32 1.1754944e-38, %v1608_v25 }
 0x315   : > { %vm1607_vm11 = vcmp.eq.f32.partialorder %v1606_v53, 8.507059e+37  ;;  %693 = vmatpush.bf16.msra.mxu1 %v3105_v62 }
 0x318   : > { %v3582_v19 = vpop.eup %3581 }
 0x319   : > { %v1598_v18 = vmul.f32 %v3582_v19, %v1497_v54  ;;  %vm1603_vm4 = vweird.f32 %v3582_v19  ;;  %v3088_v54 = vld [vmem:[#allocation5] sm:$0xf] }
 0x31a   : > { %vm1604_vm1 = vmor %vm1602_vm9, %vm1603_vm4 }
 0x31b   : > { %v1599_v47 = vsub.f32 1.0, %v1598_v18  ;;  %v3089_v18 = vor.u32 %v3381_v3, %v3088_v54 }
 0x31d   : > { %v1600_v51 = vmul.f32 %v3582_v19, %v1599_v47  ;;  %645 = vmatpush.bf16.msra.mxu0 %v3089_v18  ;;  %v1203_v47 = vand.u32 65535, %v4598_v60 }
 0x31f   : > { %v1601_v40 = vadd.f32 %v3582_v19, %v1600_v51  ;;  %v1205_v51 = vcvt.s32.f32 %v1203_v47 }
 0x320   : > { %646 = vmatmul.bf16.vlgmr.msra.gmra.mxu0 %v4180_v26 }
 0x321   : > { %v1605_v13 = vsel %vm1604_vm1, %v3582_v19, %v1601_v40  ;;  %v3090_v19 = vld [vmem:[#allocation5 + $0xc] sm:$0xf0]  ;;  %v1217_v40 = vand.u32 65535, %v4608_v23  ;;  %v1062_v23 = vcvt.f32.s32 %v4632_v30 }
 0x322   : > { %v4881_v9 = vsel %vm1607_vm11, %v1609_v24, %v1605_v13  ;;  %v3093_v46 = vor.u32 %v3380_v22, %v3090_v19 }
 0x323   : > { %v4884_v37 = vmul.f32 %v3188_v41, %v4881_v9  ;;  %v1063_v33 = vshll.u32 %v1062_v23, 16 }
 0x324   : > { %694 = vmatpush.bf16.msra.mxu1 %v3093_v46 }
 0x327   : > { %695 = vmatmul.bf16.vlgmr.msra.gmra.mxu1 %v4180_v26  ;;  %v1219_v26 = vcvt.s32.f32 %v1217_v40 }
 0x330   : > { %651 = vmatmul.bf16.gmra.mxu0 %v4185_v29 }
 0x337   : > { %700 = vmatmul.bf16.gmra.mxu1 %v4185_v29 }
 0x340   : > { %656 = vmatmul.bf16.gmra.mxu0 %v4190_v32 }
 0x347   : > { %705 = vmatmul.bf16.gmra.mxu1 %v4190_v32 }
 0x34a   : > { %v4891_v25 = vpop.xlane.xlu2 %1207 }
 0x34b   : > { %vm1209_vm15 = vcmp.eq.f32.partialorder %v4602_v43, %v4891_v25 }
 0x34c   : > { %v1210_v53 = vsel %vm1209_vm15, %v1205_v51, inf }
 0x34d   : > { %1211 = vmin.xlane.f32.xlu0 %v1210_v53 }
 0x350   : > { %661 = vmatmul.bf16.gmra.mxu0 %v4195_v35 }
 0x352   : > { %v1154_v24 = vpop.xlane.xlu2 %1153  ;;  %v4896_v13 = vpop.xlane.xlu0 %1221 }
 0x353   : > { %vm1178_vm2 = vcmp.eq.f32.partialorder %v4628_v8, %v1154_v24  ;;  %v1450_v60 = vsub.f32 %v1154_v24, %v4344_v2  ;;  %vm1223_vm3 = vcmp.eq.f32.partialorder %v4619_v45, %v4896_v13  ;;  %v1231_v8 = vand.u32 65535, %v4651_v7 }
 0x354   : > { %v4903_v29 = vsel %vm1178_vm2, %v4248_v1, 128  ;;  %v1224_v41 = vsel %vm1223_vm3, %v1219_v26, inf }
 0x355   : > { %v1473_v43 = vmul.f32 1.442695, %v1450_v60  ;;  %1225 = vmin.xlane.f32.xlu1 %v1224_v41  ;;  %v1302_v10 = vshra.s32 %v4903_v29, 16  ;;  %v1233_v19 = vcvt.s32.f32 %v1231_v8 }
 0x357   : > { %3583 = vpow2.f32 %v1473_v43  ;;  %v4908_v15 = vcvt.s32.f32 %v1302_v10  ;;  %710 = vmatmul.bf16.gmra.mxu1 %v4195_v35 }
 0x359   : > { %1305 = vmin.xlane.f32.xlu0 %v4908_v15 }
 0x35a   : > { %v1156_v2 = vpop.xlane.xlu1 %1155  ;;  %v1060_v45 = vpop.xlane.xlu0 %1059 }
 0x35b   : > { %vm1179_vm6 = vcmp.eq.f32.partialorder %v4657_v14, %v1156_v2  ;;  %v1451_v57 = vsub.f32 %v1156_v2, %v4358_v17  ;;  %v1061_v5 = vcvt.f32.s32 %v1060_v45  ;;  %v1104_v14 = vcvt.f32.s32 %v4676_v36 }
 0x35c   : > { %v4916_v54 = vsel %vm1179_vm6, %v4248_v1, 128  ;;  %v1245_v36 = vand.u32 65535, %v4669_v6  ;;  %v1090_v6 = vcvt.f32.s32 %v4702_v34 }
 0x35d   : > { %v4918_v30 = vpop.eup %3583  ;;  %v1475_v3 = vmul.f32 1.442695, %v1451_v57  ;;  %v4920_v62 = vadd.s32 %v1063_v33, %v1061_v5  ;;  %v1316_v32 = vshra.s32 %v4916_v54, 16  ;;  %v1105_v51 = vshll.u32 %v1104_v14, 16 }
 0x35e   : > { %v4924_v22 = vadd.f32 1.0, %v4918_v30  ;;  %v4926_v7 = vpop.xlane.xlu2 %1235  ;;  %v1091_v45 = vshll.u32 %v1090_v6, 16 }
 0x35f   : > { %3585 = vpow2.f32 %v1475_v3  ;;  %vm1237_vm14 = vcmp.eq.f32.partialorder %v4666_v59, %v4926_v7  ;;  %v4930_v17 = vcvt.s32.f32 %v1316_v32  ;;  %vm1119_vm4 = vcmp.eq.s32.totalorder %v4248_v1, %v4920_v62 }
 0x360   : > { %3587 = vrcp.f32 %v4924_v22  ;;  %v1238_v18 = vsel %vm1237_vm14, %v1233_v19, inf  ;;  %v4941_v46 = vsel %vm1119_vm4, -inf, %v4362_v12  ;;  %v1247_v12 = vcvt.s32.f32 %v1245_v36 }
 0x361   : > { %1239 = vmin.xlane.f32.xlu0 %v1238_v18  ;;  %1319 = vmin.xlane.f32.xlu2 %v4930_v17  ;;  %v1259_v19 = vand.u32 65535, %v4729_v11  ;;  %v1621_v18 = vand.u32 2147483647, %v4924_v22  ;;  %vm1617_vm3 = vweird.f32 %v4924_v22 }
 0x362   : > { %1163 = vmax.xlane.f32.xlu1 %v4941_v46  ;;  %v4944_v59 = vpop.xlane.xlu0 %1249 }
 0x363   : > { %v1102_v47 = vpop.xlane.xlu1 %1101  ;;  %vm1251_vm9 = vcmp.eq.f32.partialorder %v4680_v42, %v4944_v59 }
 0x364   : > { %v1103_v53 = vcvt.f32.s32 %v1102_v47 }
 0x365   : > { %v4947_v40 = vpop.eup %3585 }
 0x366   : > { %5945 = vst [vmem:[#allocation51_spill] sm:$0xff] %v4947_v40  ;;  %v3588_v24 = vpop.eup %3587  ;;  %v4950_v26 = vadd.f32 1.0, %v4947_v40  ;;  %v4952_v60 = vadd.s32 %v1105_v51, %v1103_v53  ;;  %v1158_v41 = vpop.xlane.xlu2 %1157  ;;  %v5946_v51 = vld [vmem:[#allocation28_spill] sm:$0xff] }
 0x367   : > { %vm1180_vm1 = vcmp.eq.f32.partialorder %v4715_v39, %v1158_v41  ;;  %v1452_v43 = vsub.f32 %v1158_v41, %v4379_v55  ;;  %v1613_v10 = vmul.f32 %v3588_v24, %v4924_v22  ;;  %v1252_v55 = vsel %vm1251_vm9, %v1247_v12, inf  ;;  %v3415_v40 = vld [vmem:[#allocation8 + $0x54] sm:$0xf0] }
 0x368   : > { %3589 = vrcp.f32 %v4950_v26  ;;  %v4964_v23 = vsel %vm1180_vm1, %v4248_v1, 128  ;;  %vm1122_vm11 = vcmp.eq.s32.totalorder %v4248_v1, %v4952_v60  ;;  %vm1618_vm15 = vweird.f32 %v3588_v24 }
 0x369   : > { %v1477_v42 = vmul.f32 1.442695, %v1452_v43  ;;  %v4972_v34 = vsel %vm1122_vm11, -inf, %v4389_v61  ;;  %v1330_v35 = vshra.s32 %v4964_v23, 16  ;;  %v1614_v2 = vsub.f32 1.0, %v1613_v10  ;;  %vm1619_vm14 = vmor %vm1617_vm3, %vm1618_vm15 }
 0x36a   : > { %1169 = vmax.xlane.f32.xlu2 %v4972_v34  ;;  %1253 = vmin.xlane.f32.xlu1 %v1252_v55  ;;  %v1088_v39 = vpop.xlane.xlu0 %1087  ;;  %v1623_v61 = vand.u32 2147483648, %v4924_v22  ;;  %vm1622_vm1 = vcmp.eq.f32.partialorder %v1621_v18, 8.507059e+37 }
 0x36b   : > { %3591 = vpow2.f32 %v1477_v42  ;;  %v1089_v8 = vcvt.f32.s32 %v1088_v39  ;;  %v4976_v33 = vcvt.s32.f32 %v1330_v35  ;;  %v1615_v57 = vmul.f32 %v3588_v24, %v1614_v2  ;;  %v3443_v39 = vld [vmem:[#allocation11 + $0x38] sm:$0xff] }
 0x36c   : > { %v1624_v12 = vor.u32 1.1754944e-38, %v1623_v61  ;;  %v1273_v42 = vand.u32 65535, %v4749_v27  ;;  %v3189_v2 = vsel %vm1114_vm8, 1.0, %v5941_v31  ;;  %v1638_v61 = vand.u32 2147483648, %v4950_v26  ;;  %2221 = vmatpush.bf16.msrb.mxu1 %v3443_v39 }
 0x36d   : > { %v4978_v5 = vadd.s32 %v1091_v45, %v1089_v8  ;;  %1333 = vmin.xlane.f32.xlu0 %v4976_v33  ;;  %v1616_v14 = vadd.f32 %v3588_v24, %v1615_v57  ;;  %v1636_v8 = vand.u32 2147483647, %v4950_v26  ;;  %v5949_v57 = vld [vmem:[#allocation22_spill] sm:$0xff]  ;;  %v3190_v39 = vsel %vm1115_vm13, 1.0, %v5941_v31 }
 0x36e   : > { %v4982_v3 = vpop.eup %3589  ;;  %v4984_v32 = vpop.xlane.xlu2 %1263  ;;  %666 = vmatmul.bf16.gmra.mxu0 %v5949_v57  ;;  %715 = vmatmul.bf16.gmra.mxu1 %v5949_v57 }
 0x36f   : > { %v4988_v36 = vpop.xlane.xlu1 %1159  ;;  %vm1121_vm2 = vcmp.eq.s32.totalorder %v4248_v1, %v4978_v5  ;;  %v1628_v47 = vmul.f32 %v4982_v3, %v4950_v26  ;;  %vm1265_vm9 = vcmp.eq.f32.partialorder %v4744_v52, %v4984_v32  ;;  %v1620_v22 = vsel %vm1619_vm14, %v3588_v24, %v1616_v14  ;;  %v5951_v14 = vld [vmem:[#allocation29_spill] sm:$0xff] }
 0x370   : > { %vm1181_vm6 = vcmp.eq.f32.partialorder %v4764_v0, %v4988_v36  ;;  %v5001_v11 = vsel %vm1121_vm2, -inf, %v5946_v51  ;;  %v1261_v0 = vcvt.s32.f32 %v1259_v19  ;;  %v5018_v55 = vsel %vm1622_vm1, %v1624_v12, %v1620_v22  ;;  %v3272_v51 = vld [vmem:[#allocation8 + $0x70] sm:$0xf]  ;;  %v3419_v22 = vld [vmem:[#allocation8 + $0x74] sm:$0xf0] }
 0x371   : > { %v5003_v53 = vpop.eup %3591  ;;  %v5006_v41 = vsel %vm1181_vm6, %v4248_v1, 128  ;;  %v1629_v35 = vsub.f32 1.0, %v1628_v47  ;;  %vm1633_vm3 = vweird.f32 %v4982_v3  ;;  %v5036_v19 = vmul.f32 %v3189_v2, %v5018_v55  ;;  %v3418_v12 = vld [vmem:[#allocation8 + $0x74] sm:$0xf]  ;;  %v3264_v2 = vld [vmem:[#allocation8 + $0x60] sm:$0xf] }
 0x372   : > { %5947 = vst [vmem:[#allocation28_spill] sm:$0xff] %v5003_v53  ;;  %v5011_v6 = vadd.f32 1.0, %v5003_v53  ;;  %1167 = vmax.xlane.f32.xlu1 %v5001_v11  ;;  %v1344_v43 = vshra.s32 %v5006_v41, 16  ;;  %v5015_v10 = vpop.xlane.xlu0 %1277  ;;  %v1266_v52 = vsel %vm1265_vm9, %v1261_v0, inf  ;;  %v1275_v47 = vcvt.s32.f32 %v1273_v42  ;;  %v3256_v53 = vld [vmem:[#allocation8 + $0x50] sm:$0xf] }
 0x373   : > { %v1630_v45 = vmul.f32 %v4982_v3, %v1629_v35  ;;  %vm1279_vm15 = vcmp.eq.f32.partialorder %v4773_v4, %v5015_v10  ;;  %5950 = vst [vmem:[#allocation36_spill] sm:$0xff] %v5036_v19  ;;  %v3273_v35 = vor.u32 %v3419_v22, %v3272_v51  ;;  %vm1632_vm6 = vweird.f32 %v4950_v26  ;;  %v3414_v19 = vld [vmem:[#allocation8 + $0x54] sm:$0xf]  ;;  %v3423_v5 = vld [vmem:[#allocation10 + $0x18] sm:$0xff] }
 0x374   : > { %3593 = vrcp.f32 %v5011_v6  ;;  %v5021_v24 = vcvt.s32.f32 %v1344_v43  ;;  %v1280_v42 = vsel %vm1279_vm15, %v1275_v47, inf  ;;  %vm5052_vm14 = vmor %vm1632_vm6, %vm1633_vm3  ;;  %v1287_v22 = vand.u32 65535, %v4819_v21  ;;  %v3258_v21 = vld [vmem:[#allocation8 + $0x58] sm:$0xf0] }
 0x375   : > { %1267 = vmin.xlane.f32.xlu0 %v1266_v52  ;;  %v1631_v0 = vadd.f32 %v4982_v3, %v1630_v45  ;;  %v3274_v52 = vld [vmem:[#allocation8 + $0x78] sm:$0xf0]  ;;  %1979 = vmatpush.bf16.msra.mxu3 %v3273_v35  ;;  %vm1637_vm9 = vcmp.eq.f32.partialorder %v1636_v8, 8.507059e+37  ;;  %v3261_v8 = vor.u32 %v3414_v19, %v3258_v21  ;;  %vm1647_vm13 = vweird.f32 %v5011_v6 }
 0x376   : > { %1347 = vmin.xlane.f32.xlu2 %v5021_v24  ;;  %v1162_v27 = vpop.xlane.xlu2 %1161  ;;  %v3277_v57 = vor.u32 %v3418_v12, %v3274_v52  ;;  %v3442_v52 = vld [vmem:[#allocation11 + $0x30] sm:$0xff]  ;;  %v3191_v21 = vsel %vm1116_vm12, 1.0, %v5941_v31 }
 0x377   : > { %vm1182_vm8 = vcmp.eq.f32.partialorder %v4804_v56, %v1162_v27  ;;  %v1454_v18 = vsub.f32 %v1162_v27, %v5951_v14  ;;  %v3417_v14 = vld [vmem:[#allocation8 + $0x64] sm:$0xf0]  ;;  %v1635_v4 = vsel %vm5052_vm14, %v4982_v3, %v1631_v0  ;;  %v1289_v0 = vcvt.s32.f32 %v1287_v22  ;;  %2222 = vmatpush.bf16.msrb.mxu1 %v3442_v52 }
 0x378   : > { %v5043_v43 = vsel %vm1182_vm8, %v4248_v1, 128  ;;  %v3265_v26 = vor.u32 %v3417_v14, %v3264_v2  ;;  %2028 = vmatpush.bf16.msrb.mxu0 %v3277_v57  ;;  %v1653_v14 = vand.u32 2147483648, %v5011_v6  ;;  %v1651_v22 = vand.u32 2147483647, %v5011_v6 }
 0x379   : > { %v1481_v56 = vmul.f32 1.442695, %v1454_v18  ;;  %v1358_v27 = vshra.s32 %v5043_v43, 16  ;;  %v3416_v18 = vld [vmem:[#allocation8 + $0x64] sm:$0xf] }
 0x37a   : > { %v3594_v51 = vpop.eup %3593  ;;  %1281 = vmin.xlane.f32.xlu1 %v1280_v42  ;;  %v3269_v12 = vor.u32 %v3416_v18, %v3266_v49  ;;  %v1639_v42 = vor.u32 1.1754944e-38, %v1638_v61  ;;  %1980 = vmatpush.bf16.msra.mxu3 %v3265_v26  ;;  %v3441_v61 = vld [vmem:[#allocation11 + $0x28] sm:$0xff]  ;;  %v1654_v19 = vor.u32 1.1754944e-38, %v1653_v14  ;;  %vm1652_vm8 = vcmp.eq.f32.partialorder %v1651_v22, 8.507059e+37 }
 0x37b   : > { %3595 = vpow2.f32 %v1481_v56  ;;  %v5060_v47 = vcvt.s32.f32 %v1358_v27  ;;  %v1643_v2 = vmul.f32 %v3594_v51, %v5011_v6  ;;  %v3257_v56 = vor.u32 %v3415_v40, %v3256_v53  ;;  %2223 = vmatpush.bf16.msrb.mxu1 %v3441_v61 }
 0x37c   : > { %v5063_v35 = vsel %vm1637_vm9, %v1639_v42, %v1635_v4  ;;  %2029 = vmatpush.bf16.msrb.mxu0 %v3269_v12  ;;  %vm1648_vm15 = vweird.f32 %v3594_v51  ;;  %v5957_v12 = vld [vmem:[#allocation23_spill] sm:$0xff]  ;;  %v3193_v22 = vsel %vm1118_vm5, 1.0, %v5941_v31  ;;  %v3412_v42 = vld [vmem:[#allocation8 + $0x44] sm:$0xf] }
 0x37d   : > { %1361 = vmin.xlane.f32.xlu0 %v5060_v47  ;;  %v1644_v27 = vsub.f32 1.0, %v1643_v2  ;;  %v5076_v45 = vmul.f32 %v3190_v39, %v5063_v35  ;;  %vm1649_vm3 = vmor %vm1647_vm13, %vm1648_vm15 }
 0x37e   : > { %v5066_v3 = vpop.xlane.xlu2 %1291  ;;  %1981 = vmatpush.bf16.msra.mxu3 %v3257_v56  ;;  %671 = vmatmul.bf16.gmra.mxu0 %v5957_v12 }
 0x37f   : > { %vm1293_vm1 = vcmp.eq.f32.partialorder %v4832_v38, %v5066_v3  ;;  %v1645_v53 = vmul.f32 %v3594_v51, %v1644_v27  ;;  %720 = vmatmul.bf16.gmra.mxu1 %v5957_v12  ;;  %v3248_v12 = vld [vmem:[#allocation8 + $0x40] sm:$0xf] }
 0x380   : > { %v1294_v57 = vsel %vm1293_vm1, %v1289_v0, inf  ;;  %2030 = vmatpush.bf16.msrb.mxu0 %v3261_v8 }
 0x381   : > { %v5078_v40 = vpop.eup %3595  ;;  %v1646_v38 = vadd.f32 %v3594_v51, %v1645_v53 }
 0x382   : > { %5955 = vst [vmem:[#allocation22_spill] sm:$0xff] %v5078_v40  ;;  %v1502_v26 = vadd.f32 1.0, %v5078_v40  ;;  %1295 = vmin.xlane.f32.xlu1 %v1294_v57  ;;  %v3406_v40 = vld [vmem:[#allocation8 + $0x14] sm:$0xf] }
 0x383   : > { %v1650_v18 = vsel %vm1649_vm3, %v3594_v51, %v1646_v38 }
 0x384   : > { %3597 = vrcp.f32 %v1502_v26  ;;  %v5086_v52 = vsel %vm1652_vm8, %v1654_v19, %v1650_v18  ;;  %v1683_v8 = vand.u32 2147483648, %v1502_v26  ;;  %vm1677_vm14 = vweird.f32 %v1502_v26  ;;  %v5961_v19 = vld [vmem:[#allocation24_spill] sm:$0xff] }
 0x385   : > { %v5099_v51 = vmul.f32 %v3191_v21, %v5086_v52  ;;  %v5963_v21 = vld [vmem:[#allocation25_spill] sm:$0xff] }
 0x386   : > { %v5083_v4 = vpop.xlane.xlu2 %1165  ;;  %v1684_v57 = vor.u32 1.1754944e-38, %v1683_v8 }
 0x387   : > { %5956 = vst [vmem:[#allocation29_spill] sm:$0xff] %v5083_v4  ;;  %vm1184_vm6 = vcmp.eq.f32.partialorder %v4865_v58, %v5083_v4  ;;  %v1681_v58 = vand.u32 2147483647, %v1502_v26  ;;  %v3234_v4 = vld [vmem:[#allocation8 + $0x28] sm:$0xf0] }
 0x388   : > { %v5096_v6 = vsel %vm1184_vm6, %v4248_v1, 128 }
 0x389   : > { %v1386_v2 = vshra.s32 %v5096_v6, 16  ;;  %vm1682_vm1 = vcmp.eq.f32.partialorder %v1681_v58, 8.507059e+37  ;;  %v3410_v58 = vld [vmem:[#allocation8 + $0x34] sm:$0xf] }
 0x38a   : > { %v3598_v0 = vpop.eup %3597 }
 0x38b   : > { %v5102_v56 = vcvt.s32.f32 %v1386_v2  ;;  %v1673_v49 = vmul.f32 %v3598_v0, %v1502_v26  ;;  %vm1678_vm12 = vweird.f32 %v3598_v0  ;;  %v3413_v26 = vld [vmem:[#allocation8 + $0x44] sm:$0xf0] }
 0x38c   : > { %vm1679_vm9 = vmor %vm1677_vm14, %vm1678_vm12  ;;  %v3249_v2 = vor.u32 %v3413_v26, %v3248_v12  ;;  %v3408_v12 = vld [vmem:[#allocation8 + $0x24] sm:$0xf] }
 0x38d   : > { %1389 = vmin.xlane.f32.xlu1 %v5102_v56  ;;  %v1674_v39 = vsub.f32 1.0, %v1673_v49  ;;  %v3440_v49 = vld [vmem:[#allocation11 + $0x20] sm:$0xff] }
 0x38e   : > { %676 = vmatmul.bf16.gmra.mxu0 %v5961_v19  ;;  %1982 = vmatpush.bf16.msra.mxu3 %v3249_v2 }
 0x38f   : > { %v1675_v61 = vmul.f32 %v3598_v0, %v1674_v39  ;;  %725 = vmatmul.bf16.gmra.mxu1 %v5961_v19  ;;  %v3240_v39 = vld [vmem:[#allocation8 + $0x30] sm:$0xf]  ;;  %v3409_v19 = vld [vmem:[#allocation8 + $0x24] sm:$0xf0] }
 0x390   : > { %2224 = vmatpush.bf16.msrb.mxu1 %v3440_v49  ;;  %v3437_v49 = vld [vmem:[#allocation11 + $0x8] sm:$0xff] }
 0x391   : > { %v1676_v27 = vadd.f32 %v3598_v0, %v1675_v61  ;;  %v3411_v61 = vld [vmem:[#allocation8 + $0x34] sm:$0xf0] }
 0x393   : > { %v1680_v14 = vsel %vm1679_vm9, %v3598_v0, %v1676_v27  ;;  %v3250_v0 = vld [vmem:[#allocation8 + $0x48] sm:$0xf0]  ;;  %v3242_v27 = vld [vmem:[#allocation8 + $0x38] sm:$0xf0] }
 0x394   : > { %v5109_v38 = vsel %vm1682_vm1, %v1684_v57, %v1680_v14  ;;  %v3253_v8 = vor.u32 %v3412_v42, %v3250_v0  ;;  %v3241_v57 = vor.u32 %v3411_v61, %v3240_v39  ;;  %v3439_v14 = vld [vmem:[#allocation11 + $0x18] sm:$0xff]  ;;  %v3245_v53 = vor.u32 %v3410_v58, %v3242_v27  ;;  %v3405_v61 = vld [vmem:[#allocation8 + $0x4] sm:$0xf0]  ;;  %v3404_v58 = vld [vmem:[#allocation8 + $0x4] sm:$0xf] }
 0x395   : > { %5960 = vst [vmem:[#allocation38_spill] sm:$0xff] %v5109_v38  ;;  %v5113_v18 = vmul.f32 %v3193_v22, %v5109_v38  ;;  %2225 = vmatpush.bf16.msrb.mxu1 %v3439_v14  ;;  %v3232_v22 = vld [vmem:[#allocation8 + $0x20] sm:$0xf]  ;;  %v3237_v42 = vor.u32 %v3408_v12, %v3234_v4  ;;  %v3407_v0 = vld [vmem:[#allocation8 + $0x14] sm:$0xf0]  ;;  %v1214_v12 = vcvt.f32.s32 %v4891_v25  ;;  %v1301_v25 = vand.u32 65535, %v4903_v29 }
 0x396   : > { %2031 = vmatpush.bf16.msrb.mxu0 %v3253_v8  ;;  %1983 = vmatpush.bf16.msra.mxu3 %v3241_v57  ;;  %v3233_v26 = vor.u32 %v3409_v19, %v3232_v22  ;;  %v3226_v38 = vld [vmem:[#allocation8 + $0x18] sm:$0xf0]  ;;  %v3216_v8 = vld [vmem:[#allocation8] sm:$0xf]  ;;  %v3218_v27 = vld [vmem:[#allocation8 + $0x8] sm:$0xf0] }
 0x397   : > { %5962 = vst [vmem:[#allocation23_spill] sm:$0xff] %v5113_v18  ;;  %v3224_v18 = vld [vmem:[#allocation8 + $0x10] sm:$0xf]  ;;  %v3229_v39 = vor.u32 %v3406_v40, %v3226_v38  ;;  %v3217_v57 = vor.u32 %v3405_v61, %v3216_v8  ;;  %v3436_v14 = vld [vmem:[#allocation11] sm:$0xff]  ;;  %v1215_v38 = vshll.u32 %v1214_v12, 16 }
 0x398   : > { %v3225_v2 = vor.u32 %v3407_v0, %v3224_v18  ;;  %v5964_v4 = vld [vmem:[#allocation26_spill] sm:$0xff]  ;;  %v5965_v22 = vld [vmem:[#allocation45_spill] sm:$0xff] }
 0x399   : > { %v1448_v19 = vsub.f32 %v5965_v22, %v5964_v4  ;;  %v5966_v0 = vld [vmem:[#allocation41_spill] sm:$0xff] }
 0x39a   : > { %2032 = vmatpush.bf16.msrb.mxu0 %v3245_v53  ;;  %1984 = vmatpush.bf16.msra.mxu3 %v3233_v26  ;;  %v3221_v53 = vor.u32 %v3404_v58, %v3218_v27  ;;  %v5970_v12 = vld [vmem:[#allocation37_spill] sm:$0xff] }
 0x39b   : > { %v1469_v18 = vmul.f32 1.442695, %v1448_v19  ;;  %v1303_v19 = vcvt.s32.f32 %v1301_v25 }
 0x39d   : > { %3599 = vpow2.f32 %v1469_v18  ;;  %v5969_v18 = vld [vmem:[#allocation46_spill] sm:$0xff] }
 0x39e   : > { %681 = vmatmul.bf16.gmra.mxu0 %v5963_v21  ;;  %1985 = vmatpush.bf16.msra.mxu3 %v3225_v2  ;;  %v5967_v2 = vld [vmem:[#allocation35_spill] sm:$0xff] }
 0x39f   : > { %730 = vmatmul.bf16.gmra.mxu1 %v5963_v21  ;;  %v3438_v21 = vld [vmem:[#allocation11 + $0x10] sm:$0xff]  ;;  %2033 = vmatpush.bf16.msrb.mxu0 %v3237_v42  ;;  %v1228_v42 = vcvt.f32.s32 %v4896_v13 }
 0x3a0   : > { %2226 = vmatpush.bf16.msrb.mxu1 %v3438_v21 }
 0x3a1   : > { %v1229_v27 = vshll.u32 %v1228_v42, 16  ;;  %v1242_v42 = vcvt.f32.s32 %v4926_v7 }
 0x3a2   : > { %1986 = vmatpush.bf16.msra.mxu3 %v3217_v57 }
 0x3a3   : > { %2034 = vmatpush.bf16.msrb.mxu0 %v3229_v39  ;;  %v5126_v8 = vpop.eup %3599 }
 0x3a4   : > { %2227 = vmatpush.bf16.msrb.mxu1 %v3437_v49  ;;  %v1747_v49 = vmul.f32 %v5967_v2, %v5966_v0  ;;  %v5131_v4 = vadd.f32 1.0, %v5126_v8  ;;  %v5971_v0 = vld [vmem:[#allocation49_spill] sm:$0xff] }
 0x3a6   : > { %3601 = vrcp.f32 %v5131_v4 }
 0x3a7   : > { %2035 = vmatpush.bf16.msrb.mxu0 %v3221_v53 }
 0x3a8   : > { %2228 = vmatpush.bf16.msrb.mxu1 %v3436_v14  ;;  %v5968_v14 = vld [vmem:[#allocation42_spill] sm:$0xff] }
 0x3c0   : > { %v1212_v40 = vpop.xlane.xlu0 %1211 }
 0x3c1   : > { %v1213_v26 = vcvt.f32.s32 %v1212_v40  ;;  %v1748_v40 = vmul.f32 %v5970_v12, %v5969_v18 }
 0x3c3   : > { %v1216_v21 = vadd.s32 %v1215_v38, %v1213_v26 }
 0x3c5   : > { %vm1427_vm5 = vcmp.eq.s32.totalorder %v4248_v1, %v1216_v21  ;;  %v1315_v21 = vand.u32 65535, %v4916_v54  ;;  %v5972_v54 = vld [vmem:[#allocation31_spill] sm:$0xff] }
 0x3c6   : > { %v3198_v39 = vsel %vm1427_vm5, 1.0, %v5941_v31  ;;  %vm1587_vm5 = vweird.f32 %v5131_v4 }
 0x3c7   : > { %v1843_v61 = vmul.f32 %v3198_v39, %v1747_v49  ;;  %v1317_v25 = vcvt.s32.f32 %v1315_v21 }
 0x3c8   : > { %v1226_v58 = vpop.xlane.xlu1 %1225 }
 0x3c9   : > { %v1227_v57 = vcvt.f32.s32 %v1226_v58  ;;  %v1859_v53 = vadd.f32 %v1843_v61, %v5968_v14  ;;  %v5145_v61 = vpop.eup %3601 }
 0x3ca   : > { %v1583_v18 = vmul.f32 %v5145_v61, %v5131_v4  ;;  %vm1588_vm1 = vweird.f32 %v5145_v61 }
 0x3cb   : > { %v1230_v13 = vadd.s32 %v1229_v27, %v1227_v57  ;;  %v1243_v27 = vshll.u32 %v1242_v42, 16 }
 0x3cc   : > { %v5133_v22 = vpop.xlane.xlu0 %1305  ;;  %v1584_v42 = vsub.f32 1.0, %v1583_v18 }
 0x3cd   : > { %vm1428_vm15 = vcmp.eq.s32.totalorder %v4248_v1, %v1230_v13  ;;  %vm1307_vm13 = vcmp.eq.f32.partialorder %v4908_v15, %v5133_v22 }
 0x3ce   : > { %v3199_v29 = vsel %vm1428_vm15, 1.0, %v5941_v31  ;;  %v1308_v38 = vsel %vm1307_vm13, %v1303_v19, inf  ;;  %vm5202_vm13 = vmor %vm1587_vm5, %vm1588_vm1 }
 0x3cf   : > { %v1844_v26 = vmul.f32 %v3199_v29, %v1748_v40  ;;  %1309 = vmin.xlane.f32.xlu2 %v1308_v38  ;;  %v5973_v29 = vld [vmem:[#allocation39_spill] sm:$0xff] }
 0x3d1   : > { %v1860_v2 = vadd.f32 %v1844_v26, %v5971_v0  ;;  %v1329_v0 = vand.u32 65535, %v4964_v23 }
 0x3d3   : > { %v1875_v49 = vpack.c.bf16 %v1860_v2, %v1859_v53  ;;  %v2863_v39 = vadd.f32 %v1860_v2, %v1859_v53  ;;  %v1331_v18 = vcvt.s32.f32 %v1329_v0  ;;  %v5976_v0 = vld [vmem:[#allocation33_spill] sm:$0xff] }
 0x3d4   : > { %v5147_v58 = vpop.xlane.xlu2 %1319  ;;  %v1240_v15 = vpop.xlane.xlu0 %1239 }
 0x3d5   : > { %v1164_v57 = vpop.xlane.xlu1 %1163  ;;  %v1241_v14 = vcvt.f32.s32 %v1240_v15  ;;  %1987 = vmatmul.bf16.vlgmr.msra.gmra.mxu3 %v1875_v49  ;;  %2036 = vmatmul.bf16.vlgmr.msrb.gmra.mxu0 %v1875_v49  ;;  %vm1321_vm3 = vcmp.eq.f32.partialorder %v4930_v17, %v5147_v58  ;;  %v1749_v17 = vmul.f32 %v5973_v29, %v4822_v50 }
 0x3d6   : > { %vm1183_vm8 = vcmp.eq.f32.partialorder %v4941_v46, %v1164_v57  ;;  %v1455_v7 = vsub.f32 %v1164_v57, %v5972_v54  ;;  %2229 = vmatmul.bf16.vlgmr.msrb.gmra.mxu1 %v1875_v49  ;;  %v1322_v53 = vsel %vm1321_vm3, %v1317_v25, inf  ;;  %v1256_v46 = vcvt.f32.s32 %v4944_v59  ;;  %v5974_v25 = vld [vmem:[#allocation32_spill] sm:$0xff] }
 0x3d7   : > { %v5154_v13 = vsel %vm1183_vm8, %v4248_v1, 128  ;;  %v1244_v19 = vadd.s32 %v1243_v27, %v1241_v14  ;;  %1323 = vmin.xlane.f32.xlu2 %v1322_v53  ;;  %v1585_v54 = vmul.f32 %v5145_v61, %v1584_v42  ;;  %v1343_v42 = vand.u32 65535, %v5006_v41 }
 0x3d8   : > { %v1483_v12 = vmul.f32 1.442695, %v1455_v7  ;;  %v1372_v40 = vshra.s32 %v5154_v13, 16  ;;  %v1257_v50 = vshll.u32 %v1256_v46, 16  ;;  %v1591_v41 = vand.u32 2147483647, %v5131_v4 }
 0x3d9   : > { %vm1429_vm6 = vcmp.eq.s32.totalorder %v4248_v1, %v1244_v19 }
 0x3da   : > { %3603 = vpow2.f32 %v1483_v12  ;;  %v3200_v38 = vsel %vm1429_vm6, 1.0, %v5941_v31  ;;  %v5164_v26 = vcvt.s32.f32 %v1372_v40  ;;  %v5975_v12 = vld [vmem:[#allocation43_spill] sm:$0xff]  ;;  %vm1592_vm8 = vcmp.eq.f32.partialorder %v1591_v41, 8.507059e+37 }
 0x3db   : > { %v1845_v21 = vmul.f32 %v3200_v38, %v1749_v17  ;;  %v1750_v40 = vmul.f32 %v5975_v12, %v4848_v16  ;;  %v1586_v38 = vadd.f32 %v5145_v61, %v1585_v54 }
 0x3dc   : > { %1375 = vmin.xlane.f32.xlu0 %v5164_v26 }
 0x3dd   : > { %v1170_v2 = vpop.xlane.xlu2 %1169  ;;  %v1254_v49 = vpop.xlane.xlu1 %1253  ;;  %v1861_v15 = vadd.f32 %v1845_v21, %v4838_v28 }
 0x3de   : > { %vm1186_vm12 = vcmp.eq.f32.partialorder %v4972_v34, %v1170_v2  ;;  %v1458_v59 = vsub.f32 %v1170_v2, %v5974_v25  ;;  %v1255_v27 = vcvt.f32.s32 %v1254_v49 }
 0x3df   : > { %v5172_v57 = vsel %vm1186_vm12, %v4248_v1, 128  ;;  %v2864_v14 = vadd.f32 %v2863_v39, %v1861_v15  ;;  %v1593_v39 = vand.u32 2147483648, %v5131_v4  ;;  %v1284_v4 = vcvt.f32.s32 %v5015_v10 }
 0x3e0   : > { %v5175_v7 = vpop.eup %3603  ;;  %v1489_v53 = vmul.f32 1.442695, %v1458_v59  ;;  %v1258_v23 = vadd.s32 %v1257_v50, %v1255_v27  ;;  %v5177_v19 = vpop.xlane.xlu0 %1333  ;;  %v1414_v28 = vshra.s32 %v5172_v57, 16  ;;  %v1357_v10 = vand.u32 65535, %v5043_v43 }
 0x3e1   : > { %v5181_v34 = vadd.f32 1.0, %v5175_v7  ;;  %vm1335_vm14 = vcmp.eq.f32.partialorder %v4976_v33, %v5177_v19  ;;  %v1270_v33 = vcvt.f32.s32 %v4984_v32  ;;  %v1590_v32 = vsel %vm5202_vm13, %v5145_v61, %v1586_v38 }
 0x3e2   : > { %3605 = vpow2.f32 %v1489_v53  ;;  %vm1430_vm9 = vcmp.eq.s32.totalorder %v4248_v1, %v1258_v23  ;;  %v5189_v29 = vcvt.s32.f32 %v1414_v28  ;;  %v1336_v17 = vsel %vm1335_vm14, %v1331_v18, inf }
 0x3e3   : > { %3607 = vrcp.f32 %v5181_v34  ;;  %v3201_v46 = vsel %vm1430_vm9, 1.0, %v5941_v31  ;;  %v1594_v59 = vor.u32 1.1754944e-38, %v1593_v39  ;;  %v1271_v18 = vshll.u32 %v1270_v33, 16 }
 0x3e4   : > { %v1846_v16 = vmul.f32 %v3201_v46, %v1750_v40  ;;  %1417 = vmin.xlane.f32.xlu2 %v5189_v29  ;;  %1337 = vmin.xlane.f32.xlu0 %v1336_v17  ;;  %v1345_v17 = vcvt.s32.f32 %v1343_v42  ;;  %vm1692_vm9 = vweird.f32 %v5181_v34 }
 0x3e5   : > { %v1168_v21 = vpop.xlane.xlu1 %1167  ;;  %v1595_v46 = vsel %vm1592_vm8, %v1594_v59, %v1590_v32 }
 0x3e6   : > { %vm1185_vm15 = vcmp.eq.f32.partialorder %v5001_v11, %v1168_v21  ;;  %v1457_v2 = vsub.f32 %v1168_v21, %v5976_v0  ;;  %v1862_v49 = vadd.f32 %v1846_v16, %v4851_v48  ;;  %v5979_v16 = vld [vmem:[#allocation47_spill] sm:$0xff]  ;;  %v1285_v21 = vshll.u32 %v1284_v4, 16 }
 0x3e7   : > { %v5207_v25 = vsel %vm1185_vm15, %v4248_v1, 128  ;;  %v1751_v33 = vmul.f32 %v5979_v16, %v4867_v44  ;;  %v1752_v43 = vmul.f32 %v5126_v8, %v1595_v46  ;;  %v1298_v44 = vcvt.f32.s32 %v5066_v3 }
 0x3e8   : > { %v5213_v27 = vpop.eup %3605  ;;  %v1487_v11 = vmul.f32 1.442695, %v1457_v2  ;;  %v1268_v54 = vpop.xlane.xlu0 %1267  ;;  %v1876_v53 = vpack.c.bf16 %v1862_v49, %v1861_v15  ;;  %v2865_v48 = vadd.f32 %v2864_v14, %v1862_v49  ;;  %v1400_v23 = vshra.s32 %v5207_v25, 16 }
 0x3e9   : > { %v5216_v28 = vpop.eup %3607  ;;  %v5219_v12 = vadd.f32 1.0, %v5213_v27  ;;  %v5221_v40 = vpop.xlane.xlu2 %1347  ;;  %v1269_v61 = vcvt.f32.s32 %v1268_v54  ;;  %v3187_v49 = vsel %vm1112_vm0, 1.0, %v5941_v31  ;;  %v1359_v54 = vcvt.s32.f32 %v1357_v10 }
 0x3ea   : > { %3609 = vpow2.f32 %v1487_v11  ;;  %1992 = vmatmul.bf16.gmra.mxu3 %v1876_v53  ;;  %2041 = vmatmul.bf16.gmra.mxu0 %v1876_v53  ;;  %v5224_v39 = vcvt.s32.f32 %v1400_v23  ;;  %vm1349_vm3 = vcmp.eq.f32.partialorder %v5021_v24, %v5221_v40  ;;  %v1688_v38 = vmul.f32 %v5216_v28, %v5181_v34 }
 0x3eb   : > { %3611 = vrcp.f32 %v5219_v12  ;;  %v1272_v15 = vadd.s32 %v1271_v18, %v1269_v61  ;;  %2234 = vmatmul.bf16.gmra.mxu1 %v1876_v53  ;;  %v1350_v14 = vsel %vm1349_vm3, %v1345_v17, inf  ;;  %v1696_v53 = vand.u32 2147483647, %v5181_v34 }
 0x3ec   : > { %1403 = vmin.xlane.f32.xlu1 %v5224_v39  ;;  %1351 = vmin.xlane.f32.xlu0 %v1350_v14  ;;  %v1689_v32 = vsub.f32 1.0, %v1688_v38  ;;  %v1698_v61 = vand.u32 2147483648, %v5181_v34  ;;  %vm1693_vm14 = vweird.f32 %v5216_v28  ;;  %v1800_v10 = vmul.f32 %v3187_v49, %v1595_v46 }
 0x3ed   : > { %vm1431_vm6 = vcmp.eq.s32.totalorder %v4248_v1, %v1272_v15  ;;  %v1282_v24 = vpop.xlane.xlu1 %1281  ;;  %v1299_v16 = vshll.u32 %v1298_v44, 16  ;;  %vm1697_vm1 = vcmp.eq.f32.partialorder %v1696_v53, 8.507059e+37  ;;  %vm1694_vm5 = vmor %vm1692_vm9, %vm1693_vm14  ;;  %v1741_v46 = vand.u32 2147483647, %v5219_v12 }
 0x3ee   : > { %v3202_v42 = vsel %vm1431_vm6, 1.0, %v5941_v31  ;;  %v1283_v0 = vcvt.f32.s32 %v1282_v24  ;;  %v1690_v17 = vmul.f32 %v5216_v28, %v1689_v32  ;;  %vm1737_vm15 = vweird.f32 %v5219_v12 }
 0x3ef   : > { %v1847_v50 = vmul.f32 %v3202_v42, %v1751_v33  ;;  %v1699_v42 = vor.u32 1.1754944e-38, %v1698_v61  ;;  %vm1742_vm8 = vcmp.eq.f32.partialorder %v1741_v46, 8.507059e+37 }
 0x3f0   : > { %v5242_v41 = vpop.eup %3609  ;;  %v1286_v59 = vadd.s32 %v1285_v21, %v1283_v0  ;;  %v5245_v11 = vpop.xlane.xlu0 %1361  ;;  %v1691_v38 = vadd.f32 %v5216_v28, %v1690_v17  ;;  %v1743_v0 = vand.u32 2147483648, %v5219_v12 }
 0x3f1   : > { %v3612_v23 = vpop.eup %3611  ;;  %v5249_v18 = vadd.f32 1.0, %v5242_v41  ;;  %vm1363_vm0 = vcmp.eq.f32.partialorder %v5060_v47, %v5245_v11  ;;  %v1863_v8 = vadd.f32 %v1847_v50, %v4875_v63  ;;  %v3194_v63 = vsel %vm1119_vm4, 1.0, %v5941_v31 }
 0x3f2   : > { %vm1432_vm12 = vcmp.eq.s32.totalorder %v4248_v1, %v1286_v59  ;;  %v1364_v3 = vsel %vm1363_vm0, %v1359_v54, inf  ;;  %v1733_v4 = vmul.f32 %v3612_v23, %v5219_v12  ;;  %v1695_v62 = vsel %vm1694_vm5, %v5216_v28, %v1691_v38 }
 0x3f3   : > { %3613 = vrcp.f32 %v5249_v18  ;;  %v3203_v15 = vsel %vm1432_vm12, 1.0, %v5941_v31  ;;  %v2866_v14 = vadd.f32 %v2865_v48, %v1863_v8  ;;  %vm1738_vm4 = vweird.f32 %v3612_v23 }
 0x3f4   : > { %v1848_v47 = vmul.f32 %v3203_v15, %v1752_v43  ;;  %1365 = vmin.xlane.f32.xlu1 %v1364_v3  ;;  %v1734_v24 = vsub.f32 1.0, %v1733_v4  ;;  %v5272_v32 = vsel %vm1697_vm1, %v1699_v42, %v1695_v62  ;;  %v1753_v28 = vmul.f32 %v4853_v20, %v4881_v9  ;;  %vm1739_vm3 = vmor %vm1737_vm15, %vm1738_vm4  ;;  %v5312_v42 = vpop.f32.mrf.mxu0  ;;  %v3424_v62 = vld [vmem:[#allocation10 + $0x20] sm:$0xff] }
 0x3f5   : > { %v1296_v33 = vpop.xlane.xlu1 %1295  ;;  %v5276_v59 = vmul.f32 %v3194_v63, %v5272_v32  ;;  %v1744_v54 = vor.u32 1.1754944e-38, %v1743_v0  ;;  %v3197_v12 = vsel %vm1122_vm11, 1.0, %v5941_v31  ;;  %v1385_v20 = vand.u32 65535, %v5096_v6  ;;  %v3425_v0 = vld [vmem:[#allocation10 + $0x28] sm:$0xff] }
 0x3f6   : > { %v1297_v21 = vcvt.f32.s32 %v1296_v33  ;;  %v1864_v48 = vadd.f32 %v1848_v47, %v1800_v10  ;;  %v1735_v2 = vmul.f32 %v3612_v23, %v1734_v24  ;;  %v1726_v63 = vand.u32 2147483647, %v5249_v18 }
 0x3f7   : > { %v1387_v60 = vcvt.s32.f32 %v1385_v20  ;;  %vm1722_vm0 = vweird.f32 %v5249_v18 }
 0x3f8   : > { %v1300_v49 = vadd.s32 %v1299_v16, %v1297_v21  ;;  %v1877_v50 = vpack.c.bf16 %v1864_v48, %v1863_v8  ;;  %v5270_v43 = vadd.f32 %v2866_v14, %v1864_v48  ;;  %v1736_v44 = vadd.f32 %v3612_v23, %v1735_v2  ;;  %v3426_v21 = vld [vmem:[#allocation10 + $0x30] sm:$0xff] }
 0x3f9   : > { %v3614_v34 = vpop.eup %3613  ;;  %v1728_v14 = vand.u32 2147483648, %v5249_v18  ;;  %vm1727_vm14 = vcmp.eq.f32.partialorder %v1726_v63, 8.507059e+37  ;;  %v3196_v16 = vsel %vm1121_vm2, 1.0, %v5941_v31 }
 0x3fa   : > { %vm1433_vm13 = vcmp.eq.s32.totalorder %v4248_v1, %v1300_v49  ;;  %1997 = vmatmul.bf16.gmra.mxu3 %v1877_v50  ;;  %2046 = vmatmul.bf16.gmra.mxu0 %v1877_v50  ;;  %v1718_v53 = vmul.f32 %v3614_v34, %v5249_v18  ;;  %v1740_v61 = vsel %vm1739_vm3, %v3612_v23, %v1736_v44  ;;  %vm1723_vm6 = vweird.f32 %v3614_v34  ;;  %v5981_v18 = vld [vmem:[#allocation27_spill] sm:$0xff] }
 0x3fb   : > { %v3204_v8 = vsel %vm1433_vm13, 1.0, %v5941_v31  ;;  %2239 = vmatmul.bf16.gmra.mxu1 %v1877_v50  ;;  %v5288_v9 = vsel %vm1742_vm8, %v1744_v54, %v1740_v61  ;;  %vm1724_vm12 = vmor %vm1722_vm0, %vm1723_vm6  ;;  %v1729_v38 = vor.u32 1.1754944e-38, %v1728_v14  ;;  %v1453_v48 = vsub.f32 %v4988_v36, %v5981_v18  ;;  %v3422_v50 = vld [vmem:[#allocation10 + $0x10] sm:$0xff]  ;;  %v3421_v44 = vld [vmem:[#allocation10 + $0x8] sm:$0xff] }
 0x3fc   : > { %v1849_v3 = vmul.f32 %v3204_v8, %v1753_v28  ;;  %v1719_v17 = vsub.f32 1.0, %v1718_v53  ;;  %v5291_v4 = vmul.f32 %v3197_v12, %v5288_v9  ;;  %v5314_v46 = vpop.f32.mrf.mxu0  ;;  %v1326_v12 = vcvt.f32.s32 %v5147_v58 }
 0x3fd   : > { %v1479_v2 = vmul.f32 1.442695, %v1453_v48  ;;  %v1371_v58 = vand.u32 65535, %v5154_v13 }
 0x3fe   : > { %v1865_v15 = vadd.f32 %v1849_v3, %v4884_v37  ;;  %v1720_v23 = vmul.f32 %v3614_v34, %v1719_v17  ;;  %v3420_v3 = vld [vmem:[#allocation10] sm:$0xff]  ;;  %v1327_v14 = vshll.u32 %v1326_v12, 16 }
 0x3ff   : > { %3615 = vpow2.f32 %v1479_v2  ;;  %v1413_v2 = vand.u32 65535, %v5172_v57 }
 0x400   : > { %v5296_v47 = vpop.xlane.xlu1 %1389  ;;  %v1721_v6 = vadd.f32 %v3614_v34, %v1720_v23 }
 0x401   : > { %vm1391_vm11 = vcmp.eq.f32.partialorder %v5102_v56, %v5296_v47  ;;  %v3427_v56 = vld [vmem:[#allocation10 + $0x38] sm:$0xff] }
 0x402   : > { %v1392_v10 = vsel %vm1391_vm11, %v1387_v60, inf  ;;  %v1725_v37 = vsel %vm1724_vm12, %v3614_v34, %v1721_v6  ;;  %2366 = vmatpush.bf16.msrb.mxu2 %v3427_v56  ;;  %v1312_v34 = vcvt.f32.s32 %v5133_v22  ;;  %v1754_v22 = vmul.f32 %v4918_v30, %v5018_v55  ;;  %v5982_v6 = vld [vmem:[#allocation36_spill] sm:$0xff] }
 0x403   : > { %1393 = vmin.xlane.f32.xlu0 %v1392_v10  ;;  %v5305_v33 = vsel %vm1727_vm14, %v1729_v38, %v1725_v37  ;;  %v2868_v38 = vadd.f32 %v5270_v43, %v1865_v15  ;;  %v1373_v43 = vcvt.s32.f32 %v1371_v58 }
 0x404   : > { %v5308_v24 = vmul.f32 %v3196_v16, %v5305_v33  ;;  %v1313_v54 = vshll.u32 %v1312_v34, 16  ;;  %v5323_v8 = vpop.f32.mrf.mxu0 }
 0x405   : > { %v5316_v49 = vpop.eup %3615 }
 0x406   : > { %2367 = vmatpush.bf16.msrb.mxu2 %v3426_v21  ;;  %v5320_v36 = vadd.f32 1.0, %v5316_v49  ;;  %v5983_v21 = vld [vmem:[#allocation51_spill] sm:$0xff] }
 0x407   : > { %v1755_v18 = vmul.f32 %v5983_v21, %v5063_v35 }
 0x408   : > { %3617 = vrcp.f32 %v5320_v36  ;;  %vm1662_vm13 = vweird.f32 %v5320_v36 }
 0x40a   : > { %2368 = vmatpush.bf16.msrb.mxu2 %v3425_v0 }
 0x40c   : > { %v5337_v56 = vpop.f32.mrf.mxu0 }
 0x40e   : > { %2369 = vmatpush.bf16.msrb.mxu2 %v3424_v62  ;;  %v5330_v63 = vpop.eup %3617 }
 0x40f   : > { %v1658_v55 = vmul.f32 %v5330_v63, %v5320_v36  ;;  %vm1663_vm4 = vweird.f32 %v5330_v63 }
 0x410   : > { %vm5379_vm3 = vmor %vm1662_vm13, %vm1663_vm4 }
 0x411   : > { %v1659_v62 = vsub.f32 1.0, %v1658_v55 }
 0x412   : > { %2370 = vmatpush.bf16.msrb.mxu2 %v3423_v5  ;;  %v1340_v5 = vcvt.f32.s32 %v5177_v19 }
 0x414   : > { %v1341_v12 = vshll.u32 %v1340_v5, 16 }
 0x416   : > { %2371 = vmatpush.bf16.msrb.mxu2 %v3422_v50  ;;  %v5350_v50 = vld [vmem:[#allocation7] sm:$0x7] }
 0x417   : > { %v5353_v34 = vperm.slane %v5350_v50, 0 }
 0x419   : > { %v650_v19 = vadd.f32 %v5314_v46, %v5353_v34 }
 0x41a   : > { %2372 = vmatpush.bf16.msrb.mxu2 %v3421_v44 }
 0x41e   : > { %2373 = vmatpush.bf16.msrb.mxu2 %v3420_v3 }
 0x442   : > { %v1310_v28 = vpop.xlane.xlu2 %1309 }
 0x443   : > { %v1311_v53 = vcvt.f32.s32 %v1310_v28  ;;  %v5355_v28 = vpop.f32.mrf.mxu1 }
 0x445   : > { %v1314_v61 = vadd.s32 %v1313_v54, %v1311_v53 }
 0x447   : > { %vm1434_vm2 = vcmp.eq.s32.totalorder %v4248_v1, %v1314_v61  ;;  %v1415_v61 = vcvt.s32.f32 %v1413_v2 }
 0x448   : > { %v3205_v20 = vsel %vm1434_vm2, 1.0, %v5941_v31 }
 0x449   : > { %v1850_v17 = vmul.f32 %v3205_v20, %v1754_v22  ;;  %v5366_v22 = vpop.f32.mrf.mxu0 }
 0x44a   : > { %v1324_v23 = vpop.xlane.xlu2 %1323 }
 0x44b   : > { %v1325_v60 = vcvt.f32.s32 %v1324_v23  ;;  %v1866_v10 = vadd.f32 %v1850_v17, %v5982_v6  ;;  %v1666_v23 = vand.u32 2147483647, %v5320_v36  ;;  %v5984_v6 = vld [vmem:[#allocation28_spill] sm:$0xff] }
 0x44c   : > { %v1756_v46 = vmul.f32 %v5984_v6, %v5086_v52 }
 0x44d   : > { %v1328_v37 = vadd.s32 %v1327_v14, %v1325_v60  ;;  %v1878_v16 = vpack.c.bf16 %v1866_v10, %v1865_v15  ;;  %v2869_v30 = vadd.f32 %v2868_v38, %v1866_v10  ;;  %v1668_v60 = vand.u32 2147483648, %v5320_v36 }
 0x44e   : > { %v787_v38 = vmax.f32 %v650_v19, 0.0  ;;  %vm1667_vm8 = vcmp.eq.f32.partialorder %v1666_v23, 8.507059e+37  ;;  %v3434_v23 = vld [vmem:[#allocation10 + $0x70] sm:$0xff] }
 0x44f   : > { %vm1435_vm9 = vcmp.eq.s32.totalorder %v4248_v1, %v1328_v37  ;;  %v5342_v48 = vpop.xlane.xlu0 %1375  ;;  %2002 = vmatmul.bf16.gmra.mxu3 %v1878_v16  ;;  %2051 = vmatmul.bf16.gmra.mxu0 %v1878_v16  ;;  %v1669_v52 = vor.u32 1.1754944e-38, %v1668_v60  ;;  %v653_v37 = vadd.f32 %v5323_v8, %v5353_v34  ;;  %v3431_v8 = vld [vmem:[#allocation10 + $0x58] sm:$0xff] }
 0x450   : > { %v3206_v13 = vsel %vm1435_vm9, 1.0, %v5941_v31  ;;  %2244 = vmatmul.bf16.gmra.mxu1 %v1878_v16  ;;  %vm1377_vm1 = vcmp.eq.f32.partialorder %v5164_v26, %v5342_v48  ;;  %v1660_v26 = vmul.f32 %v5330_v63, %v1659_v62 }
 0x451   : > { %v1851_v15 = vmul.f32 %v3206_v13, %v1755_v18  ;;  %v1378_v0 = vsel %vm1377_vm1, %v1373_v43, inf  ;;  %v3435_v13 = vld [vmem:[#allocation10 + $0x78] sm:$0xff] }
 0x452   : > { %1379 = vmin.xlane.f32.xlu2 %v1378_v0  ;;  %v1661_v14 = vadd.f32 %v5330_v63, %v1660_v26  ;;  %2415 = vmatpush.bf16.msrb.mxu3 %v3435_v13 }
 0x453   : > { %v1867_v35 = vadd.f32 %v1851_v15, %v5076_v45  ;;  %v648_v45 = vadd.f32 %v5312_v42, %v5353_v34  ;;  %v1354_v42 = vcvt.f32.s32 %v5221_v40  ;;  %v5391_v15 = vpop.f32.mrf.mxu1 }
 0x455   : > { %v2870_v44 = vadd.f32 %v2869_v30, %v1867_v35  ;;  %v785_v10 = vmax.f32 %v648_v45, 0.0  ;;  %v1355_v36 = vshll.u32 %v1354_v42, 16  ;;  %v5989_v42 = vld [vmem:[#allocation22_spill] sm:$0xff] }
 0x456   : > { %2416 = vmatpush.bf16.msrb.mxu3 %v3434_v23 }
 0x457   : > { %v5358_v54 = vpop.xlane.xlu2 %1417  ;;  %v1338_v53 = vpop.xlane.xlu0 %1337 }
 0x458   : > { %v1339_v57 = vcvt.f32.s32 %v1338_v53  ;;  %v1988_v3 = vpop.f32.mrf.mxu3  ;;  %vm1419_vm5 = vcmp.eq.f32.partialorder %v5189_v29, %v5358_v54  ;;  %v1399_v29 = vand.u32 65535, %v5207_v25  ;;  %v1665_v25 = vsel %vm5379_vm3, %v5330_v63, %v1661_v14 }
 0x459   : > { %v1420_v20 = vsel %vm1419_vm5, %v1415_v61, inf  ;;  %v2077_v0 = vmul.f32 %v1988_v3, %v785_v10  ;;  %v1670_v62 = vsel %vm1667_vm8, %v1669_v52, %v1665_v25  ;;  %v659_v61 = vpop.f32.mrf.mxu0  ;;  %v3192_v3 = vsel %vm1117_vm7, 1.0, %v5941_v31  ;;  %v5990_v52 = vld [vmem:[#allocation23_spill] sm:$0xff] }
 0x45a   : > { %v1342_v17 = vadd.s32 %v1341_v12, %v1339_v57  ;;  %1421 = vmin.xlane.f32.xlu2 %v1420_v20  ;;  %v1401_v55 = vcvt.s32.f32 %v1399_v29  ;;  %v1368_v57 = vcvt.f32.s32 %v5245_v11  ;;  %v5988_v29 = vld [vmem:[#allocation38_spill] sm:$0xff] }
 0x45b   : > { %v5401_v60 = vpop.f32.mrf.mxu1  ;;  %v1758_v6 = vmul.f32 %v5989_v42, %v5988_v29 }
 0x45c   : > { %vm1436_vm15 = vcmp.eq.s32.totalorder %v4248_v1, %v1342_v17  ;;  %v1369_v20 = vshll.u32 %v1368_v57, 16 }
 0x45d   : > { %v3207_v58 = vsel %vm1436_vm15, 1.0, %v5941_v31 }
 0x45e   : > { %v1852_v16 = vmul.f32 %v3207_v58, %v1756_v46  ;;  %v3433_v46 = vld [vmem:[#allocation10 + $0x68] sm:$0xff] }
 0x45f   : > { %v5386_v40 = vpop.xlane.xlu1 %1403  ;;  %v1352_v30 = vpop.xlane.xlu0 %1351  ;;  %2417 = vmatpush.bf16.msrb.mxu3 %v3433_v46  ;;  %v3430_v46 = vld [vmem:[#allocation10 + $0x50] sm:$0xff] }
 0x460   : > { %v1353_v21 = vcvt.f32.s32 %v1352_v30  ;;  %v1990_v18 = vpop.f32.mrf.mxu3  ;;  %vm1405_vm6 = vcmp.eq.f32.partialorder %v5224_v39, %v5386_v40  ;;  %v1868_v43 = vadd.f32 %v1852_v16, %v5099_v51  ;;  %v1757_v39 = vmul.f32 %v5316_v49, %v1670_v62 }
 0x461   : > { %v2079_v63 = vmul.f32 %v1990_v18, %v787_v38  ;;  %v1406_v2 = vsel %vm1405_vm6, %v1401_v55, inf  ;;  %v5406_v10 = vpop.f32.mrf.mxu0  ;;  %v655_v16 = vadd.f32 %v5337_v56, %v5353_v34  ;;  %v3432_v55 = vld [vmem:[#allocation10 + $0x60] sm:$0xff] }
 0x462   : > { %v1356_v5 = vadd.s32 %v1355_v36, %v1353_v21  ;;  %1407 = vmin.xlane.f32.xlu1 %v1406_v2  ;;  %v1879_v26 = vpack.c.bf16 %v1868_v43, %v1867_v35  ;;  %v2871_v53 = vadd.f32 %v2870_v44, %v1868_v43  ;;  %v1805_v44 = vmul.f32 %v3192_v3, %v1670_v62 }
 0x463   : > { %v2109_v12 = vpack.c.bf16 %v2079_v63, %v2077_v0  ;;  %v789_v36 = vmax.f32 %v653_v37, 0.0  ;;  %v791_v21 = vmax.f32 %v655_v16, 0.0  ;;  %v5416_v13 = vpop.f32.mrf.mxu1  ;;  %2418 = vmatpush.bf16.msrb.mxu3 %v3432_v55  ;;  %v1396_v37 = vcvt.f32.s32 %v5296_v47 }
 0x464   : > { %vm1437_vm11 = vcmp.eq.s32.totalorder %v4248_v1, %v1356_v5  ;;  %2007 = vmatmul.bf16.gmra.mxu3 %v1879_v26  ;;  %2056 = vmatmul.bf16.gmra.mxu0 %v1879_v26 }
 0x465   : > { %v3208_v45 = vsel %vm1437_vm11, 1.0, %v5941_v31  ;;  %2249 = vmatmul.bf16.gmra.mxu1 %v1879_v26  ;;  %2374 = vmatmul.bf16.vlgmr.msrb.gmra.mxu2 %v2109_v12  ;;  %v658_v26 = vadd.f32 %v5366_v22, %v5353_v34 }
 0x466   : > { %v1853_v35 = vmul.f32 %v3208_v45, %v1757_v39 }
 0x467   : > { %v1366_v19 = vpop.xlane.xlu1 %1365  ;;  %2419 = vmatpush.bf16.msrb.mxu3 %v3431_v8  ;;  %v793_v57 = vmax.f32 %v658_v26, 0.0 }
 0x468   : > { %v1367_v11 = vcvt.f32.s32 %v1366_v19  ;;  %v1869_v17 = vadd.f32 %v1853_v35, %v1805_v44  ;;  %v5991_v19 = vld [vmem:[#allocation30_spill] sm:$0xff] }
 0x469   : > { %v5418_v63 = vpop.f32.mrf.mxu0 }
 0x46a   : > { %v1370_v49 = vadd.s32 %v1369_v20, %v1367_v11  ;;  %v2872_v14 = vadd.f32 %v2871_v53, %v1869_v17  ;;  %v660_v53 = vadd.f32 %v659_v61, %v5353_v34  ;;  %v5992_v20 = vld [vmem:[#allocation29_spill] sm:$0xff] }
 0x46b   : > { %v1456_v11 = vsub.f32 %v5992_v20, %v5991_v19  ;;  %2420 = vmatpush.bf16.msrb.mxu3 %v3430_v46  ;;  %v5442_v47 = vpop.f32.mrf.mxu1  ;;  %v3195_v20 = vsel %vm1120_vm10, 1.0, %v5941_v31 }
 0x46c   : > { %vm1438_vm7 = vcmp.eq.s32.totalorder %v4248_v1, %v1370_v49  ;;  %v795_v39 = vmax.f32 %v660_v53, 0.0 }
 0x46d   : > { %v3209_v38 = vsel %vm1438_vm7, 1.0, %v5941_v31  ;;  %v1993_v58 = vpop.f32.mrf.mxu3  ;;  %v1485_v49 = vmul.f32 1.442695, %v1456_v11 }
 0x46e   : > { %v1854_v25 = vmul.f32 %v3209_v38, %v1758_v6  ;;  %v2081_v62 = vmul.f32 %v1993_v58, %v789_v36 }
 0x46f   : > { %3619 = vpow2.f32 %v1485_v49 }
 0x470   : > { %v1870_v30 = vadd.f32 %v1854_v25, %v5990_v52 }
 0x471   : > { %v5423_v12 = vpop.f32.mrf.mxu0 }
 0x472   : > { %v1880_v18 = vpack.c.bf16 %v1870_v30, %v1869_v17  ;;  %v5414_v43 = vadd.f32 %v2872_v14, %v1870_v30  ;;  %v1397_v30 = vshll.u32 %v1396_v37, 16 }
 0x474   : > { %2012 = vmatmul.bf16.gmra.mxu3 %v1880_v18  ;;  %2061 = vmatmul.bf16.gmra.mxu0 %v1880_v18 }
 0x475   : > { %2254 = vmatmul.bf16.gmra.mxu1 %v1880_v18  ;;  %v1995_v0 = vpop.f32.mrf.mxu3  ;;  %v3620_v61 = vpop.eup %3619 }
 0x476   : > { %v2083_v56 = vmul.f32 %v1995_v0, %v791_v21  ;;  %v1504_v14 = vadd.f32 1.0, %v3620_v61  ;;  %v1394_v58 = vpop.xlane.xlu0 %1393  ;;  %v1382_v0 = vcvt.f32.s32 %v5342_v48 }
 0x477   : > { %v1395_v25 = vcvt.f32.s32 %v1394_v58 }
 0x478   : > { %v2111_v2 = vpack.c.bf16 %v2083_v56, %v2081_v62  ;;  %3621 = vrcp.f32 %v1504_v14  ;;  %v1713_v36 = vand.u32 2147483648, %v1504_v14  ;;  %vm1707_vm12 = vweird.f32 %v1504_v14 }
 0x479   : > { %v5425_v44 = vpop.f32.mrf.mxu0  ;;  %v1711_v21 = vand.u32 2147483647, %v1504_v14  ;;  %v1398_v18 = vadd.s32 %v1397_v30, %v1395_v25  ;;  %v1762_v25 = vmul.f32 %v5213_v27, %v5288_v9 }
 0x47a   : > { %2379 = vmatmul.bf16.gmra.mxu2 %v2111_v2  ;;  %v1714_v62 = vor.u32 1.1754944e-38, %v1713_v36 }
 0x47b   : > { %vm1712_vm2 = vcmp.eq.f32.partialorder %v1711_v21, 8.507059e+37  ;;  %vm1440_vm9 = vcmp.eq.s32.totalorder %v4248_v1, %v1398_v18 }
 0x47d   : > { %v1998_v5 = vpop.f32.mrf.mxu3 }
 0x47e   : > { %v2085_v3 = vmul.f32 %v1998_v5, %v793_v57  ;;  %v3622_v29 = vpop.eup %3621  ;;  %v1383_v5 = vshll.u32 %v1382_v0, 16  ;;  %v3211_v57 = vsel %vm1440_vm9, 1.0, %v5941_v31 }
 0x47f   : > { %v1703_v42 = vmul.f32 %v3622_v29, %v1504_v14  ;;  %vm1708_vm0 = vweird.f32 %v3622_v29 }
 0x480   : > { %vm1709_vm14 = vmor %vm1707_vm12, %vm1708_vm0 }
 0x481   : > { %v5429_v17 = vpop.f32.mrf.mxu0  ;;  %v1704_v38 = vsub.f32 1.0, %v1703_v42 }
 0x483   : > { %v1705_v16 = vmul.f32 %v3622_v29, %v1704_v38 }
 0x485   : > { %v2000_v51 = vpop.f32.mrf.mxu3  ;;  %v1706_v55 = vadd.f32 %v3622_v29, %v1705_v16  ;;  %v1410_v16 = vcvt.f32.s32 %v5386_v40  ;;  %v665_v40 = vadd.f32 %v5418_v63, %v5353_v34 }
 0x486   : > { %v2087_v45 = vmul.f32 %v2000_v51, %v795_v39 }
 0x487   : > { %v1710_v8 = vsel %vm1709_vm14, %v3622_v29, %v1706_v55  ;;  %v1411_v27 = vshll.u32 %v1410_v16, 16 }
 0x488   : > { %v2113_v35 = vpack.c.bf16 %v2087_v45, %v2085_v3  ;;  %v1715_v56 = vsel %vm1712_vm2, %v1714_v62, %v1710_v8  ;;  %v1424_v3 = vcvt.f32.s32 %v5358_v54  ;;  %v1759_v45 = vmul.f32 %v5175_v7, %v5272_v32  ;;  %v5457_v7 = vpop.f32.mrf.mxu1 }
 0x489   : > { %v5431_v22 = vpop.f32.mrf.mxu0  ;;  %v1760_v39 = vmul.f32 %v3620_v61, %v1715_v56  ;;  %v1808_v14 = vmul.f32 %v3195_v20, %v1715_v56 }
 0x48a   : > { %2384 = vmatmul.bf16.gmra.mxu2 %v2113_v35  ;;  %v3429_v35 = vld [vmem:[#allocation10 + $0x48] sm:$0xff]  ;;  %v1425_v29 = vshll.u32 %v1424_v3, 16 }
 0x48b   : > { %v1856_v48 = vmul.f32 %v3211_v57, %v1760_v39  ;;  %2421 = vmatpush.bf16.msrb.mxu3 %v3429_v35  ;;  %v5478_v35 = vperm.slane %v5350_v50, 1 }
 0x48d   : > { %v1872_v46 = vadd.f32 %v1856_v48, %v1808_v14  ;;  %v697_v20 = vadd.f32 %v5355_v28, %v5478_v35 }
 0x48f   : > { %v786_v50 = vmax.f32 %v697_v20, 0.0 }
 0x490   : > { %v5470_v56 = vpop.f32.mrf.mxu1 }
 0x491   : > { %v5433_v23 = vpop.f32.mrf.mxu0 }
 0x499   : > { %v5435_v6 = vpop.f32.mrf.mxu0 }
 0x4a1   : > { %v5438_v52 = vpop.f32.mrf.mxu0 }
 0x4a9   : > { %v5444_v53 = vpop.f32.mrf.mxu0 }
 0x4b1   : > { %v2037_v37 = vpop.f32.mrf.mxu0 }
 0x4b2   : > { %v2078_v28 = vmul.f32 %v2037_v37, %v786_v50 }
 0x4c5   : > { %v1380_v2 = vpop.xlane.xlu2 %1379 }
 0x4c6   : > { %v1381_v26 = vcvt.f32.s32 %v1380_v2  ;;  %v799_v2 = vmax.f32 %v665_v40, 0.0  ;;  %v673_v40 = vadd.f32 %v5429_v17, %v5353_v34  ;;  %v707_v17 = vadd.f32 %v5442_v47, %v5478_v35 }
 0x4c8   : > { %v1384_v51 = vadd.s32 %v1383_v5, %v1381_v26  ;;  %v1761_v5 = vmul.f32 %v5242_v41, %v5305_v33 }
 0x4ca   : > { %vm1439_vm1 = vcmp.eq.s32.totalorder %v4248_v1, %v1384_v51 }
 0x4cb   : > { %v3210_v11 = vsel %vm1439_vm1, 1.0, %v5941_v31 }
 0x4cc   : > { %v1855_v49 = vmul.f32 %v3210_v11, %v1759_v45 }
 0x4cd   : > { %v1422_v61 = vpop.xlane.xlu2 %1421 }
 0x4ce   : > { %v1423_v54 = vcvt.f32.s32 %v1422_v61  ;;  %v1871_v42 = vadd.f32 %v1855_v49, %v5276_v59  ;;  %v3428_v59 = vld [vmem:[#allocation10 + $0x40] sm:$0xff]  ;;  %v668_v61 = vadd.f32 %v5423_v12, %v5353_v34  ;;  %v704_v12 = vadd.f32 %v5416_v13, %v5478_v35 }
 0x4cf   : > { %2422 = vmatpush.bf16.msrb.mxu3 %v3428_v59 }
 0x4d0   : > { %v1426_v32 = vadd.s32 %v1425_v29, %v1423_v54  ;;  %v1881_v38 = vpack.c.bf16 %v1872_v46, %v1871_v42  ;;  %v2874_v58 = vadd.f32 %v5414_v43, %v1871_v42  ;;  %v663_v43 = vadd.f32 %v5406_v10, %v5353_v34  ;;  %v2039_v10 = vpop.f32.mrf.mxu0 }
 0x4d1   : > { %v670_v29 = vadd.f32 %v5425_v44, %v5353_v34  ;;  %v702_v44 = vadd.f32 %v5401_v60, %v5478_v35  ;;  %v792_v37 = vmax.f32 %v704_v12, 0.0 }
 0x4d2   : > { %vm1442_vm10 = vcmp.eq.s32.totalorder %v4248_v1, %v1426_v32  ;;  %2017 = vmatmul.bf16.gmra.mxu3 %v1881_v38  ;;  %v2875_v30 = vadd.f32 %v2874_v58, %v1872_v46  ;;  %2066 = vmatmul.bf16.gmra.mxu0 %v1881_v38  ;;  %v2003_v55 = vpop.f32.mrf.mxu3  ;;  %v797_v62 = vmax.f32 %v663_v43, 0.0  ;;  %v801_v32 = vmax.f32 %v668_v61, 0.0 }
 0x4d3   : > { %v3213_v36 = vsel %vm1442_vm10, 1.0, %v5941_v31  ;;  %2259 = vmatmul.bf16.gmra.mxu1 %v1881_v38  ;;  %v803_v38 = vmax.f32 %v670_v29, 0.0  ;;  %v790_v43 = vmax.f32 %v702_v44, 0.0 }
 0x4d4   : > { %v1858_v21 = vmul.f32 %v3213_v36, %v1762_v25  ;;  %v2089_v57 = vmul.f32 %v2003_v55, %v797_v62 }
 0x4d5   : > { %v1408_v18 = vpop.xlane.xlu1 %1407 }
 0x4d6   : > { %v1409_v9 = vcvt.f32.s32 %v1408_v18  ;;  %v1874_v0 = vadd.f32 %v1858_v21, %v5291_v4  ;;  %v675_v18 = vadd.f32 %v5431_v22, %v5353_v34 }
 0x4d8   : > { %v1412_v8 = vadd.s32 %v1411_v27, %v1409_v9  ;;  %v2042_v33 = vpop.f32.mrf.mxu0  ;;  %v805_v9 = vmax.f32 %v673_v40, 0.0 }
 0x4da   : > { %vm1441_vm5 = vcmp.eq.s32.totalorder %v4248_v1, %v1412_v8  ;;  %v2005_v26 = vpop.f32.mrf.mxu3  ;;  %v713_v1 = vpop.f32.mrf.mxu1  ;;  %v2082_v8 = vmul.f32 %v2042_v33, %v790_v43 }
 0x4db   : > { %v3212_v63 = vsel %vm1441_vm5, 1.0, %v5941_v31  ;;  %v2091_v39 = vmul.f32 %v2005_v26, %v799_v2  ;;  %v699_v31 = vadd.f32 %v5391_v15, %v5478_v35 }
 0x4dc   : > { %v1857_v51 = vmul.f32 %v3212_v63, %v1761_v5  ;;  %v794_v63 = vmax.f32 %v707_v17, 0.0 }
 0x4dd   : > { %v2115_v3 = vpack.c.bf16 %v2091_v39, %v2089_v57  ;;  %v788_v49 = vmax.f32 %v699_v31, 0.0 }
 0x4de   : > { %v1873_v4 = vadd.f32 %v1857_v51, %v5308_v24 }
 0x4df   : > { %2389 = vmatmul.bf16.gmra.mxu2 %v2115_v3  ;;  %v2080_v42 = vmul.f32 %v2039_v10, %v788_v49  ;;  %v709_v10 = vadd.f32 %v5457_v7, %v5478_v35 }
 0x4e0   : > { %v1882_v48 = vpack.c.bf16 %v1874_v0, %v1873_v4  ;;  %v2876_v45 = vadd.f32 %v2875_v30, %v1873_v4  ;;  %v2044_v46 = vpop.f32.mrf.mxu0 }
 0x4e1   : > { %v2110_v25 = vpack.c.bf16 %v2080_v42, %v2078_v28  ;;  %v2084_v27 = vmul.f32 %v2044_v46, %v792_v37  ;;  %v796_v57 = vmax.f32 %v709_v10, 0.0 }
 0x4e2   : > { %2022 = vmatmul.bf16.gmra.mxu3 %v1882_v48  ;;  %v2877_v41 = vadd.f32 %v2876_v45, %v1874_v0  ;;  %2071 = vmatmul.bf16.gmra.mxu0 %v1882_v48  ;;  %v807_v0 = vmax.f32 %v675_v18, 0.0  ;;  %v716_v4 = vpop.f32.mrf.mxu1  ;;  %v714_v45 = vadd.f32 %v713_v1, %v5478_v35 }
 0x4e3   : > { %2264 = vmatmul.bf16.gmra.mxu1 %v1882_v48  ;;  %v2112_v5 = vpack.c.bf16 %v2084_v27, %v2082_v8  ;;  %v678_v27 = vadd.f32 %v5433_v23, %v5353_v34 }
 0x4e4   : > { %v2878_v19 = vrot.slane %v2877_v41, 4  ;;  %v800_v33 = vmax.f32 %v714_v45, 0.0  ;;  %v685_v45 = vadd.f32 %v5444_v53, %v5353_v34  ;;  %v3658_v53 = vld [vmem:[%s4160_s20] sm:$0xff] }
 0x4e6   : > { %v2879_v24 = vadd.f32 %v2878_v19, %v2877_v41  ;;  %v712_v41 = vadd.f32 %v5470_v56, %v5478_v35 }
 0x4e7   : > { %v2008_v11 = vpop.f32.mrf.mxu3 }
 0x4e8   : > { %v2880_v14 = vrot.slane %v2879_v24, 2  ;;  %v2093_v30 = vmul.f32 %v2008_v11, %v801_v32  ;;  %v2047_v36 = vpop.f32.mrf.mxu0  ;;  %v798_v7 = vmax.f32 %v712_v41, 0.0  ;;  %v2375_v23 = vpop.f32.mrf.mxu2 }
 0x4e9   : > { %v2086_v51 = vmul.f32 %v2047_v36, %v794_v63 }
 0x4ea   : > { %v2881_v54 = vadd.f32 %v2880_v14, %v2879_v24  ;;  %v718_v20 = vpop.f32.mrf.mxu1  ;;  %v717_v14 = vadd.f32 %v716_v4, %v5478_v35 }
 0x4eb   : > { %v719_v11 = vadd.f32 %v718_v20, %v5478_v35 }
 0x4ec   : > { %v2882_v15 = vrot.slane %v2881_v54, 1  ;;  %v802_v29 = vmax.f32 %v717_v14, 0.0 }
 0x4ed   : > { %v804_v61 = vmax.f32 %v719_v11, 0.0 }
 0x4ee   : > { %v2883_v58 = vadd.f32 %v2882_v15, %v2881_v54 }
 0x4ef   : > { %v2010_v16 = vpop.f32.mrf.mxu3 }
 0x4f0   : > { %v2095_v55 = vmul.f32 %v2010_v16, %v803_v38  ;;  %2884 = vst [vmem:[%s443_s1] sm:$0x1] %v2883_v58  ;;  %v2049_v26 = vpop.f32.mrf.mxu0 }
 0x4f1   : > { %v2088_v39 = vmul.f32 %v2049_v26, %v796_v57 }
 0x4f2   : > { %v2117_v59 = vpack.c.bf16 %v2095_v55, %v2093_v30  ;;  %2423 = vmatmul.bf16.vlgmr.msrb.gmra.mxu3 %v2110_v25  ;;  %v721_v50 = vpop.f32.mrf.mxu1 }
 0x4f3   : > { %v2114_v3 = vpack.c.bf16 %v2088_v39, %v2086_v51  ;;  %v722_v32 = vadd.f32 %v721_v50, %v5478_v35 }
 0x4f4   : > { %2394 = vmatmul.bf16.gmra.mxu2 %v2117_v59 }
 0x4f5   : > { %v806_v58 = vmax.f32 %v722_v32, 0.0 }
 0x4f7   : > { %v2013_v21 = vpop.f32.mrf.mxu3 }
 0x4f8   : > { %v2097_v13 = vmul.f32 %v2013_v21, %v805_v9  ;;  %v2052_v22 = vpop.f32.mrf.mxu0  ;;  %v680_v9 = vadd.f32 %v5435_v6, %v5353_v34 }
 0x4f9   : > { %v2090_v47 = vmul.f32 %v2052_v22, %v798_v7 }
 0x4fa   : > { %v723_v15 = vpop.f32.mrf.mxu1 }
 0x4fb   : > { %v724_v46 = vadd.f32 %v723_v15, %v5478_v35 }
 0x4fd   : > { %v808_v38 = vmax.f32 %v724_v46, 0.0  ;;  %v3659_v46 = vld [vmem:[%s4160_s20 + $0x8] sm:$0xff] }
 0x4ff   : > { %v2015_v62 = vpop.f32.mrf.mxu3 }
 0x500   : > { %v2099_v2 = vmul.f32 %v2015_v62, %v807_v0  ;;  %v2054_v48 = vpop.f32.mrf.mxu0 }
 0x501   : > { %v2092_v19 = vmul.f32 %v2054_v48, %v800_v33  ;;  %v683_v48 = vadd.f32 %v5438_v52, %v5353_v34 }
 0x502   : > { %v2119_v60 = vpack.c.bf16 %v2099_v2, %v2097_v13  ;;  %2428 = vmatmul.bf16.gmra.mxu3 %v2112_v5  ;;  %v726_v16 = vpop.f32.mrf.mxu1  ;;  %v809_v2 = vmax.f32 %v678_v27, 0.0  ;;  %v811_v5 = vmax.f32 %v680_v9, 0.0  ;;  %v3662_v9 = vld [vmem:[%s4160_s20 + $0x20] sm:$0xff] }
 0x503   : > { %v2116_v24 = vpack.c.bf16 %v2092_v19, %v2090_v47  ;;  %v727_v36 = vadd.f32 %v726_v16, %v5478_v35  ;;  %v815_v19 = vmax.f32 %v685_v45, 0.0  ;;  %v3665_v45 = vld [vmem:[%s4160_s20 + $0x38] sm:$0xff] }
 0x504   : > { %2399 = vmatmul.bf16.gmra.mxu2 %v2119_v60 }
 0x505   : > { %v810_v37 = vmax.f32 %v727_v36, 0.0  ;;  %v3661_v36 = vld [vmem:[%s4160_s20 + $0x18] sm:$0xff] }
 0x508   : > { %v2057_v31 = vpop.f32.mrf.mxu0 }
 0x509   : > { %v2094_v54 = vmul.f32 %v2057_v31, %v802_v29  ;;  %v2377_v31 = vpop.f32.mrf.mxu2 }
 0x50a   : > { %v728_v59 = vpop.f32.mrf.mxu1 }
 0x50b   : > { %v729_v21 = vadd.f32 %v728_v59, %v5478_v35 }
 0x50d   : > { %v812_v43 = vmax.f32 %v729_v21, 0.0 }
 0x510   : > { %v2059_v49 = vpop.f32.mrf.mxu0 }
 0x511   : > { %v2096_v1 = vmul.f32 %v2059_v49, %v804_v61  ;;  %v2380_v14 = vpop.f32.mrf.mxu2 }
 0x512   : > { %2433 = vmatmul.bf16.gmra.mxu3 %v2114_v3  ;;  %v731_v12 = vpop.f32.mrf.mxu1 }
 0x513   : > { %v2118_v56 = vpack.c.bf16 %v2096_v1, %v2094_v54  ;;  %v732_v57 = vadd.f32 %v731_v12, %v5478_v35 }
 0x515   : > { %v814_v6 = vmax.f32 %v732_v57, 0.0 }
 0x518   : > { %v2062_v42 = vpop.f32.mrf.mxu0 }
 0x519   : > { %v2098_v30 = vmul.f32 %v2062_v42, %v806_v58  ;;  %v2382_v54 = vpop.f32.mrf.mxu2 }
 0x51a   : > { %v733_v62 = vpop.f32.mrf.mxu1 }
 0x51b   : > { %v734_v22 = vadd.f32 %v733_v62, %v5478_v35  ;;  %v813_v35 = vmax.f32 %v683_v48, 0.0 }
 0x51d   : > { %v816_v51 = vmax.f32 %v734_v22, 0.0 }
 0x520   : > { %v2064_v28 = vpop.f32.mrf.mxu0 }
 0x521   : > { %v2100_v25 = vmul.f32 %v2064_v28, %v808_v38  ;;  %v2385_v16 = vpop.f32.mrf.mxu2 }
 0x522   : > { %2438 = vmatmul.bf16.gmra.mxu3 %v2116_v24  ;;  %v2230_v39 = vpop.f32.mrf.mxu1 }
 0x523   : > { %v2120_v55 = vpack.c.bf16 %v2100_v25, %v2098_v30  ;;  %v2376_v52 = vadd.f32 %v2375_v23, %v2230_v39  ;;  %v3660_v25 = vld [vmem:[%s4160_s20 + $0x10] sm:$0xff] }
 0x524   : > { %v3664_v23 = vld [vmem:[%s4160_s20 + $0x30] sm:$0xff] }
 0x52a   : > { %v2232_v20 = vpop.f32.mrf.mxu1 }
 0x52b   : > { %v2378_v1 = vadd.f32 %v2377_v31, %v2232_v20  ;;  %v3666_v20 = vld [vmem:[%s4160_s20 + $0x40] sm:$0xff] }
 0x532   : > { %2443 = vmatmul.bf16.gmra.mxu3 %v2118_v56  ;;  %v2235_v50 = vpop.f32.mrf.mxu1 }
 0x533   : > { %v2381_v38 = vadd.f32 %v2380_v14, %v2235_v50 }
 0x53a   : > { %v2237_v15 = vpop.f32.mrf.mxu1 }
 0x53b   : > { %v2383_v59 = vadd.f32 %v2382_v54, %v2237_v15  ;;  %v3668_v54 = vld [vmem:[%s4160_s20 + $0x50] sm:$0xff] }
 0x542   : > { %2448 = vmatmul.bf16.gmra.mxu3 %v2120_v55  ;;  %v2240_v55 = vpop.f32.mrf.mxu1 }
 0x54f   : > { %v2067_v44 = vpop.f32.mrf.mxu0 }
 0x550   : > { %v2102_v0 = vmul.f32 %v2067_v44, %v810_v37  ;;  %v2387_v37 = vpop.f32.mrf.mxu2 }
 0x555   : > { %v2018_v40 = vpop.f32.mrf.mxu3 }
 0x556   : > { %v2101_v60 = vmul.f32 %v2018_v40, %v809_v2  ;;  %v2386_v40 = vadd.f32 %v2385_v16, %v2240_v55 }
 0x557   : > { %v2069_v18 = vpop.f32.mrf.mxu0 }
 0x558   : > { %v2104_v8 = vmul.f32 %v2069_v18, %v812_v43  ;;  %v2242_v43 = vpop.f32.mrf.mxu1 }
 0x55a   : > { %v2122_v13 = vpack.c.bf16 %v2104_v8, %v2102_v0 }
 0x55c   : > { %2453 = vmatmul.bf16.gmra.mxu3 %v2122_v13  ;;  %v2388_v13 = vadd.f32 %v2387_v37, %v2242_v43 }
 0x55d   : > { %v2020_v26 = vpop.f32.mrf.mxu3 }
 0x55e   : > { %v2103_v10 = vmul.f32 %v2020_v26, %v811_v5  ;;  %v3663_v26 = vld [vmem:[%s4160_s20 + $0x28] sm:$0xff] }
 0x55f   : > { %v2072_v17 = vpop.f32.mrf.mxu0 }
 0x560   : > { %v2121_v63 = vpack.c.bf16 %v2103_v10, %v2101_v60  ;;  %v2106_v41 = vmul.f32 %v2072_v17, %v814_v6  ;;  %v2245_v62 = vpop.f32.mrf.mxu1 }
 0x562   : > { %2404 = vmatmul.bf16.gmra.mxu2 %v2121_v63  ;;  %v2390_v8 = vpop.f32.mrf.mxu2 }
 0x563   : > { %v2391_v17 = vadd.f32 %v2390_v8, %v2245_v62 }
 0x565   : > { %v2023_v3 = vpop.f32.mrf.mxu3 }
 0x566   : > { %v2105_v24 = vmul.f32 %v2023_v3, %v813_v35 }
 0x567   : > { %v2074_v4 = vpop.f32.mrf.mxu0 }
 0x568   : > { %v2108_v33 = vmul.f32 %v2074_v4, %v816_v51  ;;  %v2247_v57 = vpop.f32.mrf.mxu1 }
 0x56a   : > { %v2124_v7 = vpack.c.bf16 %v2108_v33, %v2106_v41  ;;  %v2392_v10 = vpop.f32.mrf.mxu2 }
 0x56b   : > { %v2393_v51 = vadd.f32 %v2392_v10, %v2247_v57 }
 0x56c   : > { %2458 = vmatmul.bf16.gmra.mxu3 %v2124_v7 }
 0x56d   : > { %v2025_v47 = vpop.f32.mrf.mxu3 }
 0x56e   : > { %v2107_v11 = vmul.f32 %v2025_v47, %v815_v19 }
 0x570   : > { %v2123_v49 = vpack.c.bf16 %v2107_v11, %v2105_v24  ;;  %v2250_v3 = vpop.f32.mrf.mxu1 }
 0x572   : > { %2409 = vmatmul.bf16.gmra.mxu2 %v2123_v49 }
 0x575   : > { %v2424_v61 = vpop.f32.mrf.mxu3 }
 0x576   : > { %v2425_v34 = vadd.f32 %v2424_v61, %v2376_v52  ;;  %v3667_v52 = vld [vmem:[%s4160_s20 + $0x48] sm:$0xff] }
 0x577   : > { %v2395_v6 = vpop.f32.mrf.mxu2 }
 0x578   : > { %v5523_v29 = vadd.f32 %v3658_v53, %v2425_v34  ;;  %v2396_v33 = vadd.f32 %v2395_v6, %v2250_v3  ;;  %v2252_v19 = vpop.f32.mrf.mxu1 }
 0x57a   : > { %2480 = vadd.xlane.f32.xlu0 %v5523_v29 }
 0x57d   : > { %v2426_v42 = vpop.f32.mrf.mxu3 }
 0x57e   : > { %v2427_v56 = vadd.f32 %v2426_v42, %v2378_v1 }
 0x57f   : > { %v2397_v7 = vpop.f32.mrf.mxu2 }
 0x580   : > { %v5527_v32 = vadd.f32 %v3659_v46, %v2427_v56  ;;  %v2398_v24 = vadd.f32 %v2397_v7, %v2252_v19  ;;  %v2255_v61 = vpop.f32.mrf.mxu1  ;;  %v3672_v7 = vld [vmem:[%s4160_s20 + $0x70] sm:$0xff] }
 0x582   : > { %2482 = vadd.xlane.f32.xlu1 %v5527_v32 }
 0x585   : > { %v2429_v28 = vpop.f32.mrf.mxu3 }
 0x586   : > { %v2430_v58 = vadd.f32 %v2429_v28, %v2381_v38 }
 0x587   : > { %v2400_v14 = vpop.f32.mrf.mxu2 }
 0x588   : > { %v5531_v30 = vadd.f32 %v3660_v25, %v2430_v58  ;;  %v2401_v34 = vadd.f32 %v2400_v14, %v2255_v61  ;;  %v2257_v15 = vpop.f32.mrf.mxu1  ;;  %v3669_v58 = vld [vmem:[%s4160_s20 + $0x58] sm:$0xff]  ;;  %v3978_v25 = vmov 128.0  }
 0x589   : > { %3623 = vrcp.f32 %v3978_v25 }
 0x58a   : > { %2484 = vadd.xlane.f32.xlu2 %v5531_v30 }
 0x58d   : > { %v2431_v12 = vpop.f32.mrf.mxu3 }
 0x58e   : > { %v2432_v44 = vadd.f32 %v2431_v12, %v2383_v59 }
 0x58f   : > { %v2402_v56 = vpop.f32.mrf.mxu2  ;;  %v3624_v55 = vpop.eup %3623 }
 0x590   : > { %v5535_v21 = vadd.f32 %v3661_v36, %v2432_v44  ;;  %v2403_v46 = vadd.f32 %v2402_v56, %v2257_v15  ;;  %v2260_v59 = vpop.f32.mrf.mxu1  ;;  %v2513_v12 = vmul.f32 128.0, %v3624_v55  ;;  %vm2517_vm4 = vweird.f32 %v3624_v55 }
 0x592   : > { %2486 = vadd.xlane.f32.xlu0 %v5535_v21  ;;  %v2514_v36 = vsub.f32 1.0, %v2513_v12 }
 0x595   : > { %v2434_v18 = vpop.f32.mrf.mxu3 }
 0x596   : > { %v2435_v27 = vadd.f32 %v2434_v18, %v2386_v40  ;;  %v2515_v40 = vmul.f32 %v3624_v55, %v2514_v36 }
 0x598   : > { %v5539_v0 = vadd.f32 %v3662_v9, %v2435_v27  ;;  %v2262_v27 = vpop.f32.mrf.mxu1  ;;  %v3670_v9 = vld [vmem:[%s4160_s20 + $0x60] sm:$0xff] }
 0x59a   : > { %2488 = vadd.xlane.f32.xlu1 %v5539_v0 }
 0x59d   : > { %v2436_v2 = vpop.f32.mrf.mxu3 }
 0x59e   : > { %v2437_v5 = vadd.f32 %v2436_v2, %v2388_v13  ;;  %v2516_v13 = vadd.f32 %v3624_v55, %v2515_v40 }
 0x5a0   : > { %v5543_v60 = vadd.f32 %v3663_v26, %v2437_v5  ;;  %v5574_v26 = vsel %vm2517_vm4, %v3624_v55, %v2516_v13 }
 0x5a2   : > { %2490 = vadd.xlane.f32.xlu2 %v5543_v60 }
 0x5a5   : > { %v2439_v22 = vpop.f32.mrf.mxu3 }
 0x5a6   : > { %v2440_v63 = vadd.f32 %v2439_v22, %v2391_v17  ;;  %v3671_v22 = vld [vmem:[%s4160_s20 + $0x68] sm:$0xff] }
 0x5a8   : > { %v5547_v39 = vadd.f32 %v3664_v23, %v2440_v63  ;;  %v2265_v23 = vpop.f32.mrf.mxu1 }
 0x5aa   : > { %2492 = vadd.xlane.f32.xlu0 %v5547_v39 }
 0x5ad   : > { %v2441_v4 = vpop.f32.mrf.mxu3 }
 0x5ae   : > { %v2442_v48 = vadd.f32 %v2441_v4, %v2393_v51 }
 0x5b0   : > { %v5551_v41 = vadd.f32 %v3665_v45, %v2442_v48  ;;  %v2267_v19 = vpop.f32.mrf.mxu1 }
 0x5b2   : > { %2494 = vadd.xlane.f32.xlu1 %v5551_v41 }
 0x5b5   : > { %v2444_v31 = vpop.f32.mrf.mxu3 }
 0x5b6   : > { %v2445_v35 = vadd.f32 %v2444_v31, %v2396_v33 }
 0x5b8   : > { %v5555_v47 = vadd.f32 %v3666_v20, %v2445_v35 }
 0x5ba   : > { %2496 = vadd.xlane.f32.xlu2 %v5555_v47 }
 0x5bd   : > { %v2446_v11 = vpop.f32.mrf.mxu3 }
 0x5be   : > { %v2447_v49 = vadd.f32 %v2446_v11, %v2398_v24 }
 0x5c0   : > { %v5559_v50 = vadd.f32 %v3667_v52, %v2447_v49 }
 0x5c2   : > { %2498 = vadd.xlane.f32.xlu0 %v5559_v50 }
 0x5c5   : > { %v2449_v53 = vpop.f32.mrf.mxu3 }
 0x5c6   : > { %v2450_v1 = vadd.f32 %v2449_v53, %v2401_v34  ;;  %v3673_v34 = vld [vmem:[%s4160_s20 + $0x78] sm:$0xff]  ;;  %s3870_s20 = scalar_lea.hbm %s3869_s3, 1 }
 0x5c7   : > { %p3871_p1 = scmp.ne.s32.totalorder %s3869_s3, %s3870_s20  ;;  %p3876_p8 = scmp.lt.s32.totalorder %s3874_s29, %s3870_s20 }
 0x5c8   : > { %v5563_v42 = vadd.f32 %v3668_v54, %v2450_v1 }
 0x5c9   : > { %p3872_p3 = pnand %p3871_p1, %p4120_p13  ;;  %p3877_p7 = por %p3876_p8, %p3875_p12 }
 0x5ca   : > { %2500 = vadd.xlane.f32.xlu1 %v5563_v42 }
 0x5cb   : > { %p3873_p5 = pneg %p3872_p3 }
 0x5cd   : > { %v2451_v38 = vpop.f32.mrf.mxu3  ;;  %p3878_p9 = pnand %p3877_p7, %p3873_p5 }
 0x5ce   : > { %v2452_v28 = vadd.f32 %v2451_v38, %v2403_v46 }
 0x5d0   : > { %v5567_v16 = vadd.f32 %v3669_v58, %v2452_v28 }
 0x5d2   : > { %2502 = vadd.xlane.f32.xlu2 %v5567_v16 }
 0x5df   : > { %v2454_v44 = vpop.f32.mrf.mxu3 }
 0x5e5   : > { %v2405_v37 = vpop.f32.mrf.mxu2 }
 0x5e6   : > { %v2406_v43 = vadd.f32 %v2405_v37, %v2260_v59 }
 0x5e7   : > { %v2456_v62 = vpop.f32.mrf.mxu3 }
 0x5e8   : > { %v2455_v18 = vadd.f32 %v2454_v44, %v2406_v43 }
 0x5ea   : > { %v5571_v8 = vadd.f32 %v3670_v9, %v2455_v18 }
 0x5ec   : > { %2504 = vadd.xlane.f32.xlu0 %v5571_v8 }
 0x5ed   : > { %v2407_v2 = vpop.f32.mrf.mxu2  ;;  %v2481_v10 = vpop.xlane.xlu0 %2480 }
 0x5ee   : > { %v2408_v5 = vadd.f32 %v2407_v2, %v2262_v27  ;;  %v2519_v57 = vmul.f32 %v5574_v26, %v2481_v10 }
 0x5ef   : > { %v2459_v6 = vpop.f32.mrf.mxu3 }
 0x5f0   : > { %v2457_v17 = vadd.f32 %v2456_v62, %v2408_v5  ;;  %v5582_v3 = vsub.f32 %v5523_v29, %v2519_v57 }
 0x5f2   : > { %v5578_v63 = vadd.f32 %v3671_v22, %v2457_v17  ;;  %v2551_v35 = vmul.f32 %v5582_v3, %v5582_v3 }
 0x5f4   : > { %2506 = vadd.xlane.f32.xlu1 %v5578_v63 }
 0x5f5   : > { %v2410_v51 = vpop.f32.mrf.mxu2  ;;  %v2483_v48 = vpop.xlane.xlu1 %2482 }
 0x5f6   : > { %v2411_v4 = vadd.f32 %v2410_v51, %v2265_v23  ;;  %v2520_v33 = vmul.f32 %v5574_v26, %v2483_v48 }
 0x5f7   : > { %v2461_v11 = vpop.f32.mrf.mxu3 }
 0x5f8   : > { %v2460_v45 = vadd.f32 %v2459_v6, %v2411_v4  ;;  %v5592_v29 = vsub.f32 %v5527_v32, %v2520_v33 }
 0x5fa   : > { %v5586_v31 = vadd.f32 %v3672_v7, %v2460_v45  ;;  %v2552_v61 = vmul.f32 %v5592_v29, %v5592_v29 }
 0x5fc   : > { %2508 = vadd.xlane.f32.xlu2 %v5586_v31  ;;  %2567 = vadd.xlane.f32.xlu1 %v2551_v35 }
 0x5fd   : > { %v2412_v20 = vpop.f32.mrf.mxu2  ;;  %v2485_v49 = vpop.xlane.xlu2 %2484 }
 0x5fe   : > { %v2413_v24 = vadd.f32 %v2412_v20, %v2267_v19  ;;  %v2521_v52 = vmul.f32 %v5574_v26, %v2485_v49 }
 0x600   : > { %v2462_v14 = vadd.f32 %v2461_v11, %v2413_v24  ;;  %v5602_v54 = vsub.f32 %v5531_v30, %v2521_v52 }
 0x602   : > { %v5598_v53 = vadd.f32 %v3673_v34, %v2462_v14  ;;  %v2553_v15 = vmul.f32 %v5602_v54, %v5602_v54 }
 0x604   : > { %2569 = vadd.xlane.f32.xlu2 %v2552_v61  ;;  %2510 = vadd.xlane.f32.xlu0 %v5598_v53 }
 0x605   : > { %v2487_v1 = vpop.xlane.xlu0 %2486 }
 0x606   : > { %v2522_v32 = vmul.f32 %v5574_v26, %v2487_v1 }
 0x608   : > { %v5606_v56 = vsub.f32 %v5535_v21, %v2522_v32 }
 0x60a   : > { %v2554_v46 = vmul.f32 %v5606_v56, %v5606_v56 }
 0x60c   : > { %2571 = vadd.xlane.f32.xlu0 %v2553_v15  ;;  %2573 = vadd.xlane.f32.xlu1 %v2554_v46 }
 0x60d   : > { %v2489_v38 = vpop.xlane.xlu1 %2488 }
 0x60e   : > { %v2523_v28 = vmul.f32 %v5574_v26, %v2489_v38 }
 0x610   : > { %v5614_v58 = vsub.f32 %v5539_v0, %v2523_v28 }
 0x612   : > { %v2555_v30 = vmul.f32 %v5614_v58, %v5614_v58 }
 0x614   : > { %2575 = vadd.xlane.f32.xlu2 %v2555_v30 }
 0x615   : > { %v2491_v21 = vpop.xlane.xlu2 %2490 }
 0x616   : > { %v2524_v25 = vmul.f32 %v5574_v26, %v2491_v21 }
 0x618   : > { %v5620_v55 = vsub.f32 %v5543_v60, %v2524_v25 }
 0x61a   : > { %v2556_v59 = vmul.f32 %v5620_v55, %v5620_v55 }
 0x61c   : > { %2577 = vadd.xlane.f32.xlu0 %v2556_v59 }
 0x61d   : > { %v2493_v12 = vpop.xlane.xlu0 %2492 }
 0x61e   : > { %v2525_v44 = vmul.f32 %v5574_v26, %v2493_v12 }
 0x620   : > { %v5626_v0 = vsub.f32 %v5547_v39, %v2525_v44 }
 0x622   : > { %v2557_v36 = vmul.f32 %v5626_v0, %v5626_v0 }
 0x624   : > { %2579 = vadd.xlane.f32.xlu1 %v2557_v36 }
 0x625   : > { %v2495_v37 = vpop.xlane.xlu1 %2494 }
 0x626   : > { %v2526_v43 = vmul.f32 %v5574_v26, %v2495_v37  ;;  %v5691_v37 = vld [vmem:[%s5855_s6] ss:$0 sm:$0xff] }
 0x628   : > { %v5632_v60 = vsub.f32 %v5551_v41, %v2526_v43 }
 0x62a   : > { %v2558_v40 = vmul.f32 %v5632_v60, %v5632_v60 }
 0x62c   : > { %2581 = vadd.xlane.f32.xlu2 %v2558_v40 }
 0x62d   : > { %v2497_v18 = vpop.xlane.xlu2 %2496 }
 0x62e   : > { %v2527_v27 = vmul.f32 %v5574_v26, %v2497_v18  ;;  %v5696_v18 = vld [vmem:[%s5856_s7] ss:$0 sm:$0xff] }
 0x630   : > { %v5638_v39 = vsub.f32 %v5555_v47, %v2527_v27 }
 0x632   : > { %v2559_v9 = vmul.f32 %v5638_v39, %v5638_v39 }
 0x634   : > { %2583 = vadd.xlane.f32.xlu0 %v2559_v9 }
 0x635   : > { %v2499_v62 = vpop.xlane.xlu0 %2498 }
 0x636   : > { %v2528_v13 = vmul.f32 %v5574_v26, %v2499_v62 }
 0x638   : > { %v5644_v41 = vsub.f32 %v5559_v50, %v2528_v13 }
 0x63a   : > { %v2560_v2 = vmul.f32 %v5644_v41, %v5644_v41 }
 0x63c   : > { %2585 = vadd.xlane.f32.xlu1 %v2560_v2 }
 0x63d   : > { %v2501_v5 = vpop.xlane.xlu1 %2500 }
 0x63e   : > { %v2529_v10 = vmul.f32 %v5574_v26, %v2501_v5 }
 0x640   : > { %v5650_v47 = vsub.f32 %v5563_v42, %v2529_v10 }
 0x642   : > { %v2561_v17 = vmul.f32 %v5650_v47, %v5650_v47 }
 0x644   : > { %2587 = vadd.xlane.f32.xlu2 %v2561_v17 }
 0x645   : > { %v2503_v57 = vpop.xlane.xlu2 %2502 }
 0x646   : > { %v2530_v22 = vmul.f32 %v5574_v26, %v2503_v57 }
 0x648   : > { %v5656_v50 = vsub.f32 %v5567_v16, %v2530_v22 }
 0x64a   : > { %v2562_v23 = vmul.f32 %v5656_v50, %v5656_v50 }
 0x64c   : > { %2589 = vadd.xlane.f32.xlu0 %v2562_v23 }
 0x65f   : > { %v2505_v6 = vpop.xlane.xlu0 %2504 }
 0x660   : > { %v2531_v51 = vmul.f32 %v5574_v26, %v2505_v6 }
 0x662   : > { %v5662_v42 = vsub.f32 %v5571_v8, %v2531_v51 }
 0x664   : > { %v2563_v4 = vmul.f32 %v5662_v42, %v5662_v42 }
 0x666   : > { %2591 = vadd.xlane.f32.xlu1 %v2563_v4 }
 0x667   : > { %v2507_v48 = vpop.xlane.xlu1 %2506 }
 0x668   : > { %v2532_v45 = vmul.f32 %v5574_v26, %v2507_v48 }
 0x66a   : > { %v5668_v16 = vsub.f32 %v5578_v63, %v2532_v45 }
 0x66c   : > { %v2564_v33 = vmul.f32 %v5668_v16, %v5668_v16 }
 0x66e   : > { %2593 = vadd.xlane.f32.xlu2 %v2564_v33 }
 0x66f   : > { %v2509_v7 = vpop.xlane.xlu2 %2508  ;;  %v2568_v35 = vpop.xlane.xlu1 %2567 }
 0x670   : > { %v2533_v19 = vmul.f32 %v5574_v26, %v2509_v7  ;;  %v2599_v8 = vmul.f32 %v2568_v35, %v5574_v26 }
 0x672   : > { %v5675_v20 = vsub.f32 %v5586_v31, %v2533_v19  ;;  %v2615_v24 = vadd.f32 1e-05, %v2599_v8 }
 0x674   : > { %3625 = vrsqrt.f32 %v2615_v24  ;;  %v2565_v11 = vmul.f32 %v5675_v20, %v5675_v20  ;;  %vm2637_vm13 = vweird.f32 %v2615_v24 }
 0x676   : > { %2595 = vadd.xlane.f32.xlu0 %v2565_v11 }
 0x677   : > { %v2570_v63 = vpop.xlane.xlu2 %2569  ;;  %v2511_v49 = vpop.xlane.xlu0 %2510 }
 0x678   : > { %v2600_v14 = vmul.f32 %v2570_v63, %v5574_v26  ;;  %v2534_v52 = vmul.f32 %v5574_v26, %v2511_v49 }
 0x67a   : > { %v3626_v61 = vpop.eup %3625  ;;  %v2616_v34 = vadd.f32 1e-05, %v2600_v14  ;;  %v5682_v1 = vsub.f32 %v5598_v53, %v2534_v52 }
 0x67b   : > { %v2632_v32 = vmul.f32 %v3626_v61, %v2615_v24  ;;  %vm2638_vm15 = vweird.f32 %v3626_v61 }
 0x67c   : > { %3627 = vrsqrt.f32 %v2616_v34  ;;  %v2566_v31 = vmul.f32 %v5682_v1, %v5682_v1  ;;  %vm2639_vm3 = vmor %vm2637_vm13, %vm2638_vm15  ;;  %vm2647_vm6 = vweird.f32 %v2616_v34 }
 0x67d   : > { %v2633_v15 = vmul.f32 %v3626_v61, %v2632_v32 }
 0x67e   : > { %2597 = vadd.xlane.f32.xlu1 %v2566_v31 }
 0x67f   : > { %v2634_v46 = vmul.f32 0.5, %v2633_v15  ;;  %v2574_v38 = vpop.xlane.xlu1 %2573  ;;  %v2572_v28 = vpop.xlane.xlu0 %2571 }
 0x680   : > { %v2602_v30 = vmul.f32 %v2574_v38, %v5574_v26  ;;  %v2601_v21 = vmul.f32 %v2572_v28, %v5574_v26 }
 0x681   : > { %v2635_v25 = vsub.f32 1.5, %v2634_v46 }
 0x682   : > { %v3628_v59 = vpop.eup %3627  ;;  %v2618_v12 = vadd.f32 1e-05, %v2602_v30  ;;  %v2617_v53 = vadd.f32 1e-05, %v2601_v21 }
 0x683   : > { %v2636_v44 = vmul.f32 %v3626_v61, %v2635_v25  ;;  %v2642_v36 = vmul.f32 %v3628_v59, %v2616_v34  ;;  %vm2648_vm8 = vweird.f32 %v3628_v59 }
 0x684   : > { %3629 = vrsqrt.f32 %v2618_v12  ;;  %vm2649_vm11 = vmor %vm2647_vm6, %vm2648_vm8  ;;  %vm2667_vm12 = vweird.f32 %v2618_v12  ;;  %vm2657_vm2 = vweird.f32 %v2617_v53 }
 0x685   : > { %v2640_v43 = vsel %vm2639_vm3, %v3626_v61, %v2636_v44  ;;  %v2643_v40 = vmul.f32 %v3628_v59, %v2642_v36  ;;  %3631 = vrsqrt.f32 %v2617_v53 }
 0x686   : > { %v2791_v27 = vmul.f32 %v2640_v43, %v5582_v3 }
 0x687   : > { %v2644_v9 = vmul.f32 0.5, %v2643_v40  ;;  %v2576_v62 = vpop.xlane.xlu2 %2575 }
 0x688   : > { %v2811_v13 = vmul.f32 %v5691_v37, %v2791_v27  ;;  %v2603_v2 = vmul.f32 %v2576_v62, %v5574_v26 }
 0x689   : > { %v2645_v5 = vsub.f32 1.5, %v2644_v9 }
 0x68a   : > { %v3630_v10 = vpop.eup %3629  ;;  %v2831_v17 = vadd.f32 %v5696_v18, %v2811_v13  ;;  %v5702_v57 = vadd.f32 1e-05, %v2603_v2 }
 0x68b   : > { %v3632_v22 = vpop.eup %3631  ;;  %v2646_v23 = vmul.f32 %v3628_v59, %v2645_v5  ;;  %v2662_v6 = vmul.f32 %v3630_v10, %v2618_v12  ;;  %vm2668_vm7 = vweird.f32 %v3630_v10 }
 0x68c   : > { %2847 = vst [vmem:[%s5706_s24] sm:$0xff] %v2831_v17  ;;  %v2652_v3 = vmul.f32 %v3632_v22, %v2617_v53  ;;  %3633 = vrsqrt.f32 %v5702_v57  ;;  %vm2658_vm0 = vweird.f32 %v3632_v22  ;;  %vm2669_vm14 = vmor %vm2667_vm12, %vm2668_vm7 }
 0x68d   : > { %v2650_v51 = vsel %vm2649_vm11, %v3628_v59, %v2646_v23  ;;  %v2663_v4 = vmul.f32 %v3630_v10, %v2662_v6  ;;  %vm5729_vm9 = vmor %vm2657_vm2, %vm2658_vm0 }
 0x68e   : > { %v2792_v48 = vmul.f32 %v2650_v51, %v5592_v29  ;;  %v2653_v45 = vmul.f32 %v3632_v22, %v2652_v3 }
 0x68f   : > { %v2664_v33 = vmul.f32 0.5, %v2663_v4  ;;  %v2578_v7 = vpop.xlane.xlu0 %2577 }
 0x690   : > { %v2812_v35 = vmul.f32 %v5691_v37, %v2792_v48  ;;  %v2654_v19 = vmul.f32 0.5, %v2653_v45  ;;  %v2604_v8 = vmul.f32 %v2578_v7, %v5574_v26 }
 0x691   : > { %v2665_v24 = vsub.f32 1.5, %v2664_v33 }
 0x692   : > { %v3634_v11 = vpop.eup %3633  ;;  %v2832_v63 = vadd.f32 %v5696_v18, %v2812_v35  ;;  %v2655_v49 = vsub.f32 1.5, %v2654_v19  ;;  %v5714_v14 = vadd.f32 1e-05, %v2604_v8 }
 0x693   : > { %v2666_v29 = vmul.f32 %v3630_v10, %v2665_v24  ;;  %v2672_v52 = vmul.f32 %v3634_v11, %v5702_v57 }
 0x694   : > { %2848 = vst [vmem:[%s5706_s24 + $0x8] sm:$0xff] %v2832_v63  ;;  %v2656_v61 = vmul.f32 %v3632_v22, %v2655_v49  ;;  %3635 = vrsqrt.f32 %v5714_v14 }
 0x695   : > { %v2670_v34 = vsel %vm2669_vm14, %v3630_v10, %v2666_v29  ;;  %v2673_v31 = vmul.f32 %v3634_v11, %v2672_v52 }
 0x696   : > { %v2794_v15 = vmul.f32 %v2670_v34, %v5606_v56  ;;  %v2660_v46 = vsel %vm5729_vm9, %v3632_v22, %v2656_v61 }
 0x697   : > { %3881 = shalt.err (!%p3878_p9)
}
 0x698   : > { %3468 = dma.vmem_to_hbm [thread:$0]  (%p4120_p13), %s2919_s27, 16, %s2921_s22, %s2891_s2   ;;  %v2793_v56 = vmul.f32 %v2660_v46, %v5602_v54  ;;  %v2674_v38 = vmul.f32 0.5, %v2673_v31  ;;  %v2580_v28 = vpop.xlane.xlu1 %2579  ;;  %v2814_v30 = vmul.f32 %v5691_v37, %v2794_v15  ;;  %vm2678_vm1 = vweird.f32 %v3634_v11 }
 0x699   : > { %v2605_v21 = vmul.f32 %v2580_v28, %v5574_v26  ;;  %vm2677_vm10 = vweird.f32 %v5702_v57  ;;  %vm2687_vm15 = vweird.f32 %v5714_v14  ;;  %s3444_s28 = sshll.u32 %s4055_s16, 7  ;;  %s2902_s22 = sshll.u32 %s5706_s24, 4  ;;  %s2903_s22 = int_to_ptr.vmem [resolvable:$true] %s2902_s22 }
 0x69a   : > { %v2813_v25 = vmul.f32 %v5691_v37, %v2793_v56  ;;  %v2675_v59 = vsub.f32 1.5, %v2674_v38  ;;  %v3636_v12 = vpop.eup %3635  ;;  %v2834_v53 = vadd.f32 %v5696_v18, %v2814_v30  ;;  %vm2679_vm5 = vmor %vm2677_vm10, %vm2678_vm1  ;;  %s2901_s27 = scalar_lea.hbm %s5857_s8, %s3444_s28  ;;  %s2886_s2 = scalar_lea.sflag [#allocation4], %s4154_s18 }
 0x69b   : > { %v2621_v44 = vadd.f32 1e-05, %v2605_v21  ;;  %v2682_v54 = vmul.f32 %v3636_v12, %v5714_v14  ;;  %vm2688_vm4 = vweird.f32 %v3636_v12  ;;  %s2904_s16 = sshll.u32 %s2901_s27, 4  ;;  %s3902_s29 = scalar_lea.hbm %s5857_s8, 256  ;;  %s2905_s16 = int_to_ptr.hbm [resolvable:$true] %s2904_s16 }
 0x69c   : > { %v2833_v36 = vadd.f32 %v5696_v18, %v2813_v25  ;;  %v2676_v43 = vmul.f32 %v3634_v11, %v2675_v59  ;;  %2850 = vst [vmem:[%s5706_s24 + $0x18] sm:$0xff] %v2834_v53  ;;  %vm2689_vm13 = vmor %vm2687_vm15, %vm2688_vm4  ;;  %s3896_s3 = sshra.s32 %s2905_s16, 4  ;;  %s3897_s3 = int_to_ptr.hbm [resolvable:$true] %s3896_s3 }
 0x69d   : > { %3637 = vrsqrt.f32 %v2621_v44  ;;  %v2683_v27 = vmul.f32 %v3636_v12, %v2682_v54  ;;  %vm2697_vm8 = vweird.f32 %v2621_v44  ;;  %s3898_s20 = scalar_lea.hbm %s3897_s3, 128  ;;  %p3903_p2 = scmp.lt.s32.totalorder %s3897_s3, %s5857_s8 }
 0x69e   : > { %2849 = vst [vmem:[%s5706_s24 + $0x10] sm:$0xff] %v2833_v36  ;;  %v2680_v40 = vsel %vm2679_vm5, %v3634_v11, %v2676_v43  ;;  %p3899_p10 = scmp.ne.s32.totalorder %s3897_s3, %s3898_s20  ;;  %p3904_p6 = scmp.lt.s32.totalorder %s3902_s29, %s3898_s20 }
 0x69f   : > { %v2795_v9 = vmul.f32 %v2680_v40, %v5614_v58  ;;  %v2684_v62 = vmul.f32 0.5, %v2683_v27  ;;  %v2582_v13 = vpop.xlane.xlu2 %2581 }
 0x6a0   : > { %v2606_v5 = vmul.f32 %v2582_v13, %v5574_v26  ;;  %p3900_p11 = pnand %p3899_p10, %p4120_p13  ;;  %p3905_p1 = por %p3904_p6, %p3903_p2 }
 0x6a1   : > { %v2815_v2 = vmul.f32 %v5691_v37, %v2795_v9  ;;  %v2685_v10 = vsub.f32 1.5, %v2684_v62 }
 0x6a2   : > { %v2622_v22 = vadd.f32 1e-05, %v2606_v5  ;;  %p3901_p0 = pneg %p3900_p11 }
 0x6a3   : > { %v3638_v17 = vpop.eup %3637  ;;  %v2835_v57 = vadd.f32 %v5696_v18, %v2815_v2  ;;  %v2686_v23 = vmul.f32 %v3636_v12, %v2685_v10 }
 0x6a4   : > { %v2692_v6 = vmul.f32 %v3638_v17, %v2621_v44  ;;  %3639 = vrsqrt.f32 %v2622_v22  ;;  %vm2698_vm3 = vweird.f32 %v3638_v17  ;;  %vm2707_vm7 = vweird.f32 %v2622_v22  ;;  %p3906_p3 = pnand %p3905_p1, %p3901_p0 }
 0x6a5   : > { %2851 = vst [vmem:[%s5706_s24 + $0x20] sm:$0xff] %v2835_v57  ;;  %v2690_v58 = vsel %vm2689_vm13, %v3636_v12, %v2686_v23  ;;  %vm2699_vm6 = vmor %vm2697_vm8, %vm2698_vm3 }
 0x6a6   : > { %v2693_v3 = vmul.f32 %v3638_v17, %v2692_v6  ;;  %v2796_v51 = vmul.f32 %v2690_v58, %v5620_v55 }
 0x6a7   : > { %v2584_v48 = vpop.xlane.xlu0 %2583 }
 0x6a8   : > { %v2694_v4 = vmul.f32 0.5, %v2693_v3  ;;  %v2816_v45 = vmul.f32 %v5691_v37, %v2796_v51  ;;  %v2607_v33 = vmul.f32 %v2584_v48, %v5574_v26 }
 0x6aa   : > { %v2695_v7 = vsub.f32 1.5, %v2694_v4  ;;  %v3640_v35 = vpop.eup %3639  ;;  %v2836_v19 = vadd.f32 %v5696_v18, %v2816_v45  ;;  %v2623_v8 = vadd.f32 1e-05, %v2607_v33 }
 0x6ab   : > { %v2702_v11 = vmul.f32 %v3640_v35, %v2622_v22  ;;  %vm2708_vm11 = vweird.f32 %v3640_v35 }
 0x6ac   : > { %v2696_v24 = vmul.f32 %v3638_v17, %v2695_v7  ;;  %2852 = vst [vmem:[%s5706_s24 + $0x28] sm:$0xff] %v2836_v19  ;;  %3641 = vrsqrt.f32 %v2623_v8  ;;  %vm2709_vm0 = vmor %vm2707_vm7, %vm2708_vm11  ;;  %vm2717_vm14 = vweird.f32 %v2623_v8 }
 0x6ad   : > { %v2703_v63 = vmul.f32 %v3640_v35, %v2702_v11 }
 0x6ae   : > { %v2700_v55 = vsel %vm2699_vm6, %v3638_v17, %v2696_v24 }
 0x6af   : > { %v2797_v49 = vmul.f32 %v2700_v55, %v5626_v0  ;;  %v2704_v14 = vmul.f32 0.5, %v2703_v63  ;;  %v2586_v29 = vpop.xlane.xlu1 %2585 }
 0x6b0   : > { %v2608_v61 = vmul.f32 %v2586_v29, %v5574_v26 }
 0x6b1   : > { %v2817_v52 = vmul.f32 %v5691_v37, %v2797_v49  ;;  %v2705_v34 = vsub.f32 1.5, %v2704_v14 }
 0x6b2   : > { %v3642_v32 = vpop.eup %3641  ;;  %v2624_v15 = vadd.f32 1e-05, %v2608_v61 }
 0x6b3   : > { %v2837_v31 = vadd.f32 %v5696_v18, %v2817_v52  ;;  %v2706_v46 = vmul.f32 %v3640_v35, %v2705_v34  ;;  %v2712_v56 = vmul.f32 %v3642_v32, %v2623_v8  ;;  %vm2718_vm12 = vweird.f32 %v3642_v32 }
 0x6b4   : > { %3643 = vrsqrt.f32 %v2624_v15  ;;  %vm2719_vm2 = vmor %vm2717_vm14, %vm2718_vm12  ;;  %vm2727_vm1 = vweird.f32 %v2624_v15 }
 0x6b5   : > { %2853 = vst [vmem:[%s5706_s24 + $0x30] sm:$0xff] %v2837_v31  ;;  %v2710_v0 = vsel %vm2709_vm0, %v3640_v35, %v2706_v46  ;;  %v2713_v38 = vmul.f32 %v3642_v32, %v2712_v56 }
 0x6b6   : > { %v2798_v28 = vmul.f32 %v2710_v0, %v5632_v60 }
 0x6b7   : > { %v2714_v30 = vmul.f32 0.5, %v2713_v38  ;;  %v2588_v21 = vpop.xlane.xlu2 %2587 }
 0x6b8   : > { %v2818_v25 = vmul.f32 %v5691_v37, %v2798_v28  ;;  %v2609_v59 = vmul.f32 %v2588_v21, %v5574_v26 }
 0x6b9   : > { %v2715_v12 = vsub.f32 1.5, %v2714_v30 }
 0x6ba   : > { %v3644_v53 = vpop.eup %3643  ;;  %v2838_v44 = vadd.f32 %v5696_v18, %v2818_v25  ;;  %v2625_v36 = vadd.f32 1e-05, %v2609_v59 }
 0x6bb   : > { %v2716_v43 = vmul.f32 %v3642_v32, %v2715_v12  ;;  %v2722_v54 = vmul.f32 %v3644_v53, %v2624_v15  ;;  %vm2728_vm9 = vweird.f32 %v3644_v53 }
 0x6bc   : > { %2854 = vst [vmem:[%s5706_s24 + $0x38] sm:$0xff] %v2838_v44  ;;  %3645 = vrsqrt.f32 %v2625_v36  ;;  %vm2729_vm10 = vmor %vm2727_vm1, %vm2728_vm9  ;;  %vm2737_vm4 = vweird.f32 %v2625_v36 }
 0x6bd   : > { %v2720_v60 = vsel %vm2719_vm2, %v3642_v32, %v2716_v43  ;;  %v2723_v40 = vmul.f32 %v3644_v53, %v2722_v54 }
 0x6be   : > { %v2799_v27 = vmul.f32 %v2720_v60, %v5638_v39 }
 0x6bf   : > { %v2724_v9 = vmul.f32 0.5, %v2723_v40  ;;  %v2590_v62 = vpop.xlane.xlu0 %2589 }
 0x6c0   : > { %v2819_v13 = vmul.f32 %v5691_v37, %v2799_v27  ;;  %v2610_v2 = vmul.f32 %v2590_v62, %v5574_v26 }
 0x6c1   : > { %v2725_v5 = vsub.f32 1.5, %v2724_v9 }
 0x6c2   : > { %v3646_v10 = vpop.eup %3645  ;;  %v2839_v17 = vadd.f32 %v5696_v18, %v2819_v13  ;;  %v2626_v57 = vadd.f32 1e-05, %v2610_v2 }
 0x6c3   : > { %v2726_v22 = vmul.f32 %v3644_v53, %v2725_v5  ;;  %v2732_v23 = vmul.f32 %v3646_v10, %v2625_v36  ;;  %vm2738_vm5 = vweird.f32 %v3646_v10 }
 0x6c4   : > { %2855 = vst [vmem:[%s5706_s24 + $0x40] sm:$0xff] %v2839_v17  ;;  %3647 = vrsqrt.f32 %v2626_v57  ;;  %vm2739_vm15 = vmor %vm2737_vm4, %vm2738_vm5  ;;  %vm2747_vm3 = vweird.f32 %v2626_v57 }
 0x6c5   : > { %v2730_v39 = vsel %vm2729_vm10, %v3644_v53, %v2726_v22  ;;  %v2733_v6 = vmul.f32 %v3646_v10, %v2732_v23 }
 0x6c6   : > { %v2800_v58 = vmul.f32 %v2730_v39, %v5644_v41 }
 0x6c7   : > { %v2734_v3 = vmul.f32 0.5, %v2733_v6 }
 0x6c8   : > { %v2820_v51 = vmul.f32 %v5691_v37, %v2800_v58 }
 0x6c9   : > { %v2735_v4 = vsub.f32 1.5, %v2734_v3 }
 0x6ca   : > { %v3648_v48 = vpop.eup %3647  ;;  %v2840_v45 = vadd.f32 %v5696_v18, %v2820_v51 }
 0x6cb   : > { %v2736_v33 = vmul.f32 %v3646_v10, %v2735_v4  ;;  %v2742_v7 = vmul.f32 %v3648_v48, %v2626_v57  ;;  %vm2748_vm13 = vweird.f32 %v3648_v48 }
 0x6cc   : > { %2856 = vst [vmem:[%s5706_s24 + $0x48] sm:$0xff] %v2840_v45  ;;  %vm2749_vm8 = vmor %vm2747_vm3, %vm2748_vm13 }
 0x6cd   : > { %v2740_v35 = vsel %vm2739_vm15, %v3646_v10, %v2736_v33  ;;  %v2743_v19 = vmul.f32 %v3648_v48, %v2742_v7 }
 0x6ce   : > { %v2801_v8 = vmul.f32 %v2740_v35, %v5650_v47 }
 0x6cf   : > { %v2744_v41 = vmul.f32 0.5, %v2743_v19 }
 0x6d0   : > { %v2821_v24 = vmul.f32 %v5691_v37, %v2801_v8 }
 0x6d1   : > { %v2745_v11 = vsub.f32 1.5, %v2744_v41 }
 0x6d2   : > { %v2841_v55 = vadd.f32 %v5696_v18, %v2821_v24 }
 0x6d3   : > { %v2746_v63 = vmul.f32 %v3648_v48, %v2745_v11 }
 0x6d4   : > { %2857 = vst [vmem:[%s5706_s24 + $0x50] sm:$0xff] %v2841_v55 }
 0x6d5   : > { %v2750_v49 = vsel %vm2749_vm8, %v3648_v48, %v2746_v63 }
 0x6d6   : > { %v2802_v14 = vmul.f32 %v2750_v49, %v5656_v50 }
 0x6d8   : > { %v2822_v29 = vmul.f32 %v5691_v37, %v2802_v14 }
 0x6d9   : > { %v2592_v52 = vpop.xlane.xlu1 %2591 }
 0x6da   : > { %v2842_v47 = vadd.f32 %v5696_v18, %v2822_v29  ;;  %v2611_v61 = vmul.f32 %v2592_v52, %v5574_v26 }
 0x6dc   : > { %2858 = vst [vmem:[%s5706_s24 + $0x58] sm:$0xff] %v2842_v47  ;;  %v2627_v34 = vadd.f32 1e-05, %v2611_v61 }
 0x6de   : > { %3649 = vrsqrt.f32 %v2627_v34  ;;  %vm2757_vm11 = vweird.f32 %v2627_v34 }
 0x6e1   : > { %v2594_v32 = vpop.xlane.xlu2 %2593 }
 0x6e2   : > { %v2612_v31 = vmul.f32 %v2594_v32, %v5574_v26 }
 0x6e4   : > { %v3650_v15 = vpop.eup %3649  ;;  %v2628_v46 = vadd.f32 1e-05, %v2612_v31 }
 0x6e5   : > { %v2752_v56 = vmul.f32 %v3650_v15, %v2627_v34  ;;  %vm2758_vm6 = vweird.f32 %v3650_v15 }
 0x6e6   : > { %3651 = vrsqrt.f32 %v2628_v46  ;;  %vm2759_vm7 = vmor %vm2757_vm11, %vm2758_vm6  ;;  %vm2767_vm12 = vweird.f32 %v2628_v46 }
 0x6e7   : > { %v2753_v0 = vmul.f32 %v3650_v15, %v2752_v56 }
 0x6e9   : > { %v2754_v38 = vmul.f32 0.5, %v2753_v0  ;;  %v2596_v50 = vpop.xlane.xlu0 %2595 }
 0x6ea   : > { %v2613_v28 = vmul.f32 %v2596_v50, %v5574_v26 }
 0x6eb   : > { %v2755_v30 = vsub.f32 1.5, %v2754_v38 }
 0x6ec   : > { %v3652_v21 = vpop.eup %3651  ;;  %v2629_v25 = vadd.f32 1e-05, %v2613_v28 }
 0x6ed   : > { %v2756_v59 = vmul.f32 %v3650_v15, %v2755_v30  ;;  %v2762_v12 = vmul.f32 %v3652_v21, %v2628_v46  ;;  %vm2768_vm0 = vweird.f32 %v3652_v21 }
 0x6ee   : > { %3653 = vrsqrt.f32 %v2629_v25  ;;  %vm2769_vm14 = vmor %vm2767_vm12, %vm2768_vm0  ;;  %vm2777_vm9 = vweird.f32 %v2629_v25 }
 0x6ef   : > { %v2760_v53 = vsel %vm2759_vm7, %v3650_v15, %v2756_v59  ;;  %v2763_v44 = vmul.f32 %v3652_v21, %v2762_v12 }
 0x6f0   : > { %v2803_v36 = vmul.f32 %v2760_v53, %v5662_v42 }
 0x6f1   : > { %v2764_v43 = vmul.f32 0.5, %v2763_v44  ;;  %v2598_v54 = vpop.xlane.xlu1 %2597 }
 0x6f2   : > { %v2823_v60 = vmul.f32 %v5691_v37, %v2803_v36  ;;  %v2614_v40 = vmul.f32 %v2598_v54, %v5574_v26 }
 0x6f3   : > { %v2765_v27 = vsub.f32 1.5, %v2764_v43 }
 0x6f4   : > { %v3654_v9 = vpop.eup %3653  ;;  %v2843_v62 = vadd.f32 %v5696_v18, %v2823_v60  ;;  %v2630_v13 = vadd.f32 1e-05, %v2614_v40 }
 0x6f5   : > { %v2766_v2 = vmul.f32 %v3652_v21, %v2765_v27  ;;  %v2772_v5 = vmul.f32 %v3654_v9, %v2629_v25  ;;  %vm2778_vm2 = vweird.f32 %v3654_v9 }
 0x6f6   : > { %2859 = vst [vmem:[%s5706_s24 + $0x60] sm:$0xff] %v2843_v62  ;;  %3655 = vrsqrt.f32 %v2630_v13  ;;  %vm2779_vm1 = vmor %vm2777_vm9, %vm2778_vm2  ;;  %vm2787_vm5 = vweird.f32 %v2630_v13 }
 0x6f7   : > { %v2770_v42 = vsel %vm2769_vm14, %v3652_v21, %v2766_v2  ;;  %v2773_v10 = vmul.f32 %v3654_v9, %v2772_v5 }
 0x6f8   : > { %v2804_v17 = vmul.f32 %v2770_v42, %v5668_v16 }
 0x6f9   : > { %v2774_v57 = vmul.f32 0.5, %v2773_v10 }
 0x6fa   : > { %v2824_v26 = vmul.f32 %v5691_v37, %v2804_v17 }
 0x6fb   : > { %v2775_v22 = vsub.f32 1.5, %v2774_v57 }
 0x6fc   : > { %v3656_v23 = vpop.eup %3655  ;;  %v2844_v39 = vadd.f32 %v5696_v18, %v2824_v26 }
 0x6fd   : > { %v2776_v6 = vmul.f32 %v3654_v9, %v2775_v22  ;;  %v2782_v58 = vmul.f32 %v3656_v23, %v2630_v13  ;;  %vm2788_vm10 = vweird.f32 %v3656_v23 }
 0x6fe   : > { %2860 = vst [vmem:[%s5706_s24 + $0x68] sm:$0xff] %v2844_v39  ;;  %vm2789_vm4 = vmor %vm2787_vm5, %vm2788_vm10 }
 0x6ff   : > { %v2780_v3 = vsel %vm2779_vm1, %v3654_v9, %v2776_v6  ;;  %v2783_v51 = vmul.f32 %v3656_v23, %v2782_v58 }
 0x700   : > { %v2805_v16 = vmul.f32 %v2780_v3, %v5675_v20 }
 0x701   : > { %v2784_v4 = vmul.f32 0.5, %v2783_v51 }
 0x702   : > { %v2825_v48 = vmul.f32 %v5691_v37, %v2805_v16 }
 0x703   : > { %v2785_v45 = vsub.f32 1.5, %v2784_v4 }
 0x704   : > { %v2845_v33 = vadd.f32 %v5696_v18, %v2825_v48 }
 0x705   : > { %v2786_v7 = vmul.f32 %v3656_v23, %v2785_v45 }
 0x706   : > { %2861 = vst [vmem:[%s5706_s24 + $0x70] sm:$0xff] %v2845_v33 }
 0x707   : > { %v2790_v20 = vsel %vm2789_vm4, %v3656_v23, %v2786_v7 }
 0x708   : > { %v2806_v35 = vmul.f32 %v2790_v20, %v5682_v1 }
 0x70a   : > { %v2826_v19 = vmul.f32 %v5691_v37, %v2806_v35 }
 0x70c   : > { %v2846_v8 = vadd.f32 %v5696_v18, %v2826_v19 }
 0x70e   : > { %2862 = vst [vmem:[%s5706_s24 + $0x78] sm:$0xff] %v2846_v8 }
 0x70f   : > { %3909 = shalt.err (!%p3906_p3)
}
 0x710   : > { %s3979_s18 = smov 128   ;;  %s3980_s24 = smov 8  }
 0x711   : > { %3467 = dma.vmem_to_hbm [thread:$0]  (%p4120_p13), %s2903_s22, 2048, %s2905_s16, %s2886_s2, %s3979_s18, %s3979_s18, %s3980_s24  }
 0x712 PF: > { %s2932_s28 = sand.u32 1, %s3952_s30   ;;  %p5996_p5 = scmp.ge.s32.totalorder %s3964_s12, 2 }
 0x713   : > { %s2933_s14 = scalar_lea.sflag [#allocation4], %s2932_s28 }
 0x714   : > { %p3492_p12 = pnand %p5996_p5, %p4125_p4 }
 0x716   : > { %p3493_p8 = pneg %p3492_p12 }
 0x718   : > { %3943 = dma.done.wait (%p3493_p8), %s2933_s14, 2048  }
 0x719   : > { %3945 = vsyncadd (%p3493_p8), %s2933_s14, 4294965248  ;;  %s2943_s21 = scalar_lea.sflag [#allocation15], %s2932_s28 }
 0x71a   : > { %3947 = dma.done.wait (%p3493_p8), %s2943_s21, 16  }
 0x71b   : > { %3949 = vsyncadd (%p3493_p8), %s2943_s21, 4294967280  ;;  %p29_p13 = scmp.ge.s32.totalorder %s4100_s15, 4   ;;  %s5997_s30 = smov %s3956_s10 }
 0x71c   : > { %s5998_s10 = smov %s3960_s11  ;;  %s5999_s11 = smov %s4112_s25 }
 0x71d   : > { %s6000_s12 = smov %s4100_s15  ;;  %31 = sbr.rel (!%p29_p13) target bundleno = 14 (0xe), region = 134 }
 0x722   :  { %2948 = vsyncpa [#allocation3], 1 }
 0x723   :  { %2950 = vsyncpa [#allocation3 + $0x1], 1 }
 0x724   :  { %2951 = vsyncpa [#allocation6], 1 }
 0x725   :  { %2952 = vsyncpa [#allocation9], 1 }
 0x726   :  { %2953 = vsyncpa [#allocation12], 1 }
 0x727   :  { %2954 = vsyncpa [#allocation4], 1 }
 0x728   :  { %2956 = vsyncpa [#allocation4 + $0x1], 1 }
 0x729   :  { %2957 = vsyncpa [#allocation15], 1 }
 0x72a   :  { %2959 = vsyncpa [#allocation15 + $0x1], 1 }

</bundles_post_ra>
